<compile_context>
chip_gen: v7x
topology: tpu7x:2x2x1
jax: 0.10.0
libtpu: 0.0.40
codegen_flags: <defaults>
</compile_context>

<pallas_src>
import functools

import jax
import jax.numpy as jnp
from jax.experimental import pallas as pl
from jax.experimental.pallas import tpu as pltpu

BN_EPS = 1e-5
_MAX_IMGS_PER_STEP = 8     # caps the block-diagonal upsample operator size


# ---------------------------------------------------------------------------
# Fused decoder kernel (Nb batch images, lane-packed, per grid step).
# ---------------------------------------------------------------------------
def _fused_decoder_kernel(e2_ref, e1_ref, up_ref, masks_ref,
                          w_up_ref, b_up_ref, w_d1_ref, b_d1_ref,
                          w_d2_ref, b_d2_ref, w_out_ref, b_out_ref,
                          o_ref, *, H, W, Nb):
    L = Nb * H * W
    masks = masks_ref[...]                               # (8, L) f32, one sublane tile

    def conv3x3(x, w_ref, b_ref, relu):
        # x: (Cin, L) f32;  w_ref: (9, Cout, Cin) bf16;  b_ref: (Cout, 1) f32.
        # Per-tap accumulation: no (9*Cin, L) im2col buffer; MXU has huge slack here.
        xb = x.astype(jnp.bfloat16)
        # Center tap: no roll, no mask.
        y = jnp.dot(w_ref[4], xb, preferred_element_type=jnp.float32)
        mk = 0
        for dy in (-1, 0, 1):
            for dx in (-1, 0, 1):
                if dy == 0 and dx == 0:
                    continue
                k = (dy + 1) * 3 + (dx + 1)
                d = dy * W + dx
                # t[p] = x[p + d]; taps falling outside an image (including any
                # cross-image wrap from the lane-packed batch) are zeroed by the mask.
                t = pltpu.roll(x, shift=(-d) % L, axis=1) * masks[mk:mk + 1]
                y += jnp.dot(w_ref[k], t.astype(jnp.bfloat16),
                             preferred_element_type=jnp.float32)
                mk += 1
        y = y + b_ref[...]
        return jnp.maximum(y, 0.0) if relu else y

    # Bilinear 2x upsample (align_corners=True): all Nb images in one MXU matmul
    # against a block-diagonal operator precomputed at trace time.
    up = jnp.dot(e2_ref[0].astype(jnp.bfloat16), up_ref[...],
                 preferred_element_type=jnp.float32)            # (c2p, L)

    up2 = conv3x3(up, w_up_ref, b_up_ref, relu=True)            # (bw, L)
    cat2 = jnp.concatenate([up2, e1_ref[0]], axis=0)            # (2*bw, L)
    d = conv3x3(cat2, w_d1_ref, b_d1_ref, relu=True)            # (bw, L)
    d = conv3x3(d, w_d2_ref, b_d2_ref, relu=True)               # (bw, L)
    out = conv3x3(d, w_out_ref, b_out_ref, relu=False)          # (out_ch, L)

    o_ref[0] = out.astype(o_ref.dtype)


# ---------------------------------------------------------------------------
# Trace-time helpers (tiny; run outside the kernel).
# ---------------------------------------------------------------------------
def _interp_matrix(n_in, n_out):
    # 1-D linear interpolation operator, align_corners=True (nn.Upsample semantics).
    i = jnp.arange(n_out, dtype=jnp.float32)
    denom = max(n_out - 1, 1)
    src = i * (n_in - 1) / denom
    lo = jnp.floor(src).astype(jnp.int32)
    hi = jnp.minimum(lo + 1, n_in - 1)
    frac = src - lo.astype(jnp.float32)
    m = jnp.zeros((n_out, n_in), jnp.float32)
    m = m.at[jnp.arange(n_out), lo].add(1.0 - frac)
    m = m.at[jnp.arange(n_out), hi].add(frac)
    return m


def _tap_masks(H, W):
    # Validity masks (f32 0/1) for the 8 NON-center conv taps (center needs none),
    # flattened spatial, dy-major / dx-minor order -> (8, H*W): one sublane tile.
    row = jnp.repeat(jnp.arange(H), W)
    col = jnp.tile(jnp.arange(W), H)
    masks = []
    for dy in (-1, 0, 1):
        for dx in (-1, 0, 1):
            if dy == 0 and dx == 0:
                continue
            valid = jnp.ones((H * W,), dtype=bool)
            if dy == -1:
                valid = valid & (row >= 1)
            if dy == 1:
                valid = valid & (row <= H - 2)
            if dx == -1:
                valid = valid & (col >= 1)
            if dx == 1:
                valid = valid & (col <= W - 2)
            masks.append(valid)
    return jnp.stack(masks).astype(jnp.float32)          # (8, H*W)


def _conv_weight_taps(w_hwio, cin_pad=None, dtype=jnp.bfloat16):
    # (3,3,Cin,Cout) HWIO -> (9, Cout, Cin) per-tap matmul layout (dy-major, dx-minor),
    # optionally zero-padding Cin, cast to bf16 for the MXU.
    kh, kw, cin, cout = w_hwio.shape
    if cin_pad is not None and cin_pad > cin:
        w_hwio = jnp.pad(w_hwio, ((0, 0), (0, 0), (0, cin_pad - cin), (0, 0)))
        cin = cin_pad
    return jnp.transpose(w_hwio, (0, 1, 3, 2)).reshape(kh * kw, cout, cin).astype(dtype)


def _num_tensorcores():
    # v7x exposes 2 TensorCores to the "parallel" grid dimension; v5e/v6e have 1.
    try:
        kind = jax.devices()[0].device_kind.lower()
    except Exception:
        return 1
    return 2 if "v7" in kind else 1


# ---------------------------------------------------------------------------
# Parameters (deterministic synthetic init; BN folded into conv weights).
# ---------------------------------------------------------------------------
def init_params(key, base_width, out_channels=1):
    bw = base_width
    c_e2 = int(bw * 1.1)
    bn_fold = 1.0 / jnp.sqrt(1.0 + BN_EPS)   # BatchNorm default init, eval mode
    ks = jax.random.split(key, 5)

    def w(k, cin, cout):
        return jax.random.normal(k, (3, 3, cin, cout), jnp.float32) * 0.05

    return {
        # up2: ConvModule(int(bw*1.1) -> bw): conv(bias=False) + BN + ReLU
        'up_w': w(ks[0], c_e2, bw) * bn_fold,
        'up_b': jnp.zeros((bw,), jnp.float32),
        # dec_block2: two ConvModules
        'dec1_w': w(ks[1], 2 * bw, bw) * bn_fold,
        'dec1_b': jnp.zeros((bw,), jnp.float32),
        'dec2_w': w(ks[2], bw, bw) * bn_fold,
        'dec2_b': jnp.zeros((bw,), jnp.float32),
        # output_conv: plain Conv2d with bias
        'out_w': w(ks[3], bw, out_channels),
        'out_b': jax.random.normal(ks[4], (out_channels,), jnp.float32) * 0.05,
    }


# ---------------------------------------------------------------------------
# NanoDecoder.forward (NCHW in / NCHW out) -- single fused pallas_call.
# ---------------------------------------------------------------------------
def nano_decoder_forward(params, e1_nchw, e2_nchw, num_steps=None):
    N, bw, H, W = e1_nchw.shape
    _, c2, H2, W2 = e2_nchw.shape
    HW, HW2 = H * W, H2 * W2
    out_ch = params['out_w'].shape[-1]
    c2p = ((c2 + 15) // 16) * 16               # pad e2 channels to bf16 sublane tile

    # Grid sizing: collapse the batch into as few steps as possible (overhead-bound
    # kernel), but keep >=2 "parallel" steps on v7x so both TensorCores are used.
    if num_steps is None:
        num_steps = min(N, max(_num_tensorcores(),
                               -(-N // _MAX_IMGS_PER_STEP)))
    n_pad = (-N) % num_steps
    if n_pad:
        e1_nchw = jnp.pad(e1_nchw, ((0, n_pad), (0, 0), (0, 0), (0, 0)))
        e2_nchw = jnp.pad(e2_nchw, ((0, n_pad), (0, 0), (0, 0), (0, 0)))
    Np = N + n_pad
    Nb = Np // num_steps
    L, L2 = Nb * HW, Nb * HW2

    # Pack Nb images per step along the lane axis: (steps, C, Nb*hw), image-major lanes.
    def pack(x_flat, C, hw):
        return (x_flat.reshape(num_steps, Nb, C, hw)
                .transpose(0, 2, 1, 3)
                .reshape(num_steps, C, Nb * hw))

    e1_p = pack(e1_nchw.reshape(Np, bw, HW), bw, HW)
    e2_p = pack(jnp.pad(e2_nchw.reshape(Np, c2, HW2),
                        ((0, 0), (0, c2p - c2), (0, 0))), c2p, HW2)

    # Upsample operator: up = e2 @ U per image; block-diagonal over the Nb lane-packed
    # images. bf16 operand for the MXU.
    U = jnp.kron(_interp_matrix(H2, H), _interp_matrix(W2, W)).T          # (HW2, HW)
    U_bd = jnp.kron(jnp.eye(Nb, dtype=U.dtype), U).astype(jnp.bfloat16)   # (L2, L)

    # 8 non-center tap masks, tiled across the Nb packed images.
    masks = jnp.tile(_tap_masks(H, W), (1, Nb))                            # (8, L)

    # Per-tap bf16 weights (+ zero-padded Cin for the up2 conv) and f32 biases.
    w_up = _conv_weight_taps(params['up_w'], cin_pad=c2p)    # (9, bw, c2p)
    w_d1 = _conv_weight_taps(params['dec1_w'])               # (9, bw, 2bw)
    w_d2 = _conv_weight_taps(params['dec2_w'])               # (9, bw, bw)
    w_out = _conv_weight_taps(params['out_w'])               # (9, out_ch, bw)
    b_up = params['up_b'].reshape(bw, 1)
    b_d1 = params['dec1_b'].reshape(bw, 1)
    b_d2 = params['dec2_b'].reshape(bw, 1)
    b_out = params['out_b'].reshape(out_ch, 1)

    kernel = functools.partial(_fused_decoder_kernel, H=H, W=W, Nb=Nb)

    flops = 2 * num_steps * L * (c2p * L2 + 9 * bw * c2p + 9 * bw * (2 * bw)
                                 + 9 * bw * bw + 9 * out_ch * bw)
    bytes_accessed = (4 * (e1_p.size + e2_p.size + masks.size
                           + b_up.size + b_d1.size + b_d2.size + b_out.size
                           + num_steps * out_ch * L)
                      + 2 * (U_bd.size + w_up.size + w_d1.size
                             + w_d2.size + w_out.size))

    inv2 = lambda n: (0, 0)         # grid-invariant blocks (stay resident in VMEM)
    inv3 = lambda n: (0, 0, 0)

    out_flat = pl.pallas_call(
        kernel,
        out_shape=jax.ShapeDtypeStruct((num_steps, out_ch, L), e1_nchw.dtype),
        grid=(num_steps,),
        in_specs=[
            pl.BlockSpec((1, c2p, L2), lambda n: (n, 0, 0)),   # e2 (lane-packed, padded)
            pl.BlockSpec((1, bw, L), lambda n: (n, 0, 0)),     # e1 (lane-packed)
            pl.BlockSpec((L2, L), inv2),                       # block-diag upsample op
            pl.BlockSpec((8, L), inv2),                        # non-center tap masks
            pl.BlockSpec(w_up.shape, inv3),
            pl.BlockSpec(b_up.shape, inv2),
            pl.BlockSpec(w_d1.shape, inv3),
            pl.BlockSpec(b_d1.shape, inv2),
            pl.BlockSpec(w_d2.shape, inv3),
            pl.BlockSpec(b_d2.shape, inv2),
            pl.BlockSpec(w_out.shape, inv3),
            pl.BlockSpec(b_out.shape, inv2),
        ],
        out_specs=pl.BlockSpec((1, out_ch, L), lambda n: (n, 0, 0)),
        compiler_params=pltpu.CompilerParams(
            dimension_semantics=("parallel",)),                # v7x: 2 TCs
        cost_estimate=pl.CostEstimate(flops=int(flops), transcendentals=0,
                                      bytes_accessed=int(bytes_accessed)),
    )(e2_p, e1_p, U_bd, masks,
      w_up, b_up, w_d1, b_d1, w_d2, b_d2, w_out, b_out)

    # Unpack lanes back to NCHW and drop any batch padding.
    out = (out_flat.reshape(num_steps, out_ch, Nb, HW)
           .transpose(0, 2, 1, 3)
           .reshape(Np, out_ch, H, W))
    return out[:N]


# ---------------------------------------------------------------------------
# Pure-JAX f32 reference (independent formulation) for a correctness check.
# ---------------------------------------------------------------------------
def _reference_forward(params, e1_nchw, e2_nchw):
    e1 = jnp.transpose(e1_nchw, (0, 2, 3, 1))
    e2 = jnp.transpose(e2_nchw, (0, 2, 3, 1))
    _, H2, W2, _ = e2.shape
    mh = _interp_matrix(H2, 2 * H2)
    mw = _interp_matrix(W2, 2 * W2)
    up = jnp.einsum('oh,nhwc->nowc', mh, e2)
    up = jnp.einsum('pw,nowc->nopc', mw, up)

    def conv(x, w, b, relu):
        y = jax.lax.conv_general_dilated(
            x, w, window_strides=(1, 1), padding='SAME',
            dimension_numbers=('NHWC', 'HWIO', 'NHWC'))
        y = y + b
        return jnp.maximum(y, 0.0) if relu else y

    up2 = conv(up, params['up_w'], params['up_b'], True)
    cat2 = jnp.concatenate([up2, e1], axis=-1)
    d = conv(cat2, params['dec1_w'], params['dec1_b'], True)
    d = conv(d, params['dec2_w'], params['dec2_b'], True)
    out = conv(d, params['out_w'], params['out_b'], False)
    return jnp.transpose(out, (0, 3, 1, 2))


if __name__ == "__main__":
    base_width = 16
    out_channels = 1
    key = jax.random.PRNGKey(0)
    kp, k1, k2, k3, k4 = jax.random.split(key, 5)

    params = init_params(kp, base_width, out_channels)
    fwd = jax.jit(nano_decoder_forward)
    ref_fn = jax.jit(_reference_forward)

    # Kernel matmuls use bf16 operands with f32 accumulation; the reference is all-f32,
    # so the expected mismatch is O(1e-3). 2e-2 still catches any layout / tap-order /
    # lane-packing bug (those produce errors on the order of the activations, ~1e-1).
    TOL = 2e-2

    # batch=2: even batch (on v7x this runs as 2 parallel grid steps, 1 image each;
    # on v5e/v6e it collapses to a single step with both images lane-packed).
    e1 = jax.random.normal(k1, (2, base_width, 16, 16), jnp.float32)
    e2 = jax.random.normal(k2, (2, int(base_width * 1.1), 8, 8), jnp.float32)
    out = jax.block_until_ready(fwd(params, e1, e2))
    assert out.shape == (2, out_channels, 16, 16), out.shape
    assert bool(jnp.all(jnp.isfinite(out)))
    ref = jax.block_until_ready(ref_fn(params, e1, e2))
    err = float(jnp.max(jnp.abs(out - ref)))
    assert err < TOL, f"batch=2 kernel/reference mismatch: max abs err = {err}"

    # batch=3: odd batch exercises batch padding and verifies non-identical images
    # packed along the lane axis stay independent (boundary-mask coverage of wraps).
    e1b = jax.random.normal(k3, (3, base_width, 16, 16), jnp.float32)
    e2b = jax.random.normal(k4, (3, int(base_width * 1.1), 8, 8), jnp.float32)
    outb = jax.block_until_ready(fwd(params, e1b, e2b))
    refb = jax.block_until_ready(ref_fn(params, e1b, e2b))
    errb = float(jnp.max(jnp.abs(outb - refb)))
    assert outb.shape == (3, out_channels, 16, 16), outb.shape
    assert errb < TOL, f"batch=3 kernel/reference mismatch: max abs err = {errb}"

    print("KERNEL_OK")
</pallas_src>

<mosaic_0001>
module attributes {stable_mosaic.version = 11 : i64} {
  func.func private @main(%arg0: i32) attributes {dimension_semantics = [#tpu.dimension_semantics<core_parallel>], iteration_bounds = array<i64: 2>, tpu.core_type = #tpu.core_type<sc_scalar_subcore>, window_params = []} {
    return
  }
}

module attributes {stable_mosaic.version = 11 : i64} {
  func.func private @main(%arg0: i32) attributes {dimension_semantics = [#tpu.dimension_semantics<core_parallel>], iteration_bounds = array<i64: 2>, tpu.core_type = #tpu.core_type<sc_scalar_subcore>, window_params = []} {
    return
  }
}

module attributes {stable_mosaic.version = 11 : i64} {
  func.func @_fused_decoder_kernel(%arg0: i32, %arg1: memref<1x32x128xf32, #tpu.memory_space<vmem>>, %arg2: memref<1x16x512xf32, #tpu.memory_space<vmem>>, %arg3: memref<128x512xbf16, #tpu.memory_space<vmem>>, %arg4: memref<8x512xf32, #tpu.memory_space<vmem>>, %arg5: memref<9x16x32xbf16, #tpu.memory_space<vmem>>, %arg6: memref<16x1xf32, #tpu.memory_space<vmem>>, %arg7: memref<9x16x32xbf16, #tpu.memory_space<vmem>>, %arg8: memref<16x1xf32, #tpu.memory_space<vmem>>, %arg9: memref<9x16x16xbf16, #tpu.memory_space<vmem>>, %arg10: memref<16x1xf32, #tpu.memory_space<vmem>>, %arg11: memref<9x1x16xbf16, #tpu.memory_space<vmem>>, %arg12: memref<1x1xf32, #tpu.memory_space<vmem>>, %arg13: memref<1x1x512xf32, #tpu.memory_space<vmem>>) attributes {dimension_semantics = [#tpu.dimension_semantics<parallel>], iteration_bounds = array<i64: 1>, scalar_prefetch = 0 : i64, scratch_operands = 0 : i64, tpu.core_type = #tpu.core_type<tc>, window_params = [{transform_indices = @transform_0, window_bounds = array<i64: 1, 32, 128>}, {transform_indices = @transform_1, window_bounds = array<i64: 1, 16, 512>}, {pipeline_mode = #tpu.pipeline_mode<synchronous>, transform_indices = @transform_2, window_bounds = array<i64: 128, 512>}, {pipeline_mode = #tpu.pipeline_mode<synchronous>, transform_indices = @transform_3, window_bounds = array<i64: 8, 512>}, {pipeline_mode = #tpu.pipeline_mode<synchronous>, transform_indices = @transform_4, window_bounds = array<i64: 9, 16, 32>}, {pipeline_mode = #tpu.pipeline_mode<synchronous>, transform_indices = @transform_5, window_bounds = array<i64: 16, 1>}, {pipeline_mode = #tpu.pipeline_mode<synchronous>, transform_indices = @transform_6, window_bounds = array<i64: 9, 16, 32>}, {pipeline_mode = #tpu.pipeline_mode<synchronous>, transform_indices = @transform_7, window_bounds = array<i64: 16, 1>}, {pipeline_mode = #tpu.pipeline_mode<synchronous>, transform_indices = @transform_8, window_bounds = array<i64: 9, 16, 16>}, {pipeline_mode = #tpu.pipeline_mode<synchronous>, transform_indices = @transform_9, window_bounds = array<i64: 16, 1>}, {pipeline_mode = #tpu.pipeline_mode<synchronous>, transform_indices = @transform_10, window_bounds = array<i64: 9, 1, 16>}, {pipeline_mode = #tpu.pipeline_mode<synchronous>, transform_indices = @transform_11, window_bounds = array<i64: 1, 1>}, {transform_indices = @transform_12, window_bounds = array<i64: 1, 1, 512>}]} {
    %c0 = arith.constant 0 : index
    %c0_0 = arith.constant 0 : index
    %0 = vector.load %arg4[%c0, %c0_0] : memref<8x512xf32, #tpu.memory_space<vmem>>, vector<8x512xf32>
    %c0_1 = arith.constant 0 : index
    %c0_2 = arith.constant 0 : index
    %c0_3 = arith.constant 0 : index
    %1 = vector.load %arg1[%c0_1, %c0_2, %c0_3] : memref<1x32x128xf32, #tpu.memory_space<vmem>>, vector<1x32x128xf32>
    %2 = vector.shape_cast %1 : vector<1x32x128xf32> to vector<32x128xf32>
    %3 = arith.truncf %2 : vector<32x128xf32> to vector<32x128xbf16>
    %c0_4 = arith.constant 0 : index
    %c0_5 = arith.constant 0 : index
    %4 = vector.load %arg3[%c0_4, %c0_5] : memref<128x512xbf16, #tpu.memory_space<vmem>>, vector<128x512xbf16>
    %cst = arith.constant dense<0.000000e+00> : vector<32x512xf32>
    %5 = tpu.matmul %3, %4, %cst {dimension_numbers = #tpu.dot_dimension_numbers<[1], [0], [0], [1], [0, 0, 1, 1], [], []>} : vector<32x128xbf16>, vector<128x512xbf16>, vector<32x512xf32> -> vector<32x512xf32>
    %6 = arith.truncf %5 : vector<32x512xf32> to vector<32x512xbf16>
    %c4 = arith.constant 4 : index
    %c0_6 = arith.constant 0 : index
    %c0_7 = arith.constant 0 : index
    %7 = vector.load %arg5[%c4, %c0_6, %c0_7] : memref<9x16x32xbf16, #tpu.memory_space<vmem>>, vector<1x16x32xbf16>
    %8 = vector.shape_cast %7 : vector<1x16x32xbf16> to vector<16x32xbf16>
    %cst_8 = arith.constant dense<0.000000e+00> : vector<16x512xf32>
    %9 = tpu.matmul %8, %6, %cst_8 {dimension_numbers = #tpu.dot_dimension_numbers<[1], [0], [0], [1], [0, 0, 1, 1], [], []>} : vector<16x32xbf16>, vector<32x512xbf16>, vector<16x512xf32> -> vector<16x512xf32>
    %c17_i32 = arith.constant 17 : i32
    %10 = tpu.dynamic_rotate %5 by %c17_i32 dim 1 : vector<32x512xf32>, i32 -> vector<32x512xf32>
    %11 = vector.extract_strided_slice %0 {offsets = [0, 0], sizes = [1, 512], strides = [1, 1]} : vector<8x512xf32> to vector<1x512xf32>
    %12 = vector.broadcast %11 : vector<1x512xf32> to vector<32x512xf32>
    %13 = arith.mulf %10, %12 : vector<32x512xf32>
    %c0_9 = arith.constant 0 : index
    %c0_10 = arith.constant 0 : index
    %c0_11 = arith.constant 0 : index
    %14 = vector.load %arg5[%c0_9, %c0_10, %c0_11] : memref<9x16x32xbf16, #tpu.memory_space<vmem>>, vector<1x16x32xbf16>
    %15 = vector.shape_cast %14 : vector<1x16x32xbf16> to vector<16x32xbf16>
    %16 = arith.truncf %13 : vector<32x512xf32> to vector<32x512xbf16>
    %cst_12 = arith.constant dense<0.000000e+00> : vector<16x512xf32>
    %17 = tpu.matmul %15, %16, %cst_12 {dimension_numbers = #tpu.dot_dimension_numbers<[1], [0], [0], [1], [0, 0, 1, 1], [], []>} : vector<16x32xbf16>, vector<32x512xbf16>, vector<16x512xf32> -> vector<16x512xf32>
    %18 = arith.addf %9, %17 : vector<16x512xf32>
    %c16_i32 = arith.constant 16 : i32
    %19 = tpu.dynamic_rotate %5 by %c16_i32 dim 1 : vector<32x512xf32>, i32 -> vector<32x512xf32>
    %20 = vector.extract_strided_slice %0 {offsets = [1, 0], sizes = [1, 512], strides = [1, 1]} : vector<8x512xf32> to vector<1x512xf32>
    %21 = vector.broadcast %20 : vector<1x512xf32> to vector<32x512xf32>
    %22 = arith.mulf %19, %21 : vector<32x512xf32>
    %c1 = arith.constant 1 : index
    %c0_13 = arith.constant 0 : index
    %c0_14 = arith.constant 0 : index
    %23 = vector.load %arg5[%c1, %c0_13, %c0_14] : memref<9x16x32xbf16, #tpu.memory_space<vmem>>, vector<1x16x32xbf16>
    %24 = vector.shape_cast %23 : vector<1x16x32xbf16> to vector<16x32xbf16>
    %25 = arith.truncf %22 : vector<32x512xf32> to vector<32x512xbf16>
    %cst_15 = arith.constant dense<0.000000e+00> : vector<16x512xf32>
    %26 = tpu.matmul %24, %25, %cst_15 {dimension_numbers = #tpu.dot_dimension_numbers<[1], [0], [0], [1], [0, 0, 1, 1], [], []>} : vector<16x32xbf16>, vector<32x512xbf16>, vector<16x512xf32> -> vector<16x512xf32>
    %27 = arith.addf %18, %26 : vector<16x512xf32>
    %c15_i32 = arith.constant 15 : i32
    %28 = tpu.dynamic_rotate %5 by %c15_i32 dim 1 : vector<32x512xf32>, i32 -> vector<32x512xf32>
    %29 = vector.extract_strided_slice %0 {offsets = [2, 0], sizes = [1, 512], strides = [1, 1]} : vector<8x512xf32> to vector<1x512xf32>
    %30 = vector.broadcast %29 : vector<1x512xf32> to vector<32x512xf32>
    %31 = arith.mulf %28, %30 : vector<32x512xf32>
    %c2 = arith.constant 2 : index
    %c0_16 = arith.constant 0 : index
    %c0_17 = arith.constant 0 : index
    %32 = vector.load %arg5[%c2, %c0_16, %c0_17] : memref<9x16x32xbf16, #tpu.memory_space<vmem>>, vector<1x16x32xbf16>
    %33 = vector.shape_cast %32 : vector<1x16x32xbf16> to vector<16x32xbf16>
    %34 = arith.truncf %31 : vector<32x512xf32> to vector<32x512xbf16>
    %cst_18 = arith.constant dense<0.000000e+00> : vector<16x512xf32>
    %35 = tpu.matmul %33, %34, %cst_18 {dimension_numbers = #tpu.dot_dimension_numbers<[1], [0], [0], [1], [0, 0, 1, 1], [], []>} : vector<16x32xbf16>, vector<32x512xbf16>, vector<16x512xf32> -> vector<16x512xf32>
    %36 = arith.addf %27, %35 : vector<16x512xf32>
    %c1_i32 = arith.constant 1 : i32
    %37 = tpu.dynamic_rotate %5 by %c1_i32 dim 1 : vector<32x512xf32>, i32 -> vector<32x512xf32>
    %38 = vector.extract_strided_slice %0 {offsets = [3, 0], sizes = [1, 512], strides = [1, 1]} : vector<8x512xf32> to vector<1x512xf32>
    %39 = vector.broadcast %38 : vector<1x512xf32> to vector<32x512xf32>
    %40 = arith.mulf %37, %39 : vector<32x512xf32>
    %c3 = arith.constant 3 : index
    %c0_19 = arith.constant 0 : index
    %c0_20 = arith.constant 0 : index
    %41 = vector.load %arg5[%c3, %c0_19, %c0_20] : memref<9x16x32xbf16, #tpu.memory_space<vmem>>, vector<1x16x32xbf16>
    %42 = vector.shape_cast %41 : vector<1x16x32xbf16> to vector<16x32xbf16>
    %43 = arith.truncf %40 : vector<32x512xf32> to vector<32x512xbf16>
    %cst_21 = arith.constant dense<0.000000e+00> : vector<16x512xf32>
    %44 = tpu.matmul %42, %43, %cst_21 {dimension_numbers = #tpu.dot_dimension_numbers<[1], [0], [0], [1], [0, 0, 1, 1], [], []>} : vector<16x32xbf16>, vector<32x512xbf16>, vector<16x512xf32> -> vector<16x512xf32>
    %45 = arith.addf %36, %44 : vector<16x512xf32>
    %c511_i32 = arith.constant 511 : i32
    %46 = tpu.dynamic_rotate %5 by %c511_i32 dim 1 : vector<32x512xf32>, i32 -> vector<32x512xf32>
    %47 = vector.extract_strided_slice %0 {offsets = [4, 0], sizes = [1, 512], strides = [1, 1]} : vector<8x512xf32> to vector<1x512xf32>
    %48 = vector.broadcast %47 : vector<1x512xf32> to vector<32x512xf32>
    %49 = arith.mulf %46, %48 : vector<32x512xf32>
    %c5 = arith.constant 5 : index
    %c0_22 = arith.constant 0 : index
    %c0_23 = arith.constant 0 : index
    %50 = vector.load %arg5[%c5, %c0_22, %c0_23] : memref<9x16x32xbf16, #tpu.memory_space<vmem>>, vector<1x16x32xbf16>
    %51 = vector.shape_cast %50 : vector<1x16x32xbf16> to vector<16x32xbf16>
    %52 = arith.truncf %49 : vector<32x512xf32> to vector<32x512xbf16>
    %cst_24 = arith.constant dense<0.000000e+00> : vector<16x512xf32>
    %53 = tpu.matmul %51, %52, %cst_24 {dimension_numbers = #tpu.dot_dimension_numbers<[1], [0], [0], [1], [0, 0, 1, 1], [], []>} : vector<16x32xbf16>, vector<32x512xbf16>, vector<16x512xf32> -> vector<16x512xf32>
    %54 = arith.addf %45, %53 : vector<16x512xf32>
    %c497_i32 = arith.constant 497 : i32
    %55 = tpu.dynamic_rotate %5 by %c497_i32 dim 1 : vector<32x512xf32>, i32 -> vector<32x512xf32>
    %56 = vector.extract_strided_slice %0 {offsets = [5, 0], sizes = [1, 512], strides = [1, 1]} : vector<8x512xf32> to vector<1x512xf32>
    %57 = vector.broadcast %56 : vector<1x512xf32> to vector<32x512xf32>
    %58 = arith.mulf %55, %57 : vector<32x512xf32>
    %c6 = arith.constant 6 : index
    %c0_25 = arith.constant 0 : index
    %c0_26 = arith.constant 0 : index
    %59 = vector.load %arg5[%c6, %c0_25, %c0_26] : memref<9x16x32xbf16, #tpu.memory_space<vmem>>, vector<1x16x32xbf16>
    %60 = vector.shape_cast %59 : vector<1x16x32xbf16> to vector<16x32xbf16>
    %61 = arith.truncf %58 : vector<32x512xf32> to vector<32x512xbf16>
    %cst_27 = arith.constant dense<0.000000e+00> : vector<16x512xf32>
    %62 = tpu.matmul %60, %61, %cst_27 {dimension_numbers = #tpu.dot_dimension_numbers<[1], [0], [0], [1], [0, 0, 1, 1], [], []>} : vector<16x32xbf16>, vector<32x512xbf16>, vector<16x512xf32> -> vector<16x512xf32>
    %63 = arith.addf %54, %62 : vector<16x512xf32>
    %c496_i32 = arith.constant 496 : i32
    %64 = tpu.dynamic_rotate %5 by %c496_i32 dim 1 : vector<32x512xf32>, i32 -> vector<32x512xf32>
    %65 = vector.extract_strided_slice %0 {offsets = [6, 0], sizes = [1, 512], strides = [1, 1]} : vector<8x512xf32> to vector<1x512xf32>
    %66 = vector.broadcast %65 : vector<1x512xf32> to vector<32x512xf32>
    %67 = arith.mulf %64, %66 : vector<32x512xf32>
    %c7 = arith.constant 7 : index
    %c0_28 = arith.constant 0 : index
    %c0_29 = arith.constant 0 : index
    %68 = vector.load %arg5[%c7, %c0_28, %c0_29] : memref<9x16x32xbf16, #tpu.memory_space<vmem>>, vector<1x16x32xbf16>
    %69 = vector.shape_cast %68 : vector<1x16x32xbf16> to vector<16x32xbf16>
    %70 = arith.truncf %67 : vector<32x512xf32> to vector<32x512xbf16>
    %cst_30 = arith.constant dense<0.000000e+00> : vector<16x512xf32>
    %71 = tpu.matmul %69, %70, %cst_30 {dimension_numbers = #tpu.dot_dimension_numbers<[1], [0], [0], [1], [0, 0, 1, 1], [], []>} : vector<16x32xbf16>, vector<32x512xbf16>, vector<16x512xf32> -> vector<16x512xf32>
    %72 = arith.addf %63, %71 : vector<16x512xf32>
    %c495_i32 = arith.constant 495 : i32
    %73 = tpu.dynamic_rotate %5 by %c495_i32 dim 1 : vector<32x512xf32>, i32 -> vector<32x512xf32>
    %74 = vector.extract_strided_slice %0 {offsets = [7, 0], sizes = [1, 512], strides = [1, 1]} : vector<8x512xf32> to vector<1x512xf32>
    %75 = vector.broadcast %74 : vector<1x512xf32> to vector<32x512xf32>
    %76 = arith.mulf %73, %75 : vector<32x512xf32>
    %c8 = arith.constant 8 : index
    %c0_31 = arith.constant 0 : index
    %c0_32 = arith.constant 0 : index
    %77 = vector.load %arg5[%c8, %c0_31, %c0_32] : memref<9x16x32xbf16, #tpu.memory_space<vmem>>, vector<1x16x32xbf16>
    %78 = vector.shape_cast %77 : vector<1x16x32xbf16> to vector<16x32xbf16>
    %79 = arith.truncf %76 : vector<32x512xf32> to vector<32x512xbf16>
    %cst_33 = arith.constant dense<0.000000e+00> : vector<16x512xf32>
    %80 = tpu.matmul %78, %79, %cst_33 {dimension_numbers = #tpu.dot_dimension_numbers<[1], [0], [0], [1], [0, 0, 1, 1], [], []>} : vector<16x32xbf16>, vector<32x512xbf16>, vector<16x512xf32> -> vector<16x512xf32>
    %81 = arith.addf %72, %80 : vector<16x512xf32>
    %c0_34 = arith.constant 0 : index
    %c0_35 = arith.constant 0 : index
    %82 = vector.load %arg6[%c0_34, %c0_35] : memref<16x1xf32, #tpu.memory_space<vmem>>, vector<16x1xf32>
    %83 = vector.broadcast %82 : vector<16x1xf32> to vector<16x512xf32>
    %84 = arith.addf %81, %83 : vector<16x512xf32>
    %cst_36 = arith.constant 0.000000e+00 : f32
    %85 = vector.broadcast %cst_36 : f32 to vector<16x512xf32>
    %86 = arith.maximumf %84, %85 : vector<16x512xf32>
    %c0_37 = arith.constant 0 : index
    %c0_38 = arith.constant 0 : index
    %c0_39 = arith.constant 0 : index
    %87 = vector.load %arg2[%c0_37, %c0_38, %c0_39] : memref<1x16x512xf32, #tpu.memory_space<vmem>>, vector<1x16x512xf32>
    %88 = vector.shape_cast %87 : vector<1x16x512xf32> to vector<16x512xf32>
    %89 = tpu.concatenate %86, %88 in 0 : vector<16x512xf32>, vector<16x512xf32> -> vector<32x512xf32>
    %90 = arith.truncf %89 : vector<32x512xf32> to vector<32x512xbf16>
    %c4_40 = arith.constant 4 : index
    %c0_41 = arith.constant 0 : index
    %c0_42 = arith.constant 0 : index
    %91 = vector.load %arg7[%c4_40, %c0_41, %c0_42] : memref<9x16x32xbf16, #tpu.memory_space<vmem>>, vector<1x16x32xbf16>
    %92 = vector.shape_cast %91 : vector<1x16x32xbf16> to vector<16x32xbf16>
    %cst_43 = arith.constant dense<0.000000e+00> : vector<16x512xf32>
    %93 = tpu.matmul %92, %90, %cst_43 {dimension_numbers = #tpu.dot_dimension_numbers<[1], [0], [0], [1], [0, 0, 1, 1], [], []>} : vector<16x32xbf16>, vector<32x512xbf16>, vector<16x512xf32> -> vector<16x512xf32>
    %c17_i32_44 = arith.constant 17 : i32
    %94 = tpu.dynamic_rotate %89 by %c17_i32_44 dim 1 : vector<32x512xf32>, i32 -> vector<32x512xf32>
    %95 = vector.extract_strided_slice %0 {offsets = [0, 0], sizes = [1, 512], strides = [1, 1]} : vector<8x512xf32> to vector<1x512xf32>
    %96 = vector.broadcast %95 : vector<1x512xf32> to vector<32x512xf32>
    %97 = arith.mulf %94, %96 : vector<32x512xf32>
    %c0_45 = arith.constant 0 : index
    %c0_46 = arith.constant 0 : index
    %c0_47 = arith.constant 0 : index
    %98 = vector.load %arg7[%c0_45, %c0_46, %c0_47] : memref<9x16x32xbf16, #tpu.memory_space<vmem>>, vector<1x16x32xbf16>
    %99 = vector.shape_cast %98 : vector<1x16x32xbf16> to vector<16x32xbf16>
    %100 = arith.truncf %97 : vector<32x512xf32> to vector<32x512xbf16>
    %cst_48 = arith.constant dense<0.000000e+00> : vector<16x512xf32>
    %101 = tpu.matmul %99, %100, %cst_48 {dimension_numbers = #tpu.dot_dimension_numbers<[1], [0], [0], [1], [0, 0, 1, 1], [], []>} : vector<16x32xbf16>, vector<32x512xbf16>, vector<16x512xf32> -> vector<16x512xf32>
    %102 = arith.addf %93, %101 : vector<16x512xf32>
    %c16_i32_49 = arith.constant 16 : i32
    %103 = tpu.dynamic_rotate %89 by %c16_i32_49 dim 1 : vector<32x512xf32>, i32 -> vector<32x512xf32>
    %104 = vector.extract_strided_slice %0 {offsets = [1, 0], sizes = [1, 512], strides = [1, 1]} : vector<8x512xf32> to vector<1x512xf32>
    %105 = vector.broadcast %104 : vector<1x512xf32> to vector<32x512xf32>
    %106 = arith.mulf %103, %105 : vector<32x512xf32>
    %c1_50 = arith.constant 1 : index
    %c0_51 = arith.constant 0 : index
    %c0_52 = arith.constant 0 : index
    %107 = vector.load %arg7[%c1_50, %c0_51, %c0_52] : memref<9x16x32xbf16, #tpu.memory_space<vmem>>, vector<1x16x32xbf16>
    %108 = vector.shape_cast %107 : vector<1x16x32xbf16> to vector<16x32xbf16>
    %109 = arith.truncf %106 : vector<32x512xf32> to vector<32x512xbf16>
    %cst_53 = arith.constant dense<0.000000e+00> : vector<16x512xf32>
    %110 = tpu.matmul %108, %109, %cst_53 {dimension_numbers = #tpu.dot_dimension_numbers<[1], [0], [0], [1], [0, 0, 1, 1], [], []>} : vector<16x32xbf16>, vector<32x512xbf16>, vector<16x512xf32> -> vector<16x512xf32>
    %111 = arith.addf %102, %110 : vector<16x512xf32>
    %c15_i32_54 = arith.constant 15 : i32
    %112 = tpu.dynamic_rotate %89 by %c15_i32_54 dim 1 : vector<32x512xf32>, i32 -> vector<32x512xf32>
    %113 = vector.extract_strided_slice %0 {offsets = [2, 0], sizes = [1, 512], strides = [1, 1]} : vector<8x512xf32> to vector<1x512xf32>
    %114 = vector.broadcast %113 : vector<1x512xf32> to vector<32x512xf32>
    %115 = arith.mulf %112, %114 : vector<32x512xf32>
    %c2_55 = arith.constant 2 : index
    %c0_56 = arith.constant 0 : index
    %c0_57 = arith.constant 0 : index
    %116 = vector.load %arg7[%c2_55, %c0_56, %c0_57] : memref<9x16x32xbf16, #tpu.memory_space<vmem>>, vector<1x16x32xbf16>
    %117 = vector.shape_cast %116 : vector<1x16x32xbf16> to vector<16x32xbf16>
    %118 = arith.truncf %115 : vector<32x512xf32> to vector<32x512xbf16>
    %cst_58 = arith.constant dense<0.000000e+00> : vector<16x512xf32>
    %119 = tpu.matmul %117, %118, %cst_58 {dimension_numbers = #tpu.dot_dimension_numbers<[1], [0], [0], [1], [0, 0, 1, 1], [], []>} : vector<16x32xbf16>, vector<32x512xbf16>, vector<16x512xf32> -> vector<16x512xf32>
    %120 = arith.addf %111, %119 : vector<16x512xf32>
    %c1_i32_59 = arith.constant 1 : i32
    %121 = tpu.dynamic_rotate %89 by %c1_i32_59 dim 1 : vector<32x512xf32>, i32 -> vector<32x512xf32>
    %122 = vector.extract_strided_slice %0 {offsets = [3, 0], sizes = [1, 512], strides = [1, 1]} : vector<8x512xf32> to vector<1x512xf32>
    %123 = vector.broadcast %122 : vector<1x512xf32> to vector<32x512xf32>
    %124 = arith.mulf %121, %123 : vector<32x512xf32>
    %c3_60 = arith.constant 3 : index
    %c0_61 = arith.constant 0 : index
    %c0_62 = arith.constant 0 : index
    %125 = vector.load %arg7[%c3_60, %c0_61, %c0_62] : memref<9x16x32xbf16, #tpu.memory_space<vmem>>, vector<1x16x32xbf16>
    %126 = vector.shape_cast %125 : vector<1x16x32xbf16> to vector<16x32xbf16>
    %127 = arith.truncf %124 : vector<32x512xf32> to vector<32x512xbf16>
    %cst_63 = arith.constant dense<0.000000e+00> : vector<16x512xf32>
    %128 = tpu.matmul %126, %127, %cst_63 {dimension_numbers = #tpu.dot_dimension_numbers<[1], [0], [0], [1], [0, 0, 1, 1], [], []>} : vector<16x32xbf16>, vector<32x512xbf16>, vector<16x512xf32> -> vector<16x512xf32>
    %129 = arith.addf %120, %128 : vector<16x512xf32>
    %c511_i32_64 = arith.constant 511 : i32
    %130 = tpu.dynamic_rotate %89 by %c511_i32_64 dim 1 : vector<32x512xf32>, i32 -> vector<32x512xf32>
    %131 = vector.extract_strided_slice %0 {offsets = [4, 0], sizes = [1, 512], strides = [1, 1]} : vector<8x512xf32> to vector<1x512xf32>
    %132 = vector.broadcast %131 : vector<1x512xf32> to vector<32x512xf32>
    %133 = arith.mulf %130, %132 : vector<32x512xf32>
    %c5_65 = arith.constant 5 : index
    %c0_66 = arith.constant 0 : index
    %c0_67 = arith.constant 0 : index
    %134 = vector.load %arg7[%c5_65, %c0_66, %c0_67] : memref<9x16x32xbf16, #tpu.memory_space<vmem>>, vector<1x16x32xbf16>
    %135 = vector.shape_cast %134 : vector<1x16x32xbf16> to vector<16x32xbf16>
    %136 = arith.truncf %133 : vector<32x512xf32> to vector<32x512xbf16>
    %cst_68 = arith.constant dense<0.000000e+00> : vector<16x512xf32>
    %137 = tpu.matmul %135, %136, %cst_68 {dimension_numbers = #tpu.dot_dimension_numbers<[1], [0], [0], [1], [0, 0, 1, 1], [], []>} : vector<16x32xbf16>, vector<32x512xbf16>, vector<16x512xf32> -> vector<16x512xf32>
    %138 = arith.addf %129, %137 : vector<16x512xf32>
    %c497_i32_69 = arith.constant 497 : i32
    %139 = tpu.dynamic_rotate %89 by %c497_i32_69 dim 1 : vector<32x512xf32>, i32 -> vector<32x512xf32>
    %140 = vector.extract_strided_slice %0 {offsets = [5, 0], sizes = [1, 512], strides = [1, 1]} : vector<8x512xf32> to vector<1x512xf32>
    %141 = vector.broadcast %140 : vector<1x512xf32> to vector<32x512xf32>
    %142 = arith.mulf %139, %141 : vector<32x512xf32>
    %c6_70 = arith.constant 6 : index
    %c0_71 = arith.constant 0 : index
    %c0_72 = arith.constant 0 : index
    %143 = vector.load %arg7[%c6_70, %c0_71, %c0_72] : memref<9x16x32xbf16, #tpu.memory_space<vmem>>, vector<1x16x32xbf16>
    %144 = vector.shape_cast %143 : vector<1x16x32xbf16> to vector<16x32xbf16>
    %145 = arith.truncf %142 : vector<32x512xf32> to vector<32x512xbf16>
    %cst_73 = arith.constant dense<0.000000e+00> : vector<16x512xf32>
    %146 = tpu.matmul %144, %145, %cst_73 {dimension_numbers = #tpu.dot_dimension_numbers<[1], [0], [0], [1], [0, 0, 1, 1], [], []>} : vector<16x32xbf16>, vector<32x512xbf16>, vector<16x512xf32> -> vector<16x512xf32>
    %147 = arith.addf %138, %146 : vector<16x512xf32>
    %c496_i32_74 = arith.constant 496 : i32
    %148 = tpu.dynamic_rotate %89 by %c496_i32_74 dim 1 : vector<32x512xf32>, i32 -> vector<32x512xf32>
    %149 = vector.extract_strided_slice %0 {offsets = [6, 0], sizes = [1, 512], strides = [1, 1]} : vector<8x512xf32> to vector<1x512xf32>
    %150 = vector.broadcast %149 : vector<1x512xf32> to vector<32x512xf32>
    %151 = arith.mulf %148, %150 : vector<32x512xf32>
    %c7_75 = arith.constant 7 : index
    %c0_76 = arith.constant 0 : index
    %c0_77 = arith.constant 0 : index
    %152 = vector.load %arg7[%c7_75, %c0_76, %c0_77] : memref<9x16x32xbf16, #tpu.memory_space<vmem>>, vector<1x16x32xbf16>
    %153 = vector.shape_cast %152 : vector<1x16x32xbf16> to vector<16x32xbf16>
    %154 = arith.truncf %151 : vector<32x512xf32> to vector<32x512xbf16>
    %cst_78 = arith.constant dense<0.000000e+00> : vector<16x512xf32>
    %155 = tpu.matmul %153, %154, %cst_78 {dimension_numbers = #tpu.dot_dimension_numbers<[1], [0], [0], [1], [0, 0, 1, 1], [], []>} : vector<16x32xbf16>, vector<32x512xbf16>, vector<16x512xf32> -> vector<16x512xf32>
    %156 = arith.addf %147, %155 : vector<16x512xf32>
    %c495_i32_79 = arith.constant 495 : i32
    %157 = tpu.dynamic_rotate %89 by %c495_i32_79 dim 1 : vector<32x512xf32>, i32 -> vector<32x512xf32>
    %158 = vector.extract_strided_slice %0 {offsets = [7, 0], sizes = [1, 512], strides = [1, 1]} : vector<8x512xf32> to vector<1x512xf32>
    %159 = vector.broadcast %158 : vector<1x512xf32> to vector<32x512xf32>
    %160 = arith.mulf %157, %159 : vector<32x512xf32>
    %c8_80 = arith.constant 8 : index
    %c0_81 = arith.constant 0 : index
    %c0_82 = arith.constant 0 : index
    %161 = vector.load %arg7[%c8_80, %c0_81, %c0_82] : memref<9x16x32xbf16, #tpu.memory_space<vmem>>, vector<1x16x32xbf16>
    %162 = vector.shape_cast %161 : vector<1x16x32xbf16> to vector<16x32xbf16>
    %163 = arith.truncf %160 : vector<32x512xf32> to vector<32x512xbf16>
    %cst_83 = arith.constant dense<0.000000e+00> : vector<16x512xf32>
    %164 = tpu.matmul %162, %163, %cst_83 {dimension_numbers = #tpu.dot_dimension_numbers<[1], [0], [0], [1], [0, 0, 1, 1], [], []>} : vector<16x32xbf16>, vector<32x512xbf16>, vector<16x512xf32> -> vector<16x512xf32>
    %165 = arith.addf %156, %164 : vector<16x512xf32>
    %c0_84 = arith.constant 0 : index
    %c0_85 = arith.constant 0 : index
    %166 = vector.load %arg8[%c0_84, %c0_85] : memref<16x1xf32, #tpu.memory_space<vmem>>, vector<16x1xf32>
    %167 = vector.broadcast %166 : vector<16x1xf32> to vector<16x512xf32>
    %168 = arith.addf %165, %167 : vector<16x512xf32>
    %cst_86 = arith.constant 0.000000e+00 : f32
    %169 = vector.broadcast %cst_86 : f32 to vector<16x512xf32>
    %170 = arith.maximumf %168, %169 : vector<16x512xf32>
    %171 = arith.truncf %170 : vector<16x512xf32> to vector<16x512xbf16>
    %c4_87 = arith.constant 4 : index
    %c0_88 = arith.constant 0 : index
    %c0_89 = arith.constant 0 : index
    %172 = vector.load %arg9[%c4_87, %c0_88, %c0_89] : memref<9x16x16xbf16, #tpu.memory_space<vmem>>, vector<1x16x16xbf16>
    %173 = vector.shape_cast %172 : vector<1x16x16xbf16> to vector<16x16xbf16>
    %cst_90 = arith.constant dense<0.000000e+00> : vector<16x512xf32>
    %174 = tpu.matmul %173, %171, %cst_90 {dimension_numbers = #tpu.dot_dimension_numbers<[1], [0], [0], [1], [0, 0, 1, 1], [], []>} : vector<16x16xbf16>, vector<16x512xbf16>, vector<16x512xf32> -> vector<16x512xf32>
    %c17_i32_91 = arith.constant 17 : i32
    %175 = tpu.dynamic_rotate %170 by %c17_i32_91 dim 1 : vector<16x512xf32>, i32 -> vector<16x512xf32>
    %176 = vector.extract_strided_slice %0 {offsets = [0, 0], sizes = [1, 512], strides = [1, 1]} : vector<8x512xf32> to vector<1x512xf32>
    %177 = vector.broadcast %176 : vector<1x512xf32> to vector<16x512xf32>
    %178 = arith.mulf %175, %177 : vector<16x512xf32>
    %c0_92 = arith.constant 0 : index
    %c0_93 = arith.constant 0 : index
    %c0_94 = arith.constant 0 : index
    %179 = vector.load %arg9[%c0_92, %c0_93, %c0_94] : memref<9x16x16xbf16, #tpu.memory_space<vmem>>, vector<1x16x16xbf16>
    %180 = vector.shape_cast %179 : vector<1x16x16xbf16> to vector<16x16xbf16>
    %181 = arith.truncf %178 : vector<16x512xf32> to vector<16x512xbf16>
    %cst_95 = arith.constant dense<0.000000e+00> : vector<16x512xf32>
    %182 = tpu.matmul %180, %181, %cst_95 {dimension_numbers = #tpu.dot_dimension_numbers<[1], [0], [0], [1], [0, 0, 1, 1], [], []>} : vector<16x16xbf16>, vector<16x512xbf16>, vector<16x512xf32> -> vector<16x512xf32>
    %183 = arith.addf %174, %182 : vector<16x512xf32>
    %c16_i32_96 = arith.constant 16 : i32
    %184 = tpu.dynamic_rotate %170 by %c16_i32_96 dim 1 : vector<16x512xf32>, i32 -> vector<16x512xf32>
    %185 = vector.extract_strided_slice %0 {offsets = [1, 0], sizes = [1, 512], strides = [1, 1]} : vector<8x512xf32> to vector<1x512xf32>
    %186 = vector.broadcast %185 : vector<1x512xf32> to vector<16x512xf32>
    %187 = arith.mulf %184, %186 : vector<16x512xf32>
    %c1_97 = arith.constant 1 : index
    %c0_98 = arith.constant 0 : index
    %c0_99 = arith.constant 0 : index
    %188 = vector.load %arg9[%c1_97, %c0_98, %c0_99] : memref<9x16x16xbf16, #tpu.memory_space<vmem>>, vector<1x16x16xbf16>
    %189 = vector.shape_cast %188 : vector<1x16x16xbf16> to vector<16x16xbf16>
    %190 = arith.truncf %187 : vector<16x512xf32> to vector<16x512xbf16>
    %cst_100 = arith.constant dense<0.000000e+00> : vector<16x512xf32>
    %191 = tpu.matmul %189, %190, %cst_100 {dimension_numbers = #tpu.dot_dimension_numbers<[1], [0], [0], [1], [0, 0, 1, 1], [], []>} : vector<16x16xbf16>, vector<16x512xbf16>, vector<16x512xf32> -> vector<16x512xf32>
    %192 = arith.addf %183, %191 : vector<16x512xf32>
    %c15_i32_101 = arith.constant 15 : i32
    %193 = tpu.dynamic_rotate %170 by %c15_i32_101 dim 1 : vector<16x512xf32>, i32 -> vector<16x512xf32>
    %194 = vector.extract_strided_slice %0 {offsets = [2, 0], sizes = [1, 512], strides = [1, 1]} : vector<8x512xf32> to vector<1x512xf32>
    %195 = vector.broadcast %194 : vector<1x512xf32> to vector<16x512xf32>
    %196 = arith.mulf %193, %195 : vector<16x512xf32>
    %c2_102 = arith.constant 2 : index
    %c0_103 = arith.constant 0 : index
    %c0_104 = arith.constant 0 : index
    %197 = vector.load %arg9[%c2_102, %c0_103, %c0_104] : memref<9x16x16xbf16, #tpu.memory_space<vmem>>, vector<1x16x16xbf16>
    %198 = vector.shape_cast %197 : vector<1x16x16xbf16> to vector<16x16xbf16>
    %199 = arith.truncf %196 : vector<16x512xf32> to vector<16x512xbf16>
    %cst_105 = arith.constant dense<0.000000e+00> : vector<16x512xf32>
    %200 = tpu.matmul %198, %199, %cst_105 {dimension_numbers = #tpu.dot_dimension_numbers<[1], [0], [0], [1], [0, 0, 1, 1], [], []>} : vector<16x16xbf16>, vector<16x512xbf16>, vector<16x512xf32> -> vector<16x512xf32>
    %201 = arith.addf %192, %200 : vector<16x512xf32>
    %c1_i32_106 = arith.constant 1 : i32
    %202 = tpu.dynamic_rotate %170 by %c1_i32_106 dim 1 : vector<16x512xf32>, i32 -> vector<16x512xf32>
    %203 = vector.extract_strided_slice %0 {offsets = [3, 0], sizes = [1, 512], strides = [1, 1]} : vector<8x512xf32> to vector<1x512xf32>
    %204 = vector.broadcast %203 : vector<1x512xf32> to vector<16x512xf32>
    %205 = arith.mulf %202, %204 : vector<16x512xf32>
    %c3_107 = arith.constant 3 : index
    %c0_108 = arith.constant 0 : index
    %c0_109 = arith.constant 0 : index
    %206 = vector.load %arg9[%c3_107, %c0_108, %c0_109] : memref<9x16x16xbf16, #tpu.memory_space<vmem>>, vector<1x16x16xbf16>
    %207 = vector.shape_cast %206 : vector<1x16x16xbf16> to vector<16x16xbf16>
    %208 = arith.truncf %205 : vector<16x512xf32> to vector<16x512xbf16>
    %cst_110 = arith.constant dense<0.000000e+00> : vector<16x512xf32>
    %209 = tpu.matmul %207, %208, %cst_110 {dimension_numbers = #tpu.dot_dimension_numbers<[1], [0], [0], [1], [0, 0, 1, 1], [], []>} : vector<16x16xbf16>, vector<16x512xbf16>, vector<16x512xf32> -> vector<16x512xf32>
    %210 = arith.addf %201, %209 : vector<16x512xf32>
    %c511_i32_111 = arith.constant 511 : i32
    %211 = tpu.dynamic_rotate %170 by %c511_i32_111 dim 1 : vector<16x512xf32>, i32 -> vector<16x512xf32>
    %212 = vector.extract_strided_slice %0 {offsets = [4, 0], sizes = [1, 512], strides = [1, 1]} : vector<8x512xf32> to vector<1x512xf32>
    %213 = vector.broadcast %212 : vector<1x512xf32> to vector<16x512xf32>
    %214 = arith.mulf %211, %213 : vector<16x512xf32>
    %c5_112 = arith.constant 5 : index
    %c0_113 = arith.constant 0 : index
    %c0_114 = arith.constant 0 : index
    %215 = vector.load %arg9[%c5_112, %c0_113, %c0_114] : memref<9x16x16xbf16, #tpu.memory_space<vmem>>, vector<1x16x16xbf16>
    %216 = vector.shape_cast %215 : vector<1x16x16xbf16> to vector<16x16xbf16>
    %217 = arith.truncf %214 : vector<16x512xf32> to vector<16x512xbf16>
    %cst_115 = arith.constant dense<0.000000e+00> : vector<16x512xf32>
    %218 = tpu.matmul %216, %217, %cst_115 {dimension_numbers = #tpu.dot_dimension_numbers<[1], [0], [0], [1], [0, 0, 1, 1], [], []>} : vector<16x16xbf16>, vector<16x512xbf16>, vector<16x512xf32> -> vector<16x512xf32>
    %219 = arith.addf %210, %218 : vector<16x512xf32>
    %c497_i32_116 = arith.constant 497 : i32
    %220 = tpu.dynamic_rotate %170 by %c497_i32_116 dim 1 : vector<16x512xf32>, i32 -> vector<16x512xf32>
    %221 = vector.extract_strided_slice %0 {offsets = [5, 0], sizes = [1, 512], strides = [1, 1]} : vector<8x512xf32> to vector<1x512xf32>
    %222 = vector.broadcast %221 : vector<1x512xf32> to vector<16x512xf32>
    %223 = arith.mulf %220, %222 : vector<16x512xf32>
    %c6_117 = arith.constant 6 : index
    %c0_118 = arith.constant 0 : index
    %c0_119 = arith.constant 0 : index
    %224 = vector.load %arg9[%c6_117, %c0_118, %c0_119] : memref<9x16x16xbf16, #tpu.memory_space<vmem>>, vector<1x16x16xbf16>
    %225 = vector.shape_cast %224 : vector<1x16x16xbf16> to vector<16x16xbf16>
    %226 = arith.truncf %223 : vector<16x512xf32> to vector<16x512xbf16>
    %cst_120 = arith.constant dense<0.000000e+00> : vector<16x512xf32>
    %227 = tpu.matmul %225, %226, %cst_120 {dimension_numbers = #tpu.dot_dimension_numbers<[1], [0], [0], [1], [0, 0, 1, 1], [], []>} : vector<16x16xbf16>, vector<16x512xbf16>, vector<16x512xf32> -> vector<16x512xf32>
    %228 = arith.addf %219, %227 : vector<16x512xf32>
    %c496_i32_121 = arith.constant 496 : i32
    %229 = tpu.dynamic_rotate %170 by %c496_i32_121 dim 1 : vector<16x512xf32>, i32 -> vector<16x512xf32>
    %230 = vector.extract_strided_slice %0 {offsets = [6, 0], sizes = [1, 512], strides = [1, 1]} : vector<8x512xf32> to vector<1x512xf32>
    %231 = vector.broadcast %230 : vector<1x512xf32> to vector<16x512xf32>
    %232 = arith.mulf %229, %231 : vector<16x512xf32>
    %c7_122 = arith.constant 7 : index
    %c0_123 = arith.constant 0 : index
    %c0_124 = arith.constant 0 : index
    %233 = vector.load %arg9[%c7_122, %c0_123, %c0_124] : memref<9x16x16xbf16, #tpu.memory_space<vmem>>, vector<1x16x16xbf16>
    %234 = vector.shape_cast %233 : vector<1x16x16xbf16> to vector<16x16xbf16>
    %235 = arith.truncf %232 : vector<16x512xf32> to vector<16x512xbf16>
    %cst_125 = arith.constant dense<0.000000e+00> : vector<16x512xf32>
    %236 = tpu.matmul %234, %235, %cst_125 {dimension_numbers = #tpu.dot_dimension_numbers<[1], [0], [0], [1], [0, 0, 1, 1], [], []>} : vector<16x16xbf16>, vector<16x512xbf16>, vector<16x512xf32> -> vector<16x512xf32>
    %237 = arith.addf %228, %236 : vector<16x512xf32>
    %c495_i32_126 = arith.constant 495 : i32
    %238 = tpu.dynamic_rotate %170 by %c495_i32_126 dim 1 : vector<16x512xf32>, i32 -> vector<16x512xf32>
    %239 = vector.extract_strided_slice %0 {offsets = [7, 0], sizes = [1, 512], strides = [1, 1]} : vector<8x512xf32> to vector<1x512xf32>
    %240 = vector.broadcast %239 : vector<1x512xf32> to vector<16x512xf32>
    %241 = arith.mulf %238, %240 : vector<16x512xf32>
    %c8_127 = arith.constant 8 : index
    %c0_128 = arith.constant 0 : index
    %c0_129 = arith.constant 0 : index
    %242 = vector.load %arg9[%c8_127, %c0_128, %c0_129] : memref<9x16x16xbf16, #tpu.memory_space<vmem>>, vector<1x16x16xbf16>
    %243 = vector.shape_cast %242 : vector<1x16x16xbf16> to vector<16x16xbf16>
    %244 = arith.truncf %241 : vector<16x512xf32> to vector<16x512xbf16>
    %cst_130 = arith.constant dense<0.000000e+00> : vector<16x512xf32>
    %245 = tpu.matmul %243, %244, %cst_130 {dimension_numbers = #tpu.dot_dimension_numbers<[1], [0], [0], [1], [0, 0, 1, 1], [], []>} : vector<16x16xbf16>, vector<16x512xbf16>, vector<16x512xf32> -> vector<16x512xf32>
    %246 = arith.addf %237, %245 : vector<16x512xf32>
    %c0_131 = arith.constant 0 : index
    %c0_132 = arith.constant 0 : index
    %247 = vector.load %arg10[%c0_131, %c0_132] : memref<16x1xf32, #tpu.memory_space<vmem>>, vector<16x1xf32>
    %248 = vector.broadcast %247 : vector<16x1xf32> to vector<16x512xf32>
    %249 = arith.addf %246, %248 : vector<16x512xf32>
    %cst_133 = arith.constant 0.000000e+00 : f32
    %250 = vector.broadcast %cst_133 : f32 to vector<16x512xf32>
    %251 = arith.maximumf %249, %250 : vector<16x512xf32>
    %252 = arith.truncf %251 : vector<16x512xf32> to vector<16x512xbf16>
    %c4_134 = arith.constant 4 : index
    %c0_135 = arith.constant 0 : index
    %c0_136 = arith.constant 0 : index
    %253 = vector.load %arg11[%c4_134, %c0_135, %c0_136] : memref<9x1x16xbf16, #tpu.memory_space<vmem>>, vector<1x1x16xbf16>
    %254 = vector.shape_cast %253 : vector<1x1x16xbf16> to vector<1x16xbf16>
    %cst_137 = arith.constant dense<0.000000e+00> : vector<1x512xf32>
    %255 = tpu.matmul %254, %252, %cst_137 {dimension_numbers = #tpu.dot_dimension_numbers<[1], [0], [0], [1], [0, 0, 1, 1], [], []>} : vector<1x16xbf16>, vector<16x512xbf16>, vector<1x512xf32> -> vector<1x512xf32>
    %c17_i32_138 = arith.constant 17 : i32
    %256 = tpu.dynamic_rotate %251 by %c17_i32_138 dim 1 : vector<16x512xf32>, i32 -> vector<16x512xf32>
    %257 = vector.extract_strided_slice %0 {offsets = [0, 0], sizes = [1, 512], strides = [1, 1]} : vector<8x512xf32> to vector<1x512xf32>
    %258 = vector.broadcast %257 : vector<1x512xf32> to vector<16x512xf32>
    %259 = arith.mulf %256, %258 : vector<16x512xf32>
    %c0_139 = arith.constant 0 : index
    %c0_140 = arith.constant 0 : index
    %c0_141 = arith.constant 0 : index
    %260 = vector.load %arg11[%c0_139, %c0_140, %c0_141] : memref<9x1x16xbf16, #tpu.memory_space<vmem>>, vector<1x1x16xbf16>
    %261 = vector.shape_cast %260 : vector<1x1x16xbf16> to vector<1x16xbf16>
    %262 = arith.truncf %259 : vector<16x512xf32> to vector<16x512xbf16>
    %cst_142 = arith.constant dense<0.000000e+00> : vector<1x512xf32>
    %263 = tpu.matmul %261, %262, %cst_142 {dimension_numbers = #tpu.dot_dimension_numbers<[1], [0], [0], [1], [0, 0, 1, 1], [], []>} : vector<1x16xbf16>, vector<16x512xbf16>, vector<1x512xf32> -> vector<1x512xf32>
    %264 = arith.addf %255, %263 : vector<1x512xf32>
    %c16_i32_143 = arith.constant 16 : i32
    %265 = tpu.dynamic_rotate %251 by %c16_i32_143 dim 1 : vector<16x512xf32>, i32 -> vector<16x512xf32>
    %266 = vector.extract_strided_slice %0 {offsets = [1, 0], sizes = [1, 512], strides = [1, 1]} : vector<8x512xf32> to vector<1x512xf32>
    %267 = vector.broadcast %266 : vector<1x512xf32> to vector<16x512xf32>
    %268 = arith.mulf %265, %267 : vector<16x512xf32>
    %c1_144 = arith.constant 1 : index
    %c0_145 = arith.constant 0 : index
    %c0_146 = arith.constant 0 : index
    %269 = vector.load %arg11[%c1_144, %c0_145, %c0_146] : memref<9x1x16xbf16, #tpu.memory_space<vmem>>, vector<1x1x16xbf16>
    %270 = vector.shape_cast %269 : vector<1x1x16xbf16> to vector<1x16xbf16>
    %271 = arith.truncf %268 : vector<16x512xf32> to vector<16x512xbf16>
    %cst_147 = arith.constant dense<0.000000e+00> : vector<1x512xf32>
    %272 = tpu.matmul %270, %271, %cst_147 {dimension_numbers = #tpu.dot_dimension_numbers<[1], [0], [0], [1], [0, 0, 1, 1], [], []>} : vector<1x16xbf16>, vector<16x512xbf16>, vector<1x512xf32> -> vector<1x512xf32>
    %273 = arith.addf %264, %272 : vector<1x512xf32>
    %c15_i32_148 = arith.constant 15 : i32
    %274 = tpu.dynamic_rotate %251 by %c15_i32_148 dim 1 : vector<16x512xf32>, i32 -> vector<16x512xf32>
    %275 = vector.extract_strided_slice %0 {offsets = [2, 0], sizes = [1, 512], strides = [1, 1]} : vector<8x512xf32> to vector<1x512xf32>
    %276 = vector.broadcast %275 : vector<1x512xf32> to vector<16x512xf32>
    %277 = arith.mulf %274, %276 : vector<16x512xf32>
    %c2_149 = arith.constant 2 : index
    %c0_150 = arith.constant 0 : index
    %c0_151 = arith.constant 0 : index
    %278 = vector.load %arg11[%c2_149, %c0_150, %c0_151] : memref<9x1x16xbf16, #tpu.memory_space<vmem>>, vector<1x1x16xbf16>
    %279 = vector.shape_cast %278 : vector<1x1x16xbf16> to vector<1x16xbf16>
    %280 = arith.truncf %277 : vector<16x512xf32> to vector<16x512xbf16>
    %cst_152 = arith.constant dense<0.000000e+00> : vector<1x512xf32>
    %281 = tpu.matmul %279, %280, %cst_152 {dimension_numbers = #tpu.dot_dimension_numbers<[1], [0], [0], [1], [0, 0, 1, 1], [], []>} : vector<1x16xbf16>, vector<16x512xbf16>, vector<1x512xf32> -> vector<1x512xf32>
    %282 = arith.addf %273, %281 : vector<1x512xf32>
    %c1_i32_153 = arith.constant 1 : i32
    %283 = tpu.dynamic_rotate %251 by %c1_i32_153 dim 1 : vector<16x512xf32>, i32 -> vector<16x512xf32>
    %284 = vector.extract_strided_slice %0 {offsets = [3, 0], sizes = [1, 512], strides = [1, 1]} : vector<8x512xf32> to vector<1x512xf32>
    %285 = vector.broadcast %284 : vector<1x512xf32> to vector<16x512xf32>
    %286 = arith.mulf %283, %285 : vector<16x512xf32>
    %c3_154 = arith.constant 3 : index
    %c0_155 = arith.constant 0 : index
    %c0_156 = arith.constant 0 : index
    %287 = vector.load %arg11[%c3_154, %c0_155, %c0_156] : memref<9x1x16xbf16, #tpu.memory_space<vmem>>, vector<1x1x16xbf16>
    %288 = vector.shape_cast %287 : vector<1x1x16xbf16> to vector<1x16xbf16>
    %289 = arith.truncf %286 : vector<16x512xf32> to vector<16x512xbf16>
    %cst_157 = arith.constant dense<0.000000e+00> : vector<1x512xf32>
    %290 = tpu.matmul %288, %289, %cst_157 {dimension_numbers = #tpu.dot_dimension_numbers<[1], [0], [0], [1], [0, 0, 1, 1], [], []>} : vector<1x16xbf16>, vector<16x512xbf16>, vector<1x512xf32> -> vector<1x512xf32>
    %291 = arith.addf %282, %290 : vector<1x512xf32>
    %c511_i32_158 = arith.constant 511 : i32
    %292 = tpu.dynamic_rotate %251 by %c511_i32_158 dim 1 : vector<16x512xf32>, i32 -> vector<16x512xf32>
    %293 = vector.extract_strided_slice %0 {offsets = [4, 0], sizes = [1, 512], strides = [1, 1]} : vector<8x512xf32> to vector<1x512xf32>
    %294 = vector.broadcast %293 : vector<1x512xf32> to vector<16x512xf32>
    %295 = arith.mulf %292, %294 : vector<16x512xf32>
    %c5_159 = arith.constant 5 : index
    %c0_160 = arith.constant 0 : index
    %c0_161 = arith.constant 0 : index
    %296 = vector.load %arg11[%c5_159, %c0_160, %c0_161] : memref<9x1x16xbf16, #tpu.memory_space<vmem>>, vector<1x1x16xbf16>
    %297 = vector.shape_cast %296 : vector<1x1x16xbf16> to vector<1x16xbf16>
    %298 = arith.truncf %295 : vector<16x512xf32> to vector<16x512xbf16>
    %cst_162 = arith.constant dense<0.000000e+00> : vector<1x512xf32>
    %299 = tpu.matmul %297, %298, %cst_162 {dimension_numbers = #tpu.dot_dimension_numbers<[1], [0], [0], [1], [0, 0, 1, 1], [], []>} : vector<1x16xbf16>, vector<16x512xbf16>, vector<1x512xf32> -> vector<1x512xf32>
    %300 = arith.addf %291, %299 : vector<1x512xf32>
    %c497_i32_163 = arith.constant 497 : i32
    %301 = tpu.dynamic_rotate %251 by %c497_i32_163 dim 1 : vector<16x512xf32>, i32 -> vector<16x512xf32>
    %302 = vector.extract_strided_slice %0 {offsets = [5, 0], sizes = [1, 512], strides = [1, 1]} : vector<8x512xf32> to vector<1x512xf32>
    %303 = vector.broadcast %302 : vector<1x512xf32> to vector<16x512xf32>
    %304 = arith.mulf %301, %303 : vector<16x512xf32>
    %c6_164 = arith.constant 6 : index
    %c0_165 = arith.constant 0 : index
    %c0_166 = arith.constant 0 : index
    %305 = vector.load %arg11[%c6_164, %c0_165, %c0_166] : memref<9x1x16xbf16, #tpu.memory_space<vmem>>, vector<1x1x16xbf16>
    %306 = vector.shape_cast %305 : vector<1x1x16xbf16> to vector<1x16xbf16>
    %307 = arith.truncf %304 : vector<16x512xf32> to vector<16x512xbf16>
    %cst_167 = arith.constant dense<0.000000e+00> : vector<1x512xf32>
    %308 = tpu.matmul %306, %307, %cst_167 {dimension_numbers = #tpu.dot_dimension_numbers<[1], [0], [0], [1], [0, 0, 1, 1], [], []>} : vector<1x16xbf16>, vector<16x512xbf16>, vector<1x512xf32> -> vector<1x512xf32>
    %309 = arith.addf %300, %308 : vector<1x512xf32>
    %c496_i32_168 = arith.constant 496 : i32
    %310 = tpu.dynamic_rotate %251 by %c496_i32_168 dim 1 : vector<16x512xf32>, i32 -> vector<16x512xf32>
    %311 = vector.extract_strided_slice %0 {offsets = [6, 0], sizes = [1, 512], strides = [1, 1]} : vector<8x512xf32> to vector<1x512xf32>
    %312 = vector.broadcast %311 : vector<1x512xf32> to vector<16x512xf32>
    %313 = arith.mulf %310, %312 : vector<16x512xf32>
    %c7_169 = arith.constant 7 : index
    %c0_170 = arith.constant 0 : index
    %c0_171 = arith.constant 0 : index
    %314 = vector.load %arg11[%c7_169, %c0_170, %c0_171] : memref<9x1x16xbf16, #tpu.memory_space<vmem>>, vector<1x1x16xbf16>
    %315 = vector.shape_cast %314 : vector<1x1x16xbf16> to vector<1x16xbf16>
    %316 = arith.truncf %313 : vector<16x512xf32> to vector<16x512xbf16>
    %cst_172 = arith.constant dense<0.000000e+00> : vector<1x512xf32>
    %317 = tpu.matmul %315, %316, %cst_172 {dimension_numbers = #tpu.dot_dimension_numbers<[1], [0], [0], [1], [0, 0, 1, 1], [], []>} : vector<1x16xbf16>, vector<16x512xbf16>, vector<1x512xf32> -> vector<1x512xf32>
    %318 = arith.addf %309, %317 : vector<1x512xf32>
    %c495_i32_173 = arith.constant 495 : i32
    %319 = tpu.dynamic_rotate %251 by %c495_i32_173 dim 1 : vector<16x512xf32>, i32 -> vector<16x512xf32>
    %320 = vector.extract_strided_slice %0 {offsets = [7, 0], sizes = [1, 512], strides = [1, 1]} : vector<8x512xf32> to vector<1x512xf32>
    %321 = vector.broadcast %320 : vector<1x512xf32> to vector<16x512xf32>
    %322 = arith.mulf %319, %321 : vector<16x512xf32>
    %c8_174 = arith.constant 8 : index
    %c0_175 = arith.constant 0 : index
    %c0_176 = arith.constant 0 : index
    %323 = vector.load %arg11[%c8_174, %c0_175, %c0_176] : memref<9x1x16xbf16, #tpu.memory_space<vmem>>, vector<1x1x16xbf16>
    %324 = vector.shape_cast %323 : vector<1x1x16xbf16> to vector<1x16xbf16>
    %325 = arith.truncf %322 : vector<16x512xf32> to vector<16x512xbf16>
    %cst_177 = arith.constant dense<0.000000e+00> : vector<1x512xf32>
    %326 = tpu.matmul %324, %325, %cst_177 {dimension_numbers = #tpu.dot_dimension_numbers<[1], [0], [0], [1], [0, 0, 1, 1], [], []>} : vector<1x16xbf16>, vector<16x512xbf16>, vector<1x512xf32> -> vector<1x512xf32>
    %327 = arith.addf %318, %326 : vector<1x512xf32>
    %c0_178 = arith.constant 0 : index
    %c0_179 = arith.constant 0 : index
    %328 = vector.load %arg12[%c0_178, %c0_179] : memref<1x1xf32, #tpu.memory_space<vmem>>, vector<1x1xf32>
    %329 = vector.broadcast %328 : vector<1x1xf32> to vector<1x512xf32>
    %330 = arith.addf %327, %329 : vector<1x512xf32>
    %c0_180 = arith.constant 0 : index
    %c0_181 = arith.constant 0 : index
    %c0_182 = arith.constant 0 : index
    %331 = vector.load %arg13[%c0_180, %c0_181, %c0_182] : memref<1x1x512xf32, #tpu.memory_space<vmem>>, vector<1x1x512xf32>
    %332 = vector.shape_cast %331 : vector<1x1x512xf32> to vector<1x512xf32>
    %333 = vector.shape_cast %330 : vector<1x512xf32> to vector<1x1x512xf32>
    tpu.vector_store %arg13[%c0_180, %c0_181, %c0_182], %333 {strides = array<i32>} : memref<1x1x512xf32, #tpu.memory_space<vmem>>, vector<1x1x512xf32>,
    return
  }
  func.func @transform_0(%arg0: i32) -> (i32, i32, i32) {
    %c0_i32 = arith.constant 0 : i32
    %c0_i32_0 = arith.constant 0 : i32
    %c0_i32_1 = arith.constant 0 : i32
    return %arg0, %c0_i32, %c0_i32_0 : i32, i32, i32
  }
  func.func @transform_1(%arg0: i32) -> (i32, i32, i32) {
    %c0_i32 = arith.constant 0 : i32
    %c0_i32_0 = arith.constant 0 : i32
    %c0_i32_1 = arith.constant 0 : i32
    return %arg0, %c0_i32, %c0_i32_0 : i32, i32, i32
  }
  func.func @transform_2(%arg0: i32) -> (i32, i32) {
    %c0_i32 = arith.constant 0 : i32
    %c0_i32_0 = arith.constant 0 : i32
    %c0_i32_1 = arith.constant 0 : i32
    return %c0_i32, %c0_i32_0 : i32, i32
  }
  func.func @transform_3(%arg0: i32) -> (i32, i32) {
    %c0_i32 = arith.constant 0 : i32
    %c0_i32_0 = arith.constant 0 : i32
    %c0_i32_1 = arith.constant 0 : i32
    return %c0_i32, %c0_i32_0 : i32, i32
  }
  func.func @transform_4(%arg0: i32) -> (i32, i32, i32) {
    %c0_i32 = arith.constant 0 : i32
    %c0_i32_0 = arith.constant 0 : i32
    %c0_i32_1 = arith.constant 0 : i32
    %c0_i32_2 = arith.constant 0 : i32
    return %c0_i32, %c0_i32_0, %c0_i32_1 : i32, i32, i32
  }
  func.func @transform_5(%arg0: i32) -> (i32, i32) {
    %c0_i32 = arith.constant 0 : i32
    %c0_i32_0 = arith.constant 0 : i32
    %c0_i32_1 = arith.constant 0 : i32
    return %c0_i32, %c0_i32_0 : i32, i32
  }
  func.func @transform_6(%arg0: i32) -> (i32, i32, i32) {
    %c0_i32 = arith.constant 0 : i32
    %c0_i32_0 = arith.constant 0 : i32
    %c0_i32_1 = arith.constant 0 : i32
    %c0_i32_2 = arith.constant 0 : i32
    return %c0_i32, %c0_i32_0, %c0_i32_1 : i32, i32, i32
  }
  func.func @transform_7(%arg0: i32) -> (i32, i32) {
    %c0_i32 = arith.constant 0 : i32
    %c0_i32_0 = arith.constant 0 : i32
    %c0_i32_1 = arith.constant 0 : i32
    return %c0_i32, %c0_i32_0 : i32, i32
  }
  func.func @transform_8(%arg0: i32) -> (i32, i32, i32) {
    %c0_i32 = arith.constant 0 : i32
    %c0_i32_0 = arith.constant 0 : i32
    %c0_i32_1 = arith.constant 0 : i32
    %c0_i32_2 = arith.constant 0 : i32
    return %c0_i32, %c0_i32_0, %c0_i32_1 : i32, i32, i32
  }
  func.func @transform_9(%arg0: i32) -> (i32, i32) {
    %c0_i32 = arith.constant 0 : i32
    %c0_i32_0 = arith.constant 0 : i32
    %c0_i32_1 = arith.constant 0 : i32
    return %c0_i32, %c0_i32_0 : i32, i32
  }
  func.func @transform_10(%arg0: i32) -> (i32, i32, i32) {
    %c0_i32 = arith.constant 0 : i32
    %c0_i32_0 = arith.constant 0 : i32
    %c0_i32_1 = arith.constant 0 : i32
    %c0_i32_2 = arith.constant 0 : i32
    return %c0_i32, %c0_i32_0, %c0_i32_1 : i32, i32, i32
  }
  func.func @transform_11(%arg0: i32) -> (i32, i32) {
    %c0_i32 = arith.constant 0 : i32
    %c0_i32_0 = arith.constant 0 : i32
    %c0_i32_1 = arith.constant 0 : i32
    return %c0_i32, %c0_i32_0 : i32, i32
  }
  func.func @transform_12(%arg0: i32) -> (i32, i32, i32) {
    %c0_i32 = arith.constant 0 : i32
    %c0_i32_0 = arith.constant 0 : i32
    %c0_i32_1 = arith.constant 0 : i32
    return %arg0, %c0_i32, %c0_i32_0 : i32, i32, i32
  }
}

</mosaic_0001>

<bundles_post_ra>
// kernel: nano_decoder_forward.1
= control target key start
LH: loop header
LB: loop body
LE: loop exit
PB: predicated region body
PF: predicated region fallthrough
CT: control target
= control target key end

     0   :  { %v10298_v1 = vmov 0   ;;  %s6460_s20 = smov 17   ;;  %s6462_s21 = smov 15   ;;  %vm461_vm2 = vcmask 261120   ;;  %vm3629_vm9 = vcmask 130048   ;;  %s10284_s2 = inlined_call_operand.vmem [shape: bf16[128,512], index: 2, kind: input, shape index: {}]   ;;  %s10285_s0 = inlined_call_operand.vmem [shape: f32[1,32,128], index: 0, kind: input, shape index: {}]   ;;  %s10286_s4 = inlined_call_operand.vmem [shape: bf16[9,16,32], index: 4, kind: input, shape index: {}]   ;;  %s10287_s3 = inlined_call_operand.vmem [shape: f32[8,512], index: 3, kind: input, shape index: {}]   ;;  %s10288_s5 = inlined_call_operand.vmem [shape: f32[16,1], index: 5, kind: input, shape index: {}]   ;;  %s10289_s1 = inlined_call_operand.vmem [shape: f32[1,16,512], index: 1, kind: input, shape index: {}]   ;;  %s10290_s6 = inlined_call_operand.vmem [shape: bf16[9,16,32], index: 6, kind: input, shape index: {}]   ;;  %s10291_s7 = inlined_call_operand.vmem [shape: f32[16,1], index: 7, kind: input, shape index: {}]   ;;  %s10292_s8 = inlined_call_operand.vmem [shape: bf16[9,16,16], index: 8, kind: input, shape index: {}]   ;;  %s10293_s9 = inlined_call_operand.vmem [shape: f32[16,1], index: 9, kind: input, shape index: {}]   ;;  %s10294_s11 = inlined_call_operand.<no memory space> [shape: f32[1,1], index: 11, kind: input, shape index: {}]   ;;  %s10295_s10 = inlined_call_operand.vmem [shape: bf16[9,1,16], index: 10, kind: input, shape index: {}]   ;;  %s10296_s12 = inlined_call_operand.vmem [shape: f32[1,1,512], index: 12, kind: output, shape index: {}]  }
   0x1   :  { %v6373_v0 = vld [vmem:[%s10284_s2 + $0x4] ss:$16 sps:$4 sm:$0xff]   ;;  %278 = vmatprep.mubr.bf16.mxu0 %v10298_v1  ;;  %331 = vmatprep.mubr.bf16.mxu1 %v10298_v1  ;;  %v6375_v2 = vld [vmem:[%s10284_s2 + $0xc] ss:$16 sps:$4 sm:$0xff]   ;;  %v6377_v3 = vld [vmem:[%s10284_s2] ss:$16 sps:$4 sm:$0xff]  }
   0x2   :  { %6371 = vset.pattern.permute.xlu0 %v10298_v1  ;;  %6372 = vset.pattern.permute.xlu1 %v10298_v1  ;;  %v6378_v4 = vld [vmem:[%s10284_s2 + $0x8] ss:$16 sps:$4 sm:$0xff]   ;;  %v6379_v5 = vld [vmem:[%s10284_s2 + $0x24] ss:$16 sps:$4 sm:$0xff]   ;;  %v6381_v6 = vld [vmem:[%s10284_s2 + $0x2c] ss:$16 sps:$4 sm:$0xff]  }
   0x3   :  { %246 = vmatprep.subr.bf16.mxu0 %v6373_v0  ;;  %299 = vmatprep.subr.bf16.mxu1 %v6375_v2  ;;  %v6383_v7 = vld [vmem:[%s10284_s2 + $0x20] ss:$16 sps:$4 sm:$0xff]   ;;  %v6384_v8 = vld [vmem:[%s10284_s2 + $0x28] ss:$16 sps:$4 sm:$0xff]   ;;  %v6385_v9 = vld [vmem:[%s10284_s2 + $0x44] ss:$16 sps:$4 sm:$0xff]  }
   0x4   :  { %247 = vmatpush1.bf16.msra.mxu0 %v6377_v3  ;;  %300 = vmatpush1.bf16.msra.mxu1 %v6378_v4  ;;  %v6387_v10 = vld [vmem:[%s10284_s2 + $0x4c] ss:$16 sps:$4 sm:$0xff]   ;;  %v6389_v11 = vld [vmem:[%s10284_s2 + $0x40] ss:$16 sps:$4 sm:$0xff]   ;;  %v6390_v12 = vld [vmem:[%s10284_s2 + $0x48] ss:$16 sps:$4 sm:$0xff]  }
   0x5   :  { %248 = vmatprep.subr.bf16.mxu0 %v6379_v5  ;;  %301 = vmatprep.subr.bf16.mxu1 %v6381_v6  ;;  %v6391_v13 = vld [vmem:[%s10284_s2 + $0x64] ss:$16 sps:$4 sm:$0xff]   ;;  %v6393_v14 = vld [vmem:[%s10284_s2 + $0x6c] ss:$16 sps:$4 sm:$0xff]   ;;  %v6395_v15 = vld [vmem:[%s10284_s2 + $0x60] ss:$16 sps:$4 sm:$0xff]  }
   0x6   :  { %v6396_v16 = vld [vmem:[%s10284_s2 + $0x68] ss:$16 sps:$4 sm:$0xff]   ;;  %v6397_v17 = vld [vmem:[%s10284_s2 + $0x84] ss:$16 sps:$4 sm:$0xff]   ;;  %v6399_v18 = vld [vmem:[%s10284_s2 + $0x8c] ss:$16 sps:$4 sm:$0xff]  }
   0x7   :  { %v6401_v19 = vld [vmem:[%s10284_s2 + $0x80] ss:$16 sps:$4 sm:$0xff]   ;;  %v6402_v20 = vld [vmem:[%s10284_s2 + $0x88] ss:$16 sps:$4 sm:$0xff]   ;;  %v6403_v21 = vld [vmem:[%s10284_s2 + $0xa4] ss:$16 sps:$4 sm:$0xff]  }
   0x8   :  { %249 = vmatpush1.bf16.msra.mxu0 %v6383_v7  ;;  %302 = vmatpush1.bf16.msra.mxu1 %v6384_v8  ;;  %v6405_v22 = vld [vmem:[%s10284_s2 + $0xac] ss:$16 sps:$4 sm:$0xff]   ;;  %v6407_v23 = vld [vmem:[%s10284_s2 + $0xa0] ss:$16 sps:$4 sm:$0xff]   ;;  %v6408_v24 = vld [vmem:[%s10284_s2 + $0xa8] ss:$16 sps:$4 sm:$0xff]  }
   0x9   :  { %250 = vmatprep.subr.bf16.mxu0 %v6385_v9  ;;  %303 = vmatprep.subr.bf16.mxu1 %v6387_v10  ;;  %v6409_v25 = vld [vmem:[%s10284_s2 + $0xc4] ss:$16 sps:$4 sm:$0xff]   ;;  %v6411_v26 = vld [vmem:[%s10284_s2 + $0xcc] ss:$16 sps:$4 sm:$0xff]   ;;  %v6413_v27 = vld [vmem:[%s10284_s2 + $0xc0] ss:$16 sps:$4 sm:$0xff]  }
   0xa   :  { %v6414_v28 = vld [vmem:[%s10284_s2 + $0xc8] ss:$16 sps:$4 sm:$0xff]   ;;  %v6415_v29 = vld [vmem:[%s10284_s2 + $0xe4] ss:$16 sps:$4 sm:$0xff]   ;;  %v6417_v30 = vld [vmem:[%s10284_s2 + $0xec] ss:$16 sps:$4 sm:$0xff]  }
   0xb   :  { %v6419_v31 = vld [vmem:[%s10284_s2 + $0xe0] ss:$16 sps:$4 sm:$0xff]   ;;  %v6420_v32 = vld [vmem:[%s10284_s2 + $0xe8] ss:$16 sps:$4 sm:$0xff]   ;;  %s6463_s22 = smov 1   ;;  %s6464_s23 = smov 127  }
   0xc   :  { %251 = vmatpush1.bf16.msra.mxu0 %v6389_v11  ;;  %304 = vmatpush1.bf16.msra.mxu1 %v6390_v12  ;;  %v48_v33 = vld [vmem:[%s10285_s0] sm:$0xff]  ;;  %v49_v34 = vld [vmem:[%s10285_s0 + $0x8] sm:$0xff]  ;;  %v50_v36 = vld [vmem:[%s10285_s0 + $0x10] sm:$0xff]  ;;  %s6465_s24 = smov 113   ;;  %s6466_s25 = smov 112  }
   0xd   :  { %252 = vmatprep.subr.bf16.mxu0 %v6391_v13  ;;  %305 = vmatprep.subr.bf16.mxu1 %v6393_v14  ;;  %v52_v35 = vpack.c.bf16 %v49_v34, %v48_v33  ;;  %v51_v37 = vld [vmem:[%s10285_s0 + $0x18] sm:$0xff]  ;;  %s6461_s0 = smov 16   ;;  %s6467_s30 = smov 111  }
   0xe   :  { %v53_v38 = vpack.c.bf16 %v51_v37, %v50_v36 }
  0x10   :  { %253 = vmatpush1.bf16.msra.mxu0 %v6395_v15  ;;  %306 = vmatpush1.bf16.msra.mxu1 %v6396_v16 }
  0x11   :  { %254 = vmatprep.subr.bf16.mxu0 %v6397_v17  ;;  %307 = vmatprep.subr.bf16.mxu1 %v6399_v18 }
  0x14   :  { %255 = vmatpush1.bf16.msra.mxu0 %v6401_v19  ;;  %308 = vmatpush1.bf16.msra.mxu1 %v6402_v20 }
  0x15   :  { %256 = vmatprep.subr.bf16.mxu0 %v6403_v21  ;;  %309 = vmatprep.subr.bf16.mxu1 %v6405_v22 }
  0x18   :  { %257 = vmatpush1.bf16.msra.mxu0 %v6407_v23  ;;  %310 = vmatpush1.bf16.msra.mxu1 %v6408_v24  ;;  %v10297_v23 = vlaneseq }
  0x19   :  { %258 = vmatprep.subr.bf16.mxu0 %v6409_v25  ;;  %311 = vmatprep.subr.bf16.mxu1 %v6411_v26 }
  0x1a   :  { %v6913_v26 = vshrl.u32 %v10297_v23, 7 }
  0x1c   :  { %259 = vmatpush1.bf16.msra.mxu0 %v6413_v27  ;;  %312 = vmatpush1.bf16.msra.mxu1 %v6414_v28  ;;  %10507 = vst [vmem:[#allocation17_spill] sm:$0xff] %v6913_v26  ;;  %v6918_v28 = vand.u32 127, %v10297_v23 }
  0x1d   :  { %260 = vmatprep.subr.bf16.mxu0 %v6415_v29  ;;  %313 = vmatprep.subr.bf16.mxu1 %v6417_v30  ;;  %v6927_v29 = vld [vmem:[%s10287_s3 + $0x18] sm:$0xff] }
  0x1e   :  { %vm397_vm0 = vcmp.lt.s32.totalorder %v6918_v28, 17  ;;  %vm677_vm1 = vcmp.lt.s32.totalorder %v6918_v28, 16  ;;  %vm871_vm3 = vcmp.lt.s32.totalorder %v6918_v28, 15  ;;  %vm1065_vm4 = vcmp.lt.s32.totalorder %v6918_v28, 1 }
  0x1f   :  { %vm1259_vm5 = vcmp.lt.s32.totalorder %v6918_v28, 127  ;;  %vm1453_vm6 = vcmp.lt.s32.totalorder %v6918_v28, 113  ;;  %vm1647_vm7 = vcmp.lt.s32.totalorder %v6918_v28, 112  ;;  %vm1841_vm8 = vcmp.lt.s32.totalorder %v6918_v28, 111  ;;  %v6166_v28 = vld [vmem:[%s10295_s10 + $0x8] sm:$0x1] }
  0x20   :  { %261 = vmatpush1.bf16.msra.mxu0 %v6419_v31  ;;  %314 = vmatpush1.bf16.msra.mxu1 %v6420_v32  ;;  %v6932_v31 = vsub.s32 0, %v6913_v26  ;;  %v6937_v32 = vld [vmem:[%s10287_s3 + $0x10] sm:$0xff] }
  0x22   :  { %10509 = vst [vmem:[#allocation19_spill] sm:$0xff] %v6932_v31  ;;  %v6946_v34 = vrot.slane %v6927_v29, %v6932_v31  ;;  %v6956_v36 = vrot.slane %v6937_v32, %v6932_v31 }
  0x23   :  { %279 = vmatmul.mubr.bf16.vlgmr.msra.gmra.mrb[0].mxu0 %v52_v35  ;;  %332 = vmatmul.mubr.bf16.vlgmr.msra.gmra.mrb[0].mxu1 %v52_v35 }
  0x24   :  { %288 = vmatprep.mubr.bf16.mxu0 %v10298_v1  ;;  %341 = vmatprep.mubr.bf16.mxu1 %v10298_v1  ;;  %10510 = vst [vmem:[#allocation20_spill] sm:$0xff] %v6946_v34  ;;  %10511 = vst [vmem:[#allocation21_spill] sm:$0xff] %v6956_v36 }
  0x2b   :  { %289 = vmatmul.mubr.bf16.gmra.mrb[4].mxu0 %v53_v38  ;;  %342 = vmatmul.mubr.bf16.gmra.mrb[4].mxu1 %v53_v38 }
  0x2c   :  { %497 = vmatprep.mubr.bf16.mxu0 %v10298_v1  ;;  %540 = vmatprep.mubr.bf16.mxu1 %v10298_v1 }
  0xf6   :  { %v6650_v39 = vpop.f32.mrb[0].mxu0  ;;  %v6652_v40 = vpop.f32.mrb[0].mxu1 }
  0xf7   :  { %v6654_v41 = vpop.f32.mrb[1].mxu1  ;;  %363 = vrot.lane.b32.xlu0 %v6650_v39, %s6460_s20  ;;  %v6658_v42 = vpop.f32.mrb[1].mxu0 }
  0xf8   :  { %v6660_v43 = vpop.f32.mrb[2].mxu1  ;;  %371 = vrot.lane.b32.xlu1 %v6658_v42, %s6460_s20  ;;  %v6664_v44 = vpop.f32.mrb[2].mxu0 }
  0xf9   :  { %v6666_v45 = vpop.f32.mrb[3].mxu0  ;;  %v6668_v46 = vpop.f32.mrb[3].mxu1 }
  0xfb   :  { %379 = vrot.lane.b32.xlu0 %v6652_v40, %s6460_s20 }
  0xfc   :  { %381 = vrot.lane.b32.xlu1 %v6660_v43, %s6460_s20 }
  0xfe   :  { %v6682_v51 = vpop.f32.mrb[4].mxu0  ;;  %v6684_v52 = vpop.f32.mrb[4].mxu1 }
  0xff   :  { %645 = vrot.lane.b32.xlu0 %v6650_v39, %s6461_s0  ;;  %v6688_v53 = vpop.f32.mrb[5].mxu0  ;;  %v6690_v54 = vpop.f32.mrb[5].mxu1 }
 0x100   :  { %647 = vrot.lane.b32.xlu1 %v6664_v44, %s6461_s0  ;;  %v6694_v55 = vpop.f32.mrb[6].mxu0  ;;  %v6696_v56 = vpop.f32.mrb[6].mxu1 }
 0x101   :  { %v6698_v57 = vpop.f32.mrb[7].mxu0  ;;  %v6700_v58 = vpop.f32.mrb[7].mxu1 }
 0x103   :  { %661 = vrot.lane.b32.xlu0 %v6652_v40, %s6461_s0 }
 0x104   :  { %663 = vrot.lane.b32.xlu1 %v6660_v43, %s6461_s0 }
 0x107   :  { %839 = vrot.lane.b32.xlu0 %v6650_v39, %s6462_s21 }
 0x108   :  { %841 = vrot.lane.b32.xlu1 %v6664_v44, %s6462_s21 }
 0x10b   :  { %855 = vrot.lane.b32.xlu0 %v6652_v40, %s6462_s21 }
 0x10c   :  { %857 = vrot.lane.b32.xlu1 %v6660_v43, %s6462_s21 }
 0x10f   :  { %1033 = vrot.lane.b32.xlu0 %v6650_v39, %s6463_s22 }
 0x110   :  { %1035 = vrot.lane.b32.xlu1 %v6664_v44, %s6463_s22 }
 0x113   :  { %1049 = vrot.lane.b32.xlu0 %v6652_v40, %s6463_s22 }
 0x114   :  { %1051 = vrot.lane.b32.xlu1 %v6660_v43, %s6463_s22 }
 0x117   :  { %1227 = vrot.lane.b32.xlu0 %v6650_v39, %s6464_s23 }
 0x118   :  { %1229 = vrot.lane.b32.xlu1 %v6664_v44, %s6464_s23 }
 0x11b   :  { %1243 = vrot.lane.b32.xlu0 %v6652_v40, %s6464_s23 }
 0x11c   :  { %1245 = vrot.lane.b32.xlu1 %v6660_v43, %s6464_s23 }
 0x11f   :  { %1421 = vrot.lane.b32.xlu0 %v6650_v39, %s6465_s24 }
 0x120   :  { %1423 = vrot.lane.b32.xlu1 %v6664_v44, %s6465_s24 }
 0x123   :  { %1437 = vrot.lane.b32.xlu0 %v6652_v40, %s6465_s24 }
 0x124   :  { %1439 = vrot.lane.b32.xlu1 %v6660_v43, %s6465_s24 }
 0x127   :  { %1615 = vrot.lane.b32.xlu0 %v6650_v39, %s6466_s25 }
 0x128   :  { %1617 = vrot.lane.b32.xlu1 %v6664_v44, %s6466_s25 }
 0x12b   :  { %387 = vrot.lane.b32.xlu0 %v6654_v41, %s6460_s20 }
 0x12c   :  { %373 = vrot.lane.b32.xlu1 %v6666_v45, %s6460_s20 }
 0x12f   :  { %653 = vrot.lane.b32.xlu0 %v6658_v42, %s6461_s0 }
 0x130   :  { %389 = vrot.lane.b32.xlu1 %v6668_v46, %s6460_s20 }
 0x133   :  { %669 = vrot.lane.b32.xlu0 %v6654_v41, %s6461_s0 }
 0x134   :  { %655 = vrot.lane.b32.xlu1 %v6666_v45, %s6461_s0 }
 0x137   :  { %847 = vrot.lane.b32.xlu0 %v6658_v42, %s6462_s21 }
 0x138   :  { %671 = vrot.lane.b32.xlu1 %v6668_v46, %s6461_s0 }
 0x13b   :  { %863 = vrot.lane.b32.xlu0 %v6654_v41, %s6462_s21 }
 0x13c   :  { %849 = vrot.lane.b32.xlu1 %v6666_v45, %s6462_s21 }
 0x13f   :  { %1041 = vrot.lane.b32.xlu0 %v6658_v42, %s6463_s22 }
 0x140   :  { %865 = vrot.lane.b32.xlu1 %v6668_v46, %s6462_s21 }
 0x143   :  { %1057 = vrot.lane.b32.xlu0 %v6654_v41, %s6463_s22 }
 0x144   :  { %1043 = vrot.lane.b32.xlu1 %v6666_v45, %s6463_s22 }
 0x147   :  { %1235 = vrot.lane.b32.xlu0 %v6658_v42, %s6464_s23 }
 0x148   :  { %1059 = vrot.lane.b32.xlu1 %v6668_v46, %s6463_s22 }
 0x14b   :  { %1251 = vrot.lane.b32.xlu0 %v6654_v41, %s6464_s23 }
 0x14c   :  { %1237 = vrot.lane.b32.xlu1 %v6666_v45, %s6464_s23 }
 0x14f   :  { %1429 = vrot.lane.b32.xlu0 %v6658_v42, %s6465_s24 }
 0x150   :  { %1253 = vrot.lane.b32.xlu1 %v6668_v46, %s6464_s23 }
 0x153   :  { %1445 = vrot.lane.b32.xlu0 %v6654_v41, %s6465_s24 }
 0x154   :  { %1431 = vrot.lane.b32.xlu1 %v6666_v45, %s6465_s24 }
 0x157   :  { %1623 = vrot.lane.b32.xlu0 %v6658_v42, %s6466_s25 }
 0x158   :  { %1447 = vrot.lane.b32.xlu1 %v6668_v46, %s6465_s24 }
 0x15b   :  { %365 = vrot.lane.b32.xlu0 %v6664_v44, %s6460_s20 }
 0x15c   :  { %1625 = vrot.lane.b32.xlu1 %v6666_v45, %s6466_s25 }
 0x15f   :  { %367 = vrot.lane.b32.xlu0 %v6682_v51, %s6460_s20 }
 0x160   :  { %369 = vrot.lane.b32.xlu1 %v6694_v55, %s6460_s20 }
 0x163   :  { %383 = vrot.lane.b32.xlu0 %v6684_v52, %s6460_s20 }
 0x164   :  { %385 = vrot.lane.b32.xlu1 %v6696_v56, %s6460_s20 }
 0x167   :  { %649 = vrot.lane.b32.xlu0 %v6682_v51, %s6461_s0 }
 0x168   :  { %651 = vrot.lane.b32.xlu1 %v6694_v55, %s6461_s0 }
 0x169   :  { %v6814_v63 = vpop.permute.xlu0 %363 }
 0x16a   :  { %v6816_v0 = vpop.permute.xlu1 %371 }
 0x16b   :  { %665 = vrot.lane.b32.xlu0 %v6684_v52, %s6461_s0 }
 0x16c   :  { %667 = vrot.lane.b32.xlu1 %v6696_v56, %s6461_s0 }
 0x16d   :  { %v6822_v2 = vpop.permute.xlu0 %379 }
 0x16e   :  { %v6824_v3 = vpop.permute.xlu1 %381  ;;  %v402_v23 = vsel %vm397_vm0, %v6816_v0, %v6822_v2 }
 0x16f   :  { %843 = vrot.lane.b32.xlu0 %v6682_v51, %s6462_s21  ;;  %v432_v61 = vmul.f32 %v6956_v36, %v402_v23 }
 0x170   :  { %845 = vrot.lane.b32.xlu1 %v6694_v55, %s6462_s21 }
 0x171   :  { %v6830_v4 = vpop.permute.xlu0 %645 }
 0x172   :  { %v6832_v5 = vpop.permute.xlu1 %647 }
 0x173   :  { %859 = vrot.lane.b32.xlu0 %v6684_v52, %s6462_s21 }
 0x174   :  { %861 = vrot.lane.b32.xlu1 %v6696_v56, %s6462_s21 }
 0x175   :  { %v6838_v6 = vpop.permute.xlu0 %661 }
 0x176   :  { %v6840_v7 = vpop.permute.xlu1 %663 }
 0x177   :  { %1037 = vrot.lane.b32.xlu0 %v6682_v51, %s6463_s22 }
 0x178   :  { %1039 = vrot.lane.b32.xlu1 %v6694_v55, %s6463_s22 }
 0x179   :  { %v6846_v8 = vpop.permute.xlu0 %839 }
 0x17a   :  { %v6848_v9 = vpop.permute.xlu1 %841 }
 0x17b   :  { %10493 = vst [vmem:[#allocation3_spill] sm:$0xff] %v6848_v9  ;;  %1053 = vrot.lane.b32.xlu0 %v6684_v52, %s6463_s22 }
 0x17c   :  { %1055 = vrot.lane.b32.xlu1 %v6696_v56, %s6463_s22 }
 0x17d   :  { %v6854_v10 = vpop.permute.xlu0 %855 }
 0x17e   :  { %v6856_v11 = vpop.permute.xlu1 %857 }
 0x17f   :  { %1231 = vrot.lane.b32.xlu0 %v6682_v51, %s6464_s23 }
 0x180   :  { %1233 = vrot.lane.b32.xlu1 %v6694_v55, %s6464_s23 }
 0x181   :  { %v6862_v12 = vpop.permute.xlu0 %1033 }
 0x182   :  { %10494 = vst [vmem:[#allocation4_spill] sm:$0xff] %v6862_v12  ;;  %v6864_v13 = vpop.permute.xlu1 %1035 }
 0x183   :  { %10495 = vst [vmem:[#allocation5_spill] sm:$0xff] %v6864_v13  ;;  %1247 = vrot.lane.b32.xlu0 %v6684_v52, %s6464_s23  ;;  %v7192_v13 = vld [vmem:[%s10289_s1] sm:$0xff] }
 0x184   :  { %1249 = vrot.lane.b32.xlu1 %v6696_v56, %s6464_s23 }
 0x185   :  { %v6870_v14 = vpop.permute.xlu0 %1049 }
 0x186   :  { %10496 = vst [vmem:[#allocation6_spill] sm:$0xff] %v6870_v14  ;;  %v6872_v15 = vpop.permute.xlu1 %1051 }
 0x187   :  { %10497 = vst [vmem:[#allocation7_spill] sm:$0xff] %v6872_v15  ;;  %1425 = vrot.lane.b32.xlu0 %v6682_v51, %s6465_s24 }
 0x188   :  { %1427 = vrot.lane.b32.xlu1 %v6694_v55, %s6465_s24 }
 0x189   :  { %v6878_v16 = vpop.permute.xlu0 %1227 }
 0x18a   :  { %10498 = vst [vmem:[#allocation8_spill] sm:$0xff] %v6878_v16  ;;  %v6880_v17 = vpop.permute.xlu1 %1229 }
 0x18b   :  { %10499 = vst [vmem:[#allocation9_spill] sm:$0xff] %v6880_v17  ;;  %1441 = vrot.lane.b32.xlu0 %v6684_v52, %s6465_s24 }
 0x18c   :  { %1443 = vrot.lane.b32.xlu1 %v6696_v56, %s6465_s24 }
 0x18d   :  { %v6886_v18 = vpop.permute.xlu0 %1243 }
 0x18e   :  { %10500 = vst [vmem:[#allocation10_spill] sm:$0xff] %v6886_v18  ;;  %v6888_v19 = vpop.permute.xlu1 %1245 }
 0x18f   :  { %10501 = vst [vmem:[#allocation11_spill] sm:$0xff] %v6888_v19  ;;  %375 = vrot.lane.b32.xlu0 %v6688_v53, %s6460_s20 }
 0x190   :  { %377 = vrot.lane.b32.xlu1 %v6698_v57, %s6460_s20 }
 0x191   :  { %v6894_v20 = vpop.permute.xlu0 %1421 }
 0x192   :  { %10502 = vst [vmem:[#allocation12_spill] sm:$0xff] %v6894_v20  ;;  %v6896_v21 = vpop.permute.xlu1 %1423 }
 0x193   :  { %10503 = vst [vmem:[#allocation13_spill] sm:$0xff] %v6896_v21  ;;  %391 = vrot.lane.b32.xlu0 %v6690_v54, %s6460_s20 }
 0x194   :  { %393 = vrot.lane.b32.xlu1 %v6700_v58, %s6460_s20 }
 0x195   :  { %v6902_v22 = vpop.permute.xlu0 %1437 }
 0x196   :  { %10504 = vst [vmem:[#allocation14_spill] sm:$0xff] %v6902_v22  ;;  %v6904_v24 = vpop.permute.xlu1 %1439 }
 0x197   :  { %10505 = vst [vmem:[#allocation15_spill] sm:$0xff] %v6904_v24  ;;  %1631 = vrot.lane.b32.xlu0 %v6652_v40, %s6466_s25  ;;  %v7052_v24 = vld [vmem:[%s10287_s3 + $0x8] sm:$0xff] }
 0x198   :  { %1633 = vrot.lane.b32.xlu1 %v6660_v43, %s6466_s25 }
 0x199   :  { %v6910_v25 = vpop.permute.xlu0 %1615 }
 0x19a   :  { %10506 = vst [vmem:[#allocation16_spill] sm:$0xff] %v6910_v25  ;;  %v6915_v27 = vpop.permute.xlu1 %1617 }
 0x19b   :  { %10508 = vst [vmem:[#allocation18_spill] sm:$0xff] %v6915_v27  ;;  %657 = vrot.lane.b32.xlu0 %v6688_v53, %s6461_s0 }
 0x19c   :  { %1641 = vrot.lane.b32.xlu1 %v6668_v46, %s6466_s25 }
 0x19d   :  { %v6929_v30 = vpop.permute.xlu0 %387 }
 0x19e   :  { %v6939_v33 = vpop.permute.xlu1 %373  ;;  %v398_v37 = vsel %vm397_vm0, %v6822_v2, %v6929_v30 }
 0x19f   :  { %673 = vrot.lane.b32.xlu0 %v6690_v54, %s6461_s0  ;;  %v403_v35 = vsel %vm397_vm0, %v6939_v33, %v6824_v3  ;;  %v433_v62 = vmul.f32 %v6946_v34, %v398_v37 }
 0x1a0   :  { %1621 = vrot.lane.b32.xlu1 %v6694_v55, %s6466_s25  ;;  %v436_v59 = vmul.f32 %v6956_v36, %v403_v35 }
 0x1a1   :  { %v6962_v38 = vpop.permute.xlu0 %653 }
 0x1a2   :  { %v390_v60 = vpop.permute.xlu1 %389  ;;  %v450_v50 = vpack.c.bf16 %v436_v59, %v432_v61 }
 0x1a3   :  { %v399_v1 = vsel %vm397_vm0, %v6824_v3, %v390_v60  ;;  %851 = vrot.lane.b32.xlu0 %v6688_v53, %s6462_s21 }
 0x1a4   :  { %v437_v48 = vmul.f32 %v6946_v34, %v399_v1  ;;  %1637 = vrot.lane.b32.xlu1 %v6696_v56, %s6466_s25 }
 0x1a5   :  { %v6979_v2 = vpop.permute.xlu0 %669 }
 0x1a6   :  { %v6981_v47 = vpop.permute.xlu1 %655  ;;  %v451_v35 = vpack.c.bf16 %v437_v48, %v433_v62 }
 0x1a7   :  { %867 = vrot.lane.b32.xlu0 %v6690_v54, %s6462_s21 }
 0x1a8   :  { %508 = vmatprep.subr.bf16.mxu1 %v451_v35  ;;  %659 = vrot.lane.b32.xlu1 %v6698_v57, %s6461_s0 }
 0x1a9   :  { %v6987_v3 = vpop.permute.xlu0 %847  ;;  %509 = vmatpush1.bf16.msra.mxu1 %v450_v50 }
 0x1aa   :  { %v6989_v1 = vpop.permute.xlu1 %671 }
 0x1ab   :  { %1045 = vrot.lane.b32.xlu0 %v6688_v53, %s6463_s22 }
 0x1ac   :  { %675 = vrot.lane.b32.xlu1 %v6700_v58, %s6461_s0 }
 0x1ad   :  { %v6995_v48 = vpop.permute.xlu0 %863 }
 0x1ae   :  { %v6997_v59 = vpop.permute.xlu1 %849 }
 0x1af   :  { %10512 = vst [vmem:[#allocation22_spill] sm:$0xff] %v6997_v59  ;;  %1061 = vrot.lane.b32.xlu0 %v6690_v54, %s6463_s22 }
 0x1b0   :  { %1811 = vrot.lane.b32.xlu1 %v6664_v44, %s6467_s30 }
 0x1b1   :  { %v7003_v50 = vpop.permute.xlu0 %1041 }
 0x1b2   :  { %10513 = vst [vmem:[#allocation23_spill] sm:$0xff] %v7003_v50  ;;  %v7005_v61 = vpop.permute.xlu1 %865 }
 0x1b3   :  { %10514 = vst [vmem:[#allocation24_spill] sm:$0xff] %v7005_v61  ;;  %1239 = vrot.lane.b32.xlu0 %v6688_v53, %s6464_s23 }
 0x1b4   :  { %853 = vrot.lane.b32.xlu1 %v6698_v57, %s6462_s21 }
 0x1b5   :  { %v7011_v62 = vpop.permute.xlu0 %1057 }
 0x1b6   :  { %10515 = vst [vmem:[#allocation25_spill] sm:$0xff] %v7011_v62  ;;  %v7013_v23 = vpop.permute.xlu1 %1043 }
 0x1b7   :  { %10516 = vst [vmem:[#allocation26_spill] sm:$0xff] %v7013_v23  ;;  %1255 = vrot.lane.b32.xlu0 %v6690_v54, %s6464_s23 }
 0x1b8   :  { %869 = vrot.lane.b32.xlu1 %v6700_v58, %s6462_s21 }
 0x1b9   :  { %v7019_v37 = vpop.permute.xlu0 %1235 }
 0x1ba   :  { %10517 = vst [vmem:[#allocation27_spill] sm:$0xff] %v7019_v37  ;;  %v7021_v35 = vpop.permute.xlu1 %1059 }
 0x1bb   :  { %10518 = vst [vmem:[#allocation28_spill] sm:$0xff] %v7021_v35  ;;  %1433 = vrot.lane.b32.xlu0 %v6688_v53, %s6465_s24 }
 0x1bc   :  { %1819 = vrot.lane.b32.xlu1 %v6666_v45, %s6467_s30 }
 0x1bd   :  { %v7027_v49 = vpop.permute.xlu0 %1251 }
 0x1be   :  { %10519 = vst [vmem:[#allocation29_spill] sm:$0xff] %v7027_v49  ;;  %v7029_v27 = vpop.permute.xlu1 %1237  ;;  %v406_v49 = vsel %vm397_vm0, %v6814_v63, %v6816_v0 }
 0x1bf   :  { %10520 = vst [vmem:[#allocation30_spill] sm:$0xff] %v7029_v27  ;;  %1449 = vrot.lane.b32.xlu0 %v6690_v54, %s6465_s24 }
 0x1c0   :  { %1047 = vrot.lane.b32.xlu1 %v6698_v57, %s6463_s22 }
 0x1c1   :  { %v7035_v25 = vpop.permute.xlu0 %1429 }
 0x1c2   :  { %10521 = vst [vmem:[#allocation31_spill] sm:$0xff] %v7035_v25  ;;  %v7037_v21 = vpop.permute.xlu1 %1253  ;;  %v7057_v25 = vld [vmem:[%s10287_s3] sm:$0xff] }
 0x1c3   :  { %10522 = vst [vmem:[#allocation32_spill] sm:$0xff] %v7037_v21  ;;  %1639 = vrot.lane.b32.xlu0 %v6654_v41, %s6466_s25  ;;  %v7071_v19 = vrot.slane %v7057_v25, %v6932_v31 }
 0x1c4   :  { %1063 = vrot.lane.b32.xlu1 %v6700_v58, %s6463_s22 }
 0x1c5   :  { %v7043_v20 = vpop.permute.xlu0 %1445  ;;  %10528 = vst [vmem:[#allocation38_spill] sm:$0xff] %v7071_v19 }
 0x1c6   :  { %10523 = vst [vmem:[#allocation33_spill] sm:$0xff] %v7043_v20  ;;  %v7045_v22 = vpop.permute.xlu1 %1431 }
 0x1c7   :  { %10524 = vst [vmem:[#allocation34_spill] sm:$0xff] %v7045_v22  ;;  %1619 = vrot.lane.b32.xlu0 %v6682_v51, %s6466_s25  ;;  %v7067_v22 = vrot.slane %v7052_v24, %v6932_v31 }
 0x1c8   :  { %1827 = vrot.lane.b32.xlu1 %v6660_v43, %s6467_s30 }
 0x1c9   :  { %v7061_v21 = vpop.permute.xlu0 %1623  ;;  %10527 = vst [vmem:[#allocation37_spill] sm:$0xff] %v7067_v22  ;;  %v431_v0 = vmul.f32 %v7067_v22, %v406_v49 }
 0x1ca   :  { %10525 = vst [vmem:[#allocation35_spill] sm:$0xff] %v7061_v21  ;;  %v7063_v20 = vpop.permute.xlu1 %1447  ;;  %v410_v21 = vsel %vm397_vm0, %v6929_v30, %v6814_v63 }
 0x1cb   :  { %10526 = vst [vmem:[#allocation36_spill] sm:$0xff] %v7063_v20  ;;  %1627 = vrot.lane.b32.xlu0 %v6688_v53, %s6466_s25  ;;  %v430_v16 = vmul.f32 %v7071_v19, %v410_v21 }
 0x1cc   :  { %1241 = vrot.lane.b32.xlu1 %v6698_v57, %s6464_s23 }
 0x1cd   :  { %v366_v20 = vpop.permute.xlu0 %365 }
 0x1ce   :  { %v407_v31 = vsel %vm397_vm0, %v366_v20, %v6939_v33  ;;  %v411_v17 = vsel %vm397_vm0, %v390_v60, %v366_v20  ;;  %v7090_v27 = vpop.permute.xlu1 %1625 }
 0x1cf   :  { %10529 = vst [vmem:[#allocation39_spill] sm:$0xff] %v7090_v27  ;;  %v434_v37 = vmul.f32 %v7071_v19, %v411_v17  ;;  %v435_v63 = vmul.f32 %v7067_v22, %v407_v31  ;;  %1635 = vrot.lane.b32.xlu0 %v6684_v52, %s6466_s25 }
 0x1d0   :  { %1257 = vrot.lane.b32.xlu1 %v6700_v58, %s6464_s23 }
 0x1d1   :  { %v448_v30 = vpack.c.bf16 %v434_v37, %v430_v16  ;;  %v7100_v33 = vpop.permute.xlu0 %367  ;;  %v449_v60 = vpack.c.bf16 %v435_v63, %v431_v0 }
 0x1d2   :  { %v7102_v20 = vpop.permute.xlu1 %369 }
 0x1d3   :  { %465 = vmatprep.subr.bf16.mxu0 %v449_v60  ;;  %1643 = vrot.lane.b32.xlu0 %v6690_v54, %s6466_s25 }
 0x1d4   :  { %466 = vmatpush1.bf16.msra.mxu0 %v448_v30  ;;  %1835 = vrot.lane.b32.xlu1 %v6668_v46, %s6467_s30 }
 0x1d5   :  { %v7108_v49 = vpop.permute.xlu0 %383 }
 0x1d6   :  { %v7110_v17 = vpop.permute.xlu1 %385 }
 0x1d7   :  { %1809 = vrot.lane.b32.xlu0 %v6650_v39, %s6467_s30 }
 0x1d8   :  { %1435 = vrot.lane.b32.xlu1 %v6698_v57, %s6465_s24 }
 0x1d9   :  { %v7116_v16 = vpop.permute.xlu0 %649 }
 0x1da   :  { %v7118_v21 = vpop.permute.xlu1 %651 }
 0x1db   :  { %10530 = vst [vmem:[#allocation40_spill] sm:$0xff] %v7118_v21  ;;  %1817 = vrot.lane.b32.xlu0 %v6658_v42, %s6467_s30 }
 0x1dc   :  { %1451 = vrot.lane.b32.xlu1 %v6700_v58, %s6465_s24 }
 0x1dd   :  { %v7124_v31 = vpop.permute.xlu0 %665 }
 0x1de   :  { %10531 = vst [vmem:[#allocation41_spill] sm:$0xff] %v7124_v31  ;;  %v7126_v37 = vpop.permute.xlu1 %667 }
 0x1df   :  { %10532 = vst [vmem:[#allocation42_spill] sm:$0xff] %v7126_v37  ;;  %1825 = vrot.lane.b32.xlu0 %v6652_v40, %s6467_s30 }
 0x1e0   :  { %1815 = vrot.lane.b32.xlu1 %v6694_v55, %s6467_s30 }
 0x1e1   :  { %v7132_v0 = vpop.permute.xlu0 %843 }
 0x1e2   :  { %10533 = vst [vmem:[#allocation43_spill] sm:$0xff] %v7132_v0  ;;  %v7134_v63 = vpop.permute.xlu1 %845 }
 0x1e3   :  { %10534 = vst [vmem:[#allocation44_spill] sm:$0xff] %v7134_v63  ;;  %1833 = vrot.lane.b32.xlu0 %v6654_v41, %s6467_s30 }
 0x1e4   :  { %1629 = vrot.lane.b32.xlu1 %v6698_v57, %s6466_s25 }
 0x1e5   :  { %v7140_v30 = vpop.permute.xlu0 %859 }
 0x1e6   :  { %10535 = vst [vmem:[#allocation45_spill] sm:$0xff] %v7140_v30  ;;  %v7142_v60 = vpop.permute.xlu1 %861 }
 0x1e7   :  { %10536 = vst [vmem:[#allocation46_spill] sm:$0xff] %v7142_v60  ;;  %1813 = vrot.lane.b32.xlu0 %v6682_v51, %s6467_s30 }
 0x1e8   :  { %1645 = vrot.lane.b32.xlu1 %v6700_v58, %s6466_s25 }
 0x1e9   :  { %v7148_v27 = vpop.permute.xlu0 %1037 }
 0x1ea   :  { %10537 = vst [vmem:[#allocation47_spill] sm:$0xff] %v7148_v27  ;;  %v7150_v18 = vpop.permute.xlu1 %1039 }
 0x1eb   :  { %10538 = vst [vmem:[#allocation48_spill] sm:$0xff] %v7150_v18  ;;  %1821 = vrot.lane.b32.xlu0 %v6688_v53, %s6467_s30  ;;  %v2004_v18 = vld [vmem:[%s10288_s5 + $0x8] sm:$0xff] }
 0x1ec   :  { %1831 = vrot.lane.b32.xlu1 %v6696_v56, %s6467_s30 }
 0x1ed   :  { %v7156_v63 = vpop.permute.xlu0 %1053 }
 0x1ee   :  { %10539 = vst [vmem:[#allocation49_spill] sm:$0xff] %v7156_v63  ;;  %v7158_v30 = vpop.permute.xlu1 %1055  ;;  %v2003_v63 = vld [vmem:[%s10288_s5] sm:$0xff] }
 0x1ef   :  { %10540 = vst [vmem:[#allocation50_spill] sm:$0xff] %v7158_v30  ;;  %1829 = vrot.lane.b32.xlu0 %v6684_v52, %s6467_s30 }
 0x1f0   :  { %1823 = vrot.lane.b32.xlu1 %v6698_v57, %s6467_s30 }
 0x1f1   :  { %v7164_v60 = vpop.permute.xlu0 %1231 }
 0x1f2   :  { %10541 = vst [vmem:[#allocation51_spill] sm:$0xff] %v7164_v60  ;;  %v7166_v27 = vpop.permute.xlu1 %1233 }
 0x1f3   :  { %10542 = vst [vmem:[#allocation52_spill] sm:$0xff] %v7166_v27  ;;  %1837 = vrot.lane.b32.xlu0 %v6690_v54, %s6467_s30  ;;  %v7185_v27 = vld [vmem:[%s10289_s1 + $0x20] sm:$0xff] }
 0x1f4   :  { %1839 = vrot.lane.b32.xlu1 %v6700_v58, %s6467_s30 }
 0x1f5   :  { %v7175_v30 = vpop.permute.xlu0 %1247 }
 0x1f6   :  { %10543 = vst [vmem:[#allocation53_spill] sm:$0xff] %v7175_v30  ;;  %v7180_v35 = vpop.permute.xlu1 %1249 }
 0x1f7   :  { %10544 = vst [vmem:[#allocation54_spill] sm:$0xff] %v7180_v35  ;;  %2007 = vperm.xlu0 %6371, %v2003_v63  }
 0x1f8   :  { %2012 = vperm.xlu1 %6372, %v2004_v18   ;;  %v7203_v18 = vld [vmem:[%s10289_s1 + $0x28] sm:$0xff] }
 0x1f9   :  { %v7187_v60 = vpop.permute.xlu0 %1425 }
 0x1fa   :  { %10545 = vst [vmem:[#allocation55_spill] sm:$0xff] %v7187_v60  ;;  %v7194_v30 = vpop.permute.xlu1 %1427  ;;  %v7210_v60 = vld [vmem:[%s10289_s1 + $0x8] sm:$0xff] }
 0x1fb   :  { %10546 = vst [vmem:[#allocation56_spill] sm:$0xff] %v7194_v30  ;;  %2056 = vrot.lane.b32.xlu0 %v7185_v27, %s6460_s20  ;;  %v7221_v30 = vld [vmem:[%s10289_s1 + $0x30] sm:$0xff] }
 0x1fc   :  { %2054 = vrot.lane.b32.xlu1 %v7192_v13, %s6460_s20 }
 0x1fd   :  { %v7205_v63 = vpop.permute.xlu0 %1441 }
 0x1fe   :  { %10547 = vst [vmem:[#allocation57_spill] sm:$0xff] %v7205_v63  ;;  %v7212_v35 = vpop.permute.xlu1 %1443  ;;  %v7226_v63 = vld [vmem:[%s10289_s1 + $0x10] sm:$0xff] }
 0x1ff   :  { %10548 = vst [vmem:[#allocation58_spill] sm:$0xff] %v7212_v35  ;;  %2064 = vrot.lane.b32.xlu0 %v7203_v18, %s6460_s20 }
 0x200   :  { %2062 = vrot.lane.b32.xlu1 %v7210_v60, %s6460_s20 }
 0x201   :  { %v376_v23 = vpop.permute.xlu0 %375 }
 0x202   :  { %v404_v35 = vsel %vm397_vm0, %v376_v23, %v7108_v49  ;;  %v408_v15 = vsel %vm397_vm0, %v7100_v33, %v376_v23  ;;  %v378_v62 = vpop.permute.xlu1 %377 }
 0x203   :  { %v439_v14 = vmul.f32 %v7067_v22, %v408_v15  ;;  %v405_v0 = vsel %vm397_vm0, %v378_v62, %v7110_v17  ;;  %v409_v12 = vsel %vm397_vm0, %v7102_v20, %v378_v62  ;;  %2072 = vrot.lane.b32.xlu0 %v7221_v30, %s6460_s20  ;;  %v7249_v15 = vld [vmem:[%s10289_s1 + $0x38] sm:$0xff]  ;;  %v440_v23 = vmul.f32 %v6956_v36, %v404_v35 }
 0x204   :  { %v443_v50 = vmul.f32 %v7067_v22, %v409_v12  ;;  %2070 = vrot.lane.b32.xlu1 %v7226_v63, %s6460_s20  ;;  %v7255_v62 = vld [vmem:[%s10289_s1 + $0x18] sm:$0xff]  ;;  %v444_v37 = vmul.f32 %v6956_v36, %v405_v0  ;;  %v10560_v36 = vpack.c.bf16 %v6698_v57, %v6688_v53  ;;  %v10563_v53 = vpack.c.bf16 %v6700_v58, %v6690_v54 }
 0x205   :  { %v392_v31 = vpop.permute.xlu0 %391  ;;  %v682_v54 = vsel %vm677_vm1, %v6962_v38, %v6838_v6 }
 0x206   :  { %v400_v12 = vsel %vm397_vm0, %v7108_v49, %v392_v31  ;;  %v412_v22 = vsel %vm397_vm0, %v392_v31, %v7100_v33  ;;  %v394_v21 = vpop.permute.xlu1 %393  ;;  %v453_v61 = vpack.c.bf16 %v443_v50, %v439_v14  ;;  %v696_v14 = vsub.s32 1, %v6913_v26 }
 0x207   :  { %v438_v35 = vmul.f32 %v7071_v19, %v412_v22  ;;  %v441_v9 = vmul.f32 %v6946_v34, %v400_v12  ;;  %v401_v59 = vsel %vm397_vm0, %v7110_v17, %v394_v21  ;;  %v413_v0 = vsel %vm397_vm0, %v394_v21, %v7102_v20  ;;  %2080 = vrot.lane.b32.xlu0 %v7249_v15, %s6460_s20  ;;  %v6421_v21 = vld [vmem:[%s10286_s4] sm:$0xff]  }
 0x208   :  { %v442_v49 = vmul.f32 %v7071_v19, %v413_v0  ;;  %v445_v33 = vmul.f32 %v6946_v34, %v401_v59  ;;  %467 = vmatprep.subr.bf16.mxu0 %v453_v61  ;;  %2078 = vrot.lane.b32.xlu1 %v7255_v62, %s6460_s20  ;;  %v454_v20 = vpack.c.bf16 %v444_v37, %v440_v23  ;;  %v890_v61 = vsub.s32 2, %v6913_v26 }
 0x209   :  { %v7279_v22 = vpop.permute.xlu0 %1631  ;;  %v687_v59 = vsel %vm677_vm1, %v6832_v5, %v6981_v47  ;;  %v679_v37 = vsel %vm677_vm1, %v6840_v7, %v6989_v1  ;;  %v10550_v12 = vpack.c.bf16 %v6666_v45, %v6658_v42  ;;  %v7311_v0 = vrot.slane %v6927_v29, %v696_v14 }
 0x20a   :  { %v452_v50 = vpack.c.bf16 %v442_v49, %v438_v35  ;;  %v7281_v17 = vpop.permute.xlu1 %1633  ;;  %v455_v31 = vpack.c.bf16 %v445_v33, %v441_v9  ;;  %v7295_v9 = vrot.slane %v7052_v24, %v696_v14  ;;  %v686_v35 = vsel %vm677_vm1, %v6830_v4, %v6962_v38 }
 0x20b   :  { %2318 = vrot.lane.b32.xlu0 %v7185_v27, %s6461_s0  ;;  %10551 = vst [vmem:[#allocation60_spill] sm:$0xff] %v7311_v0  ;;  %v10552_v49 = vpack.c.bf16 %v6668_v46, %v6654_v41  ;;  %v7321_v42 = vrot.slane %v6937_v32, %v696_v14  ;;  %v678_v45 = vsel %vm677_vm1, %v6838_v6, %v6979_v2 }
 0x20c   :  { %468 = vmatpush1.bf16.msra.mxu0 %v452_v50  ;;  %510 = vmatprep.subr.bf16.mxu1 %v455_v31  ;;  %10549 = vst [vmem:[#allocation59_spill] sm:$0xff] %v7295_v9  ;;  %v715_v50 = vmul.f32 %v7295_v9, %v687_v59  ;;  %v1084_v31 = vsub.s32 3, %v6913_v26  ;;  %v7331_v41 = vrot.slane %v7057_v25, %v696_v14 }
 0x20d   :  { %v7301_v23 = vpop.permute.xlu0 %657  ;;  %511 = vmatpush1.bf16.msra.mxu1 %v454_v20  ;;  %559 = vmatprep.subr.bf16.mxu0 %v10550_v12  ;;  %10554 = vst [vmem:[#allocation62_spill] sm:$0xff] %v7321_v42  ;;  %v7334_v46 = vrot.slane %v7052_v24, %v890_v61  ;;  %v717_v20 = vmul.f32 %v7311_v0, %v679_v37 }
 0x20e   :  { %602 = vmatprep.subr.bf16.mxu1 %v10552_v49  ;;  %v7316_v33 = vpop.permute.xlu1 %1641  ;;  %2316 = vrot.lane.b32.xlu1 %v7192_v13, %s6461_s0  ;;  %10555 = vst [vmem:[#allocation63_spill] sm:$0xff] %v7331_v41  ;;  %v10557_v12 = vpack.c.bf16 %v6664_v44, %v6650_v39  ;;  %v711_v59 = vmul.f32 %v7295_v9, %v686_v35  ;;  %v1278_v35 = vsub.s32 4, %v6913_v26 }
 0x20f   :  { %10553 = vst [vmem:[#allocation61_spill] sm:$0xff] %v7316_v33  ;;  %6017 = vmatmul.mubr.msk.bf16.vlgmr.msra.gmra.mrb[8].mxu0 %vm461_vm2, %v6421_v21  ;;  %10556 = vst [vmem:[#allocation64_spill] sm:$0xff] %v7334_v46  ;;  %v7343_v49 = vrot.slane %v6937_v32, %v890_v61  ;;  %v7346_v19 = vrot.slane %v7057_v25, %v890_v61  ;;  %v713_v39 = vmul.f32 %v7311_v0, %v678_v45 }
 0x210   :  { %6018 = vmatmul.mubr.msk.bf16.vlgmr.msra.gmra.mrb[8].mxu1 %vm461_vm2, %v6421_v21  ;;  %560 = vmatpush1.bf16.msra.mxu0 %v10557_v12  ;;  %v10561_v21 = vpack.c.bf16 %v6660_v43, %v6652_v40  ;;  %v683_v44 = vsel %vm677_vm1, %v6981_v47, %v6840_v7  ;;  %v7362_v37 = vrot.slane %v6927_v29, %v890_v61  ;;  %v10565_v40 = vmov 0  }
 0x211   :  { %10558 = vst [vmem:[#allocation65_spill] sm:$0xff] %v7343_v49  ;;  %10559 = vst [vmem:[#allocation66_spill] sm:$0xff] %v7346_v19  ;;  %v7348_v14 = vpop.permute.xlu0 %673  ;;  %561 = vmatprep.subr.bf16.mxu0 %v10560_v36  ;;  %591 = vmatprep.mubr.bf16.mxu0 %v10565_v40  ;;  %v691_v43 = vsel %vm677_vm1, %v6989_v1, %v6832_v5  ;;  %v7376_v47 = vrot.slane %v7052_v24, %v1084_v31  ;;  %v1472_v7 = vsub.s32 5, %v6913_v26 }
 0x212   :  { %603 = vmatpush1.bf16.msra.mxu1 %v10561_v21  ;;  %10562 = vst [vmem:[#allocation67_spill] sm:$0xff] %v7362_v37  ;;  %v7368_v57 = vpop.permute.xlu1 %1621  ;;  %v730_v36 = vpack.c.bf16 %v715_v50, %v711_v59  ;;  %634 = vmatprep.mubr.bf16.mxu1 %v10565_v40  ;;  %v7387_v58 = vrot.slane %v6937_v32, %v1084_v31  ;;  %v6422_v59 = vld [vmem:[%s10286_s4 + $0x20] sm:$0xff]  }
 0x213   :  { %604 = vmatprep.subr.bf16.mxu1 %v10563_v53  ;;  %10564 = vst [vmem:[#allocation68_spill] sm:$0xff] %v7368_v57  ;;  %10566 = vst [vmem:[#allocation69_spill] sm:$0xff] %v7376_v47  ;;  %2326 = vrot.lane.b32.xlu0 %v7203_v18, %s6461_s0  ;;  %v10568_v5 = vpack.c.bf16 %v6694_v55, %v6682_v51  ;;  %v732_v1 = vpack.c.bf16 %v717_v20, %v713_v39  ;;  %v10585_v57 = vld [vmem:[#allocation42_spill] sm:$0xff] }
 0x214   :  { %10567 = vst [vmem:[#allocation70_spill] sm:$0xff] %v7387_v58  ;;  %2324 = vrot.lane.b32.xlu1 %v7210_v60, %s6461_s0  ;;  %v690_v61 = vsel %vm677_vm1, %v6979_v2, %v6830_v4  ;;  %v716_v45 = vmul.f32 %v7321_v42, %v683_v44  ;;  %v7401_v6 = vrot.slane %v7057_v25, %v1084_v31 }
 0x215   :  { %562 = vmatpush1.bf16.msra.mxu0 %v10568_v5  ;;  %v7403_v38 = vpop.permute.xlu0 %851  ;;  %v10570_v51 = vpack.c.bf16 %v6696_v56, %v6684_v52  ;;  %v714_v55 = vmul.f32 %v7331_v41, %v691_v43  ;;  %v7410_v50 = vrot.slane %v6927_v29, %v1084_v31  ;;  %v7413_v4 = vrot.slane %v7057_v25, %v1278_v35 }
 0x216   :  { %10569 = vst [vmem:[#allocation71_spill] sm:$0xff] %v7401_v6  ;;  %745 = vmatprep.subr.bf16.mxu0 %v730_v36  ;;  %v7416_v2 = vrot.slane %v7052_v24, %v1278_v35  ;;  %v7418_v20 = vpop.permute.xlu1 %1637  ;;  %v712_v12 = vmul.f32 %v7321_v42, %v682_v54  ;;  %v7422_v52 = vrot.slane %v6937_v32, %v1278_v35 }
 0x217   :  { %605 = vmatpush1.bf16.msra.mxu1 %v10570_v51  ;;  %10571 = vst [vmem:[#allocation72_spill] sm:$0xff] %v7410_v50  ;;  %10572 = vst [vmem:[#allocation73_spill] sm:$0xff] %v7413_v4  ;;  %v7425_v56 = vrot.slane %v6927_v29, %v1278_v35  ;;  %v7428_v31 = vrot.slane %v7057_v25, %v1472_v7  ;;  %2334 = vrot.lane.b32.xlu0 %v7221_v30, %s6461_s0  ;;  %v10582_v51 = vld [vmem:[#allocation3_spill] sm:$0xff] }
 0x218   :  { %10573 = vst [vmem:[#allocation74_spill] sm:$0xff] %v7416_v2  ;;  %788 = vmatprep.subr.bf16.mxu1 %v732_v1  ;;  %10574 = vst [vmem:[#allocation75_spill] sm:$0xff] %v7418_v20  ;;  %v710_v21 = vmul.f32 %v7331_v41, %v690_v61  ;;  %v7437_v39 = vrot.slane %v7052_v24, %v1472_v7  ;;  %v7440_v44 = vrot.slane %v6937_v32, %v1472_v7  ;;  %v10581_v61 = vld [vmem:[#allocation22_spill] sm:$0xff]  ;;  %v10586_v20 = vld [vmem:[#allocation41_spill] sm:$0xff] }
 0x219   :  { %10575 = vst [vmem:[#allocation76_spill] sm:$0xff] %v7422_v52  ;;  %10576 = vst [vmem:[#allocation77_spill] sm:$0xff] %v7425_v56  ;;  %v688_v35 = vsel %vm677_vm1, %v7116_v16, %v7301_v23  ;;  %2332 = vrot.lane.b32.xlu1 %v7226_v63, %s6461_s0  ;;  %v731_v53 = vpack.c.bf16 %v716_v45, %v712_v12  ;;  %v876_v43 = vsel %vm871_vm3, %v6987_v3, %v6854_v10  ;;  %v7459_v54 = vpop.permute.xlu0 %867 }
 0x21a   :  { %10577 = vst [vmem:[#allocation78_spill] sm:$0xff] %v7428_v31  ;;  %10578 = vst [vmem:[#allocation79_spill] sm:$0xff] %v7437_v39  ;;  %v880_v32 = vsel %vm871_vm3, %v6846_v8, %v6987_v3  ;;  %v7457_v36 = vrot.slane %v6927_v29, %v1472_v7  ;;  %v729_v5 = vpack.c.bf16 %v714_v55, %v710_v21  ;;  %v660_v29 = vpop.permute.xlu1 %659  ;;  %v10583_v55 = vld [vmem:[#allocation24_spill] sm:$0xff] }
 0x21b   :  { %10579 = vst [vmem:[#allocation80_spill] sm:$0xff] %v7440_v44  ;;  %v872_v1 = vsel %vm871_vm3, %v6854_v10, %v6995_v48  ;;  %v877_v45 = vsel %vm871_vm3, %v10581_v61, %v6856_v11  ;;  %v881_v3 = vsel %vm871_vm3, %v10582_v51, %v10581_v61  ;;  %v884_v7 = vsel %vm871_vm3, %v6995_v48, %v6846_v8  ;;  %v10584_v21 = vld [vmem:[#allocation40_spill] sm:$0xff] }
 0x21c   :  { %10580 = vst [vmem:[#allocation81_spill] sm:$0xff] %v7457_v36  ;;  %v873_v10 = vsel %vm871_vm3, %v6856_v11, %v10583_v55  ;;  %v719_v12 = vmul.f32 %v7295_v9, %v688_v35  ;;  %v689_v34 = vsel %vm677_vm1, %v10584_v21, %v660_v29  ;;  %6020 = vmatmul.mubr.msk.bf16.vlgmr.msra.gmra.mrb[8].mxu0 %vm461_vm2, %v6422_v59 }
 0x21d   :  { %v692_v61 = vsel %vm677_vm1, %v7348_v14, %v7116_v16  ;;  %v685_v8 = vsel %vm677_vm1, %v660_v29, %v10585_v57  ;;  %v723_v48 = vmul.f32 %v7295_v9, %v689_v34  ;;  %746 = vmatpush1.bf16.msra.mxu0 %v729_v5  ;;  %6021 = vmatmul.mubr.msk.bf16.vlgmr.msra.gmra.mrb[8].mxu1 %vm461_vm2, %v6422_v59  ;;  %v7504_v33 = vpop.permute.xlu0 %1045 }
 0x21e   :  { %v909_v11 = vmul.f32 %v7334_v46, %v881_v3  ;;  %v7498_v35 = vmul.f32 %v7343_v49, %v877_v45  ;;  %v680_v16 = vsel %vm677_vm1, %v10586_v20, %v7348_v14  ;;  %789 = vmatpush1.bf16.msra.mxu1 %v731_v53  ;;  %777 = vmatprep.mubr.bf16.mxu0 %v10565_v40  ;;  %v676_v45 = vpop.permute.xlu1 %675 }
 0x21f   :  { %v885_v34 = vsel %vm871_vm3, %v10583_v55, %v10582_v51  ;;  %v911_v59 = vmul.f32 %v7362_v37, %v873_v10  ;;  %v684_v5 = vsel %vm677_vm1, %v7301_v23, %v10586_v20  ;;  %v734_v3 = vpack.c.bf16 %v723_v48, %v719_v12  ;;  %820 = vmatprep.mubr.bf16.mxu1 %v10565_v40 }
 0x220   :  { %v718_v14 = vmul.f32 %v7331_v41, %v692_v61  ;;  %v724_v53 = vmul.f32 %v7321_v42, %v685_v8  ;;  %v681_v29 = vsel %vm677_vm1, %v10585_v57, %v676_v45  ;;  %v693_v51 = vsel %vm677_vm1, %v676_v45, %v10584_v21  ;;  %2342 = vrot.lane.b32.xlu0 %v7249_v15, %s6461_s0  ;;  %v10588_v45 = vld [vmem:[#allocation4_spill] sm:$0xff] }
 0x221   :  { %v7528_v23 = vsub.s32 6, %v6913_v26  ;;  %v721_v20 = vmul.f32 %v7311_v0, %v680_v16  ;;  %v722_v55 = vmul.f32 %v7331_v41, %v693_v51  ;;  %v725_v10 = vmul.f32 %v7311_v0, %v681_v29  ;;  %747 = vmatprep.subr.bf16.mxu0 %v734_v3  ;;  %2340 = vrot.lane.b32.xlu1 %v7255_v62, %s6461_s0  ;;  %v7539_v8 = vpop.permute.xlu0 %1061  ;;  %v10587_v16 = vld [vmem:[#allocation23_spill] sm:$0xff]  ;;  %v10599_v0 = vld [vmem:[#allocation45_spill] sm:$0xff] }
 0x222   :  { %v905_v57 = vmul.f32 %v7334_v46, %v880_v32  ;;  %v906_v12 = vmul.f32 %v7343_v49, %v876_v43  ;;  %v908_v21 = vmul.f32 %v7346_v19, %v885_v34  ;;  %v720_v61 = vmul.f32 %v7321_v42, %v684_v5  ;;  %v7546_v51 = vpop.permute.xlu1 %1811  ;;  %v10598_v42 = vld [vmem:[#allocation46_spill] sm:$0xff] }
 0x223   :  { %v907_v48 = vmul.f32 %v7362_v37, %v872_v1  ;;  %v1074_v3 = vsel %vm1065_vm4, %v10588_v45, %v10587_v16  ;;  %v733_v29 = vpack.c.bf16 %v722_v55, %v718_v14  ;;  %v736_v41 = vpack.c.bf16 %v725_v10, %v721_v20  ;;  %v6423_v1 = vld [vmem:[%s10286_s4 + $0x8] sm:$0xff]   ;;  %v10591_v10 = vld [vmem:[#allocation6_spill] sm:$0xff] }
 0x224   :  { %v904_v32 = vmul.f32 %v7346_v19, %v884_v7  ;;  %v7551_v43 = vrot.slane %v7052_v24, %v7528_v23  ;;  %v735_v34 = vpack.c.bf16 %v724_v53, %v720_v61  ;;  %v924_v5 = vpack.c.bf16 %v909_v11, %v905_v57  ;;  %2495 = vrot.lane.b32.xlu0 %v7185_v27, %s6462_s21  ;;  %v10590_v55 = vld [vmem:[#allocation43_spill] sm:$0xff] }
 0x225   :  { %v925_v14 = vpack.c.bf16 %v7498_v35, %v906_v12  ;;  %v882_v7 = vsel %vm871_vm3, %v10590_v55, %v7403_v38  ;;  %748 = vmatpush1.bf16.msra.mxu0 %v733_v29  ;;  %790 = vmatprep.subr.bf16.mxu1 %v736_v41  ;;  %v926_v20 = vpack.c.bf16 %v911_v59, %v907_v48  ;;  %v7570_v61 = vpop.permute.xlu0 %1239  ;;  %v10592_v35 = vld [vmem:[#allocation25_spill] sm:$0xff]  ;;  %v10593_v41 = vld [vmem:[#allocation7_spill] sm:$0xff]  ;;  %v10594_v59 = vld [vmem:[#allocation26_spill] sm:$0xff] }
 0x226   :  { %10589 = vst [vmem:[#allocation22_spill] sm:$0xff] %v7551_v43  ;;  %v1070_v11 = vsel %vm1065_vm4, %v10587_v16, %v10591_v10  ;;  %v7568_v53 = vmul.f32 %v7376_v47, %v1074_v3  ;;  %v923_v57 = vpack.c.bf16 %v908_v21, %v904_v32  ;;  %791 = vmatpush1.bf16.msra.mxu1 %v735_v34  ;;  %v10595_v16 = vld [vmem:[#allocation5_spill] sm:$0xff]  ;;  %v854_v21 = vpop.permute.xlu1 %853  ;;  %v10596_v32 = vld [vmem:[#allocation28_spill] sm:$0xff] }
 0x227   :  { %939 = vmatprep.subr.bf16.mxu0 %v924_v5  ;;  %v1066_v12 = vsel %vm1065_vm4, %v10591_v10, %v10592_v35  ;;  %v1071_v48 = vsel %vm1065_vm4, %v10594_v59, %v10593_v41  ;;  %v1075_v3 = vsel %vm1065_vm4, %v10595_v16, %v10594_v59  ;;  %982 = vmatprep.subr.bf16.mxu1 %v926_v20  ;;  %v10597_v10 = vld [vmem:[#allocation44_spill] sm:$0xff] }
 0x228   :  { %2493 = vrot.lane.b32.xlu1 %v7192_v13, %s6462_s21  ;;  %v1078_v29 = vsel %vm1065_vm4, %v10592_v35, %v10588_v45  ;;  %v1067_v34 = vsel %vm1065_vm4, %v10593_v41, %v10596_v32  ;;  %v913_v5 = vmul.f32 %v7334_v46, %v882_v7  ;;  %v883_v20 = vsel %vm871_vm3, %v10597_v10, %v854_v21 }
 0x229   :  { %6025 = vmatmul.mubr.msk.bf16.vlgmr.msra.gmra.mrb[8].mxu0 %vm461_vm2, %v6423_v1  ;;  %v886_v59 = vsel %vm871_vm3, %v7459_v54, %v10590_v55  ;;  %v879_v45 = vsel %vm871_vm3, %v854_v21, %v10598_v42  ;;  %v917_v35 = vmul.f32 %v7334_v46, %v883_v20  ;;  %6026 = vmatmul.mubr.msk.bf16.vlgmr.msra.gmra.mrb[8].mxu1 %vm461_vm2, %v6423_v1  ;;  %v7617_v9 = vpop.permute.xlu0 %1255 }
 0x22a   :  { %940 = vmatpush1.bf16.msra.mxu0 %v923_v57  ;;  %v1103_v7 = vmul.f32 %v7376_v47, %v1075_v3  ;;  %v7611_v41 = vmul.f32 %v7387_v58, %v1071_v48  ;;  %v874_v55 = vsel %vm871_vm3, %v10599_v0, %v7459_v54  ;;  %983 = vmatpush1.bf16.msra.mxu1 %v925_v14  ;;  %v870_v3 = vpop.permute.xlu1 %869 }
 0x22b   :  { %971 = vmatprep.mubr.bf16.mxu0 %v10565_v40  ;;  %v1079_v1 = vsel %vm1065_vm4, %v10596_v32, %v10595_v16  ;;  %v1105_v57 = vmul.f32 %v7410_v50, %v1067_v34  ;;  %v878_v48 = vsel %vm871_vm3, %v7403_v38, %v10599_v0  ;;  %v928_v21 = vpack.c.bf16 %v917_v35, %v913_v5  ;;  %v10601_v35 = vld [vmem:[#allocation27_spill] sm:$0xff] }
 0x22c   :  { %1014 = vmatprep.mubr.bf16.mxu1 %v10565_v40  ;;  %v912_v54 = vmul.f32 %v7346_v19, %v886_v59  ;;  %v918_v14 = vmul.f32 %v7343_v49, %v879_v45  ;;  %v875_v20 = vsel %vm871_vm3, %v10598_v42, %v870_v3  ;;  %v887_v16 = vsel %vm871_vm3, %v870_v3, %v10597_v10  ;;  %v10600_v45 = vld [vmem:[#allocation10_spill] sm:$0xff]  ;;  %v10602_v3 = vld [vmem:[#allocation8_spill] sm:$0xff] }
 0x22d   :  { %2503 = vrot.lane.b32.xlu0 %v7203_v18, %s6462_s21  ;;  %v915_v0 = vmul.f32 %v7362_v37, %v874_v55  ;;  %v916_v38 = vmul.f32 %v7346_v19, %v887_v16  ;;  %v919_v32 = vmul.f32 %v7362_v37, %v875_v20  ;;  %941 = vmatprep.subr.bf16.mxu0 %v928_v21  ;;  %v7649_v59 = vpop.permute.xlu0 %1433  ;;  %v6424_v19 = vld [vmem:[%s10286_s4 + $0x10] sm:$0xff]   ;;  %v10603_v37 = vld [vmem:[#allocation30_spill] sm:$0xff] }
 0x22e   :  { %2501 = vrot.lane.b32.xlu1 %v7210_v60, %s6462_s21  ;;  %v1100_v34 = vmul.f32 %v7387_v58, %v1070_v11  ;;  %v1101_v42 = vmul.f32 %v7410_v50, %v1066_v12  ;;  %v1102_v5 = vmul.f32 %v7401_v6, %v1079_v1  ;;  %v914_v10 = vmul.f32 %v7343_v49, %v878_v48  ;;  %v7659_v11 = vpop.permute.xlu1 %1819 }
 0x22f   :  { %v1264_v55 = vsel %vm1259_vm5, %v10601_v35, %v10600_v45  ;;  %v1268_v21 = vsel %vm1259_vm5, %v10602_v3, %v10601_v35  ;;  %v927_v20 = vpack.c.bf16 %v916_v38, %v912_v54  ;;  %v930_v12 = vpack.c.bf16 %v919_v32, %v915_v0  ;;  %v10604_v35 = vld [vmem:[#allocation9_spill] sm:$0xff]  ;;  %v10605_v0 = vld [vmem:[#allocation47_spill] sm:$0xff] }
 0x230   :  { %v1098_v1 = vmul.f32 %v7401_v6, %v1078_v29  ;;  %v1119_v48 = vpack.c.bf16 %v7611_v41, %v1100_v34  ;;  %v929_v16 = vpack.c.bf16 %v918_v14, %v914_v10  ;;  %v1118_v49 = vpack.c.bf16 %v1103_v7, %v7568_v53  ;;  %v10606_v32 = vld [vmem:[#allocation29_spill] sm:$0xff] }
 0x231   :  { %2511 = vrot.lane.b32.xlu0 %v7221_v30, %s6462_s21  ;;  %v1269_v54 = vsel %vm1259_vm5, %v10604_v35, %v10603_v37  ;;  %v1076_v29 = vsel %vm1065_vm4, %v10605_v0, %v7504_v33  ;;  %942 = vmatpush1.bf16.msra.mxu0 %v927_v20  ;;  %v1120_v53 = vpack.c.bf16 %v1105_v57, %v1101_v42  ;;  %v7683_v38 = vpop.permute.xlu0 %1449  ;;  %v10607_v42 = vld [vmem:[#allocation11_spill] sm:$0xff] }
 0x232   :  { %984 = vmatprep.subr.bf16.mxu1 %v930_v12  ;;  %v7678_v7 = vmul.f32 %v7413_v4, %v1268_v21  ;;  %v7681_v41 = vmul.f32 %v7416_v2, %v1264_v55  ;;  %v1117_v14 = vpack.c.bf16 %v1102_v5, %v1098_v1  ;;  %1133 = vmatprep.subr.bf16.mxu0 %v1118_v49  ;;  %v1048_v5 = vpop.permute.xlu1 %1047  ;;  %v10609_v21 = vld [vmem:[#allocation48_spill] sm:$0xff]  ;;  %v10610_v12 = vld [vmem:[#allocation50_spill] sm:$0xff] }
 0x233   :  { %985 = vmatpush1.bf16.msra.mxu1 %v929_v16  ;;  %v1260_v34 = vsel %vm1259_vm5, %v10600_v45, %v10606_v32  ;;  %v1272_v57 = vsel %vm1259_vm5, %v10606_v32, %v10602_v3  ;;  %v1265_v10 = vsel %vm1259_vm5, %v10603_v37, %v10607_v42  ;;  %2509 = vrot.lane.b32.xlu1 %v7226_v63, %s6462_s21  ;;  %v10608_v45 = vld [vmem:[#allocation32_spill] sm:$0xff]  ;;  %v10613_v32 = vld [vmem:[#allocation34_spill] sm:$0xff] }
 0x234   :  { %1176 = vmatprep.subr.bf16.mxu1 %v1120_v53  ;;  %v7700_v49 = vmul.f32 %v7413_v4, %v1269_v54  ;;  %v1273_v55 = vsel %vm1259_vm5, %v10608_v45, %v10604_v35  ;;  %v1107_v3 = vmul.f32 %v7376_v47, %v1076_v29  ;;  %v1077_v20 = vsel %vm1065_vm4, %v10609_v21, %v1048_v5 }
 0x235   :  { %6030 = vmatmul.mubr.msk.bf16.vlgmr.msra.gmra.mrb[8].mxu0 %vm461_vm2, %v6424_v19  ;;  %v1080_v37 = vsel %vm1065_vm4, %v7539_v8, %v10605_v0  ;;  %v1073_v1 = vsel %vm1065_vm4, %v1048_v5, %v10610_v12  ;;  %v1111_v16 = vmul.f32 %v7376_v47, %v1077_v20  ;;  %v1297_v35 = vmul.f32 %v7416_v2, %v1265_v10  ;;  %v10611_v0 = vld [vmem:[#allocation49_spill] sm:$0xff]  ;;  %v7730_v53 = vpop.permute.xlu0 %1639  ;;  %v10616_v47 = vld [vmem:[#allocation12_spill] sm:$0xff] }
 0x236   :  { %6031 = vmatmul.mubr.msk.bf16.vlgmr.msra.gmra.mrb[8].mxu1 %vm461_vm2, %v6424_v19  ;;  %1134 = vmatpush1.bf16.msra.mxu0 %v1117_v14  ;;  %v1261_v54 = vsel %vm1259_vm5, %v10607_v42, %v10608_v45  ;;  %v1068_v29 = vsel %vm1065_vm4, %v10611_v0, %v7539_v8  ;;  %v1299_v19 = vmul.f32 %v7425_v56, %v1273_v55  ;;  %v10612_v14 = vld [vmem:[#allocation15_spill] sm:$0xff]  ;;  %v1064_v5 = vpop.permute.xlu1 %1063 }
 0x237   :  { %1177 = vmatpush1.bf16.msra.mxu1 %v1119_v48  ;;  %1165 = vmatprep.mubr.bf16.mxu0 %v10565_v40  ;;  %v1459_v10 = vsel %vm1453_vm6, %v10613_v32, %v10612_v14  ;;  %v1072_v42 = vsel %vm1065_vm4, %v7504_v33, %v10611_v0  ;;  %v1122_v45 = vpack.c.bf16 %v1111_v16, %v1107_v3 }
 0x238   :  { %1208 = vmatprep.mubr.bf16.mxu1 %v10565_v40  ;;  %v1106_v8 = vmul.f32 %v7401_v6, %v1080_v37  ;;  %v1112_v48 = vmul.f32 %v7387_v58, %v1073_v1  ;;  %v1069_v55 = vsel %vm1065_vm4, %v10610_v12, %v1064_v5  ;;  %v1081_v20 = vsel %vm1065_vm4, %v1064_v5, %v10609_v21  ;;  %v10614_v12 = vld [vmem:[#allocation14_spill] sm:$0xff]  ;;  %v10615_v1 = vld [vmem:[#allocation31_spill] sm:$0xff] }
 0x239   :  { %2519 = vrot.lane.b32.xlu0 %v7249_v15, %s6462_s21  ;;  %v1109_v33 = vmul.f32 %v7410_v50, %v1068_v29  ;;  %v1110_v3 = vmul.f32 %v7401_v6, %v1081_v20  ;;  %v1113_v16 = vmul.f32 %v7410_v50, %v1069_v55  ;;  %1135 = vmatprep.subr.bf16.mxu0 %v1122_v45  ;;  %v7765_v29 = vpop.permute.xlu0 %1619 }
 0x23a   :  { %2517 = vrot.lane.b32.xlu1 %v7255_v62, %s6462_s21  ;;  %v1294_v37 = vmul.f32 %v7422_v52, %v1260_v34  ;;  %v1458_v21 = vsel %vm1453_vm6, %v10615_v1, %v10614_v12  ;;  %v1298_v0 = vmul.f32 %v7422_v52, %v1261_v54  ;;  %v1108_v5 = vmul.f32 %v7387_v58, %v1072_v42  ;;  %v7771_v6 = vpop.permute.xlu1 %1827 }
 0x23b   :  { %v1295_v20 = vmul.f32 %v7425_v56, %v1272_v57  ;;  %v7769_v45 = vmul.f32 %v7437_v39, %v1459_v10  ;;  %v1121_v55 = vpack.c.bf16 %v1110_v3, %v1106_v8  ;;  %v1124_v34 = vpack.c.bf16 %v1113_v16, %v1109_v33  ;;  %v6425_v57 = vld [vmem:[%s10286_s4 + $0x18] sm:$0xff]  }
 0x23c   :  { %v1311_v50 = vpack.c.bf16 %v7700_v49, %v7678_v7  ;;  %v7779_v54 = vsel %vm1453_vm6, %v10616_v47, %v10615_v1  ;;  %v1123_v42 = vpack.c.bf16 %v1112_v48, %v1108_v5  ;;  %v1312_v58 = vpack.c.bf16 %v1297_v35, %v7681_v41  ;;  %v10617_v7 = vld [vmem:[#allocation51_spill] sm:$0xff]  ;;  %v10618_v41 = vld [vmem:[#allocation33_spill] sm:$0xff] }
 0x23d   :  { %2672 = vrot.lane.b32.xlu0 %v7185_v27, %s6463_s22  ;;  %v1487_v10 = vmul.f32 %v7437_v39, %v1458_v21  ;;  %v1270_v49 = vsel %vm1259_vm5, %v10617_v7, %v7570_v61  ;;  %1136 = vmatpush1.bf16.msra.mxu0 %v1121_v55  ;;  %v1314_v8 = vpack.c.bf16 %v1299_v19, %v1295_v20  ;;  %v10619_v33 = vld [vmem:[#allocation53_spill] sm:$0xff]  ;;  %v7800_v16 = vpop.permute.xlu0 %1627  ;;  %v10623_v20 = vld [vmem:[#allocation52_spill] sm:$0xff] }
 0x23e   :  { %1178 = vmatprep.subr.bf16.mxu1 %v1124_v34  ;;  %v1313_v48 = vpack.c.bf16 %v1298_v0, %v1294_v37  ;;  %v1466_v35 = vsel %vm1453_vm6, %v10618_v41, %v10616_v47  ;;  %v1266_v3 = vsel %vm1259_vm5, %v7570_v61, %v10619_v33  ;;  %1327 = vmatprep.subr.bf16.mxu0 %v1312_v58  ;;  %v10620_v1 = vld [vmem:[#allocation13_spill] sm:$0xff]  ;;  %v10621_v37 = vld [vmem:[#allocation36_spill] sm:$0xff]  ;;  %v1242_v47 = vpop.permute.xlu1 %1241  ;;  %v10622_v58 = vld [vmem:[#allocation54_spill] sm:$0xff] }
 0x23f   :  { %1179 = vmatpush1.bf16.msra.mxu1 %v1123_v42  ;;  %v1463_v19 = vsel %vm1453_vm6, %v10620_v1, %v10613_v32  ;;  %v1467_v21 = vsel %vm1453_vm6, %v10621_v37, %v10620_v1  ;;  %v1506_v0 = vpack.c.bf16 %v7769_v45, %v1487_v10  ;;  %2670 = vrot.lane.b32.xlu1 %v7192_v13, %s6463_s22 }
 0x240   :  { %1370 = vmatprep.subr.bf16.mxu1 %v1314_v8  ;;  %v1300_v61 = vmul.f32 %v7413_v4, %v1270_v49  ;;  %v1267_v5 = vsel %vm1259_vm5, %v1242_v47, %v10622_v58  ;;  %v1271_v32 = vsel %vm1259_vm5, %v10623_v20, %v1242_v47  ;;  %v1301_v45 = vmul.f32 %v7416_v2, %v1266_v3 }
 0x241   :  { %6035 = vmatmul.mubr.msk.bf16.vlgmr.msra.gmra.mrb[8].mxu0 %vm461_vm2, %v6425_v57  ;;  %2680 = vrot.lane.b32.xlu0 %v7203_v18, %s6463_s22  ;;  %v1304_v55 = vmul.f32 %v7413_v4, %v1271_v32  ;;  %v1305_v34 = vmul.f32 %v7416_v2, %v1267_v5  ;;  %v1455_v42 = vsel %vm1453_vm6, %v10612_v14, %v10621_v37  ;;  %v7839_v8 = vpop.permute.xlu0 %1635 }
 0x242   :  { %6036 = vmatmul.mubr.msk.bf16.vlgmr.msra.gmra.mrb[8].mxu1 %vm461_vm2, %v6425_v57  ;;  %1328 = vmatpush1.bf16.msra.mxu0 %v1311_v50  ;;  %v1262_v10 = vsel %vm1259_vm5, %v10619_v33, %v7617_v9  ;;  %v1274_v49 = vsel %vm1259_vm5, %v7617_v9, %v10617_v7  ;;  %v1493_v50 = vmul.f32 %v7457_v36, %v1467_v21  ;;  %v1258_v57 = vpop.permute.xlu1 %1257  ;;  %v10624_v33 = vld [vmem:[#allocation35_spill] sm:$0xff] }
 0x243   :  { %1371 = vmatpush1.bf16.msra.mxu1 %v1313_v48  ;;  %1359 = vmatprep.mubr.bf16.mxu0 %v10565_v40  ;;  %v1315_v14 = vpack.c.bf16 %v1304_v55, %v1300_v61  ;;  %v1316_v3 = vpack.c.bf16 %v1305_v34, %v1301_v45  ;;  %v1652_v9 = vsel %vm1647_vm7, %v10624_v33, %v7279_v22  ;;  %v10625_v7 = vld [vmem:[#allocation39_spill] sm:$0xff] }
 0x244   :  { %1402 = vmatprep.mubr.bf16.mxu1 %v10565_v40  ;;  %2678 = vrot.lane.b32.xlu1 %v7210_v60, %s6463_s22  ;;  %v1653_v48 = vsel %vm1647_vm7, %v10625_v7, %v7281_v17  ;;  %v1263_v1 = vsel %vm1259_vm5, %v10622_v58, %v1258_v57  ;;  %v1275_v37 = vsel %vm1259_vm5, %v1258_v57, %v10623_v20 }
 0x245   :  { %2688 = vrot.lane.b32.xlu0 %v7221_v30, %s6463_s22  ;;  %v1302_v21 = vmul.f32 %v7422_v52, %v1262_v10  ;;  %v1303_v47 = vmul.f32 %v7425_v56, %v1274_v49  ;;  %v1306_v61 = vmul.f32 %v7422_v52, %v1263_v1  ;;  %v1307_v5 = vmul.f32 %v7425_v56, %v1275_v37  ;;  %v7874_v55 = vpop.permute.xlu0 %1643  ;;  %v7913_v37 = vld [vmem:[%s10287_s3 + $0x10] sm:$0xff] }
 0x246   :  { %1329 = vmatprep.subr.bf16.mxu0 %v1316_v3  ;;  %v1454_v58 = vsel %vm1453_vm6, %v10614_v12, %v10618_v41  ;;  %v1489_v32 = vmul.f32 %v7457_v36, %v1466_v35  ;;  %v1490_v20 = vmul.f32 %v7428_v31, %v1463_v19  ;;  %v1492_v45 = vmul.f32 %v7440_v44, %v1455_v42  ;;  %v7882_v57 = vpop.permute.xlu1 %1835  ;;  %v10627_v19 = vld [vmem:[#allocation55_spill] sm:$0xff]  ;;  %v10628_v3 = vld [vmem:[#allocation57_spill] sm:$0xff] }
 0x247   :  { %1330 = vmatpush1.bf16.msra.mxu0 %v1315_v14  ;;  %v7877_v34 = vmul.f32 %v7551_v43, %v1652_v9  ;;  %v7880_v10 = vmul.f32 %v7551_v43, %v1653_v48  ;;  %v1317_v49 = vpack.c.bf16 %v1306_v61, %v1302_v21  ;;  %v1318_v12 = vpack.c.bf16 %v1307_v5, %v1303_v47  ;;  %v6426_v14 = vld [vmem:[%s10286_s4 + $0x28] sm:$0xff]   ;;  %v10632_v61 = vld [vmem:[#allocation18_spill] sm:$0xff] }
 0x248   :  { %1521 = vmatprep.subr.bf16.mxu0 %v1506_v0  ;;  %v1486_v41 = vmul.f32 %v7428_v31, %v7779_v54  ;;  %v7888_v35 = vrot.slane %v7057_v25, %v7528_v23  ;;  %v1464_v42 = vsel %vm1453_vm6, %v10627_v19, %v7649_v59  ;;  %2686 = vrot.lane.b32.xlu1 %v7226_v63, %s6463_s22  ;;  %v10629_v48 = vld [vmem:[#allocation16_spill] sm:$0xff] }
 0x249   :  { %v1488_v0 = vmul.f32 %v7440_v44, %v1454_v58  ;;  %v1460_v25 = vsel %vm1453_vm6, %v7649_v59, %v10628_v3  ;;  %1372 = vmatprep.subr.bf16.mxu1 %v1318_v12  ;;  %v1508_v54 = vpack.c.bf16 %v1493_v50, %v1489_v32  ;;  %2696 = vrot.lane.b32.xlu0 %v7249_v15, %s6463_s22  ;;  %v7922_v59 = vld [vmem:[%s10287_s3 + $0x18] sm:$0xff]  ;;  %v7928_v47 = vpop.permute.xlu0 %1809 }
 0x24a   :  { %10626 = vst [vmem:[#allocation3_spill] sm:$0xff] %v7888_v35  ;;  %v1505_v9 = vpack.c.bf16 %v1490_v20, %v1486_v41  ;;  %v1656_v1 = vsel %vm1647_vm7, %v10629_v48, %v10624_v33  ;;  %v7917_v21 = vrot.slane %v7913_v37, %v7528_v23  ;;  %v7926_v50 = vrot.slane %v7922_v59, %v7528_v23  ;;  %v1436_v32 = vpop.permute.xlu1 %1435  ;;  %v10633_v23 = vld [vmem:[#allocation58_spill] sm:$0xff] }
 0x24b   :  { %1373 = vmatpush1.bf16.msra.mxu1 %v1317_v49  ;;  %v1507_v33 = vpack.c.bf16 %v1492_v45, %v1488_v0  ;;  %v1657_v5 = vsel %vm1647_vm7, %v10632_v61, %v10625_v7  ;;  %v1494_v58 = vmul.f32 %v7428_v31, %v1464_v42  ;;  %v1700_v20 = vpack.c.bf16 %v7880_v10, %v7877_v34  ;;  %v10634_v49 = vld [vmem:[#allocation56_spill] sm:$0xff]  ;;  %v10635_v42 = vld [vmem:[#allocation61_spill] sm:$0xff] }
 0x24c   :  { %10630 = vst [vmem:[#allocation24_spill] sm:$0xff] %v7917_v21  ;;  %10631 = vst [vmem:[#allocation40_spill] sm:$0xff] %v7926_v50  ;;  %1564 = vmatprep.subr.bf16.mxu1 %v1508_v54  ;;  %v1495_v12 = vmul.f32 %v7437_v39, %v1460_v25  ;;  %v1461_v41 = vsel %vm1453_vm6, %v1436_v32, %v10633_v23  ;;  %v1465_v45 = vsel %vm1453_vm6, %v10634_v49, %v1436_v32 }
 0x24d   :  { %6040 = vmatmul.mubr.msk.bf16.vlgmr.msra.gmra.mrb[8].mxu0 %vm461_vm2, %v6426_v14  ;;  %2694 = vrot.lane.b32.xlu1 %v7255_v62, %s6463_s22  ;;  %v1456_v7 = vsel %vm1453_vm6, %v10628_v3, %v7683_v38  ;;  %v1498_v34 = vmul.f32 %v7428_v31, %v1465_v45  ;;  %v1499_v10 = vmul.f32 %v7437_v39, %v1461_v41  ;;  %v7966_v54 = vpop.permute.xlu0 %1817 }
 0x24e   :  { %1522 = vmatpush1.bf16.msra.mxu0 %v1505_v9  ;;  %6041 = vmatmul.mubr.msk.bf16.vlgmr.msra.gmra.mrb[8].mxu1 %vm461_vm2, %v6426_v14  ;;  %v1649_v0 = vsel %vm1647_vm7, %v7281_v17, %v10635_v42  ;;  %v1468_v25 = vsel %vm1453_vm6, %v7683_v38, %v10627_v19  ;;  %v1660_v3 = vsel %vm1647_vm7, %v7730_v53, %v10629_v48  ;;  %v1860_v14 = vsub.s32 7, %v6913_v26  ;;  %v1452_v32 = vpop.permute.xlu1 %1451 }
 0x24f   :  { %1565 = vmatpush1.bf16.msra.mxu1 %v1507_v33  ;;  %1553 = vmatprep.mubr.bf16.mxu0 %v10565_v40  ;;  %v1648_v17 = vsel %vm1647_vm7, %v7279_v22, %v7730_v53  ;;  %v1509_v9 = vpack.c.bf16 %v1498_v34, %v1494_v58  ;;  %v1510_v38 = vpack.c.bf16 %v1499_v10, %v1495_v12 }
 0x250   :  { %1596 = vmatprep.mubr.bf16.mxu1 %v10565_v40  ;;  %2849 = vrot.lane.b32.xlu0 %v7185_v27, %s6464_s23  ;;  %v1661_v19 = vsel %vm1647_vm7, %v10635_v42, %v10632_v61  ;;  %v1496_v48 = vmul.f32 %v7440_v44, %v1456_v7  ;;  %v1457_v33 = vsel %vm1453_vm6, %v10633_v23, %v1452_v32 }
 0x251   :  { %v1469_v22 = vsel %vm1453_vm6, %v1452_v32, %v10634_v49  ;;  %2847 = vrot.lane.b32.xlu1 %v7192_v13, %s6464_s23  ;;  %v1497_v27 = vmul.f32 %v7457_v36, %v1468_v25  ;;  %v1683_v53 = vmul.f32 %v7926_v50, %v1660_v3  ;;  %v1500_v58 = vmul.f32 %v7440_v44, %v1457_v33  ;;  %v1826_v49 = vpop.permute.xlu0 %1825  ;;  %v10640_v33 = vld [vmem:[#allocation75_spill] sm:$0xff] }
 0x252   :  { %v1501_v61 = vmul.f32 %v7457_v36, %v1469_v22  ;;  %1523 = vmatprep.subr.bf16.mxu0 %v1510_v38  ;;  %v1684_v12 = vmul.f32 %v7888_v35, %v1657_v5  ;;  %v1682_v23 = vmul.f32 %v7917_v21, %v1648_v17  ;;  %v7997_v41 = vrot.slane %v7052_v24, %v1860_v14  ;;  %v8001_v7 = vpop.permute.xlu1 %1815 }
 0x253   :  { %1524 = vmatpush1.bf16.msra.mxu0 %v1509_v9  ;;  %v1687_v13 = vmul.f32 %v7926_v50, %v1661_v19  ;;  %v1511_v45 = vpack.c.bf16 %v1500_v58, %v1496_v48  ;;  %v1680_v5 = vmul.f32 %v7888_v35, %v1656_v1  ;;  %v1686_v10 = vmul.f32 %v7917_v21, %v1649_v0 }
 0x254   :  { %10636 = vst [vmem:[#allocation42_spill] sm:$0xff] %v7997_v41  ;;  %1715 = vmatprep.subr.bf16.mxu0 %v1700_v20  ;;  %v1512_v34 = vpack.c.bf16 %v1501_v61, %v1497_v27  ;;  %2857 = vrot.lane.b32.xlu0 %v7203_v18, %s6464_s23  ;;  %v1847_v24 = vsel %vm1841_vm8, %v7659_v11, %v7771_v6  ;;  %v6427_v20 = vld [vmem:[%s10286_s4 + $0x30] sm:$0xff]   ;;  %v6450_v18 = vld [vmem:[%s10287_s3] sm:$0xff] }
 0x255   :  { %v1658_v42 = vsel %vm1647_vm7, %v7765_v29, %v7800_v16  ;;  %2855 = vrot.lane.b32.xlu1 %v7210_v60, %s6464_s23  ;;  %v8023_v1 = vrot.slane %v6450_v18, %v1860_v14  ;;  %v1654_v0 = vsel %vm1647_vm7, %v7800_v16, %v7839_v8  ;;  %v8030_v25 = vrot.slane %v7913_v37, %v1860_v14  ;;  %v1834_v38 = vpop.permute.xlu0 %1833  ;;  %v10641_v27 = vld [vmem:[#allocation68_spill] sm:$0xff] }
 0x256   :  { %1566 = vmatprep.subr.bf16.mxu1 %v1512_v34  ;;  %v1702_v3 = vpack.c.bf16 %v1687_v13, %v1683_v53  ;;  %v1699_v17 = vpack.c.bf16 %v1684_v12, %v1680_v5  ;;  %v1701_v9 = vpack.c.bf16 %v1686_v10, %v1682_v23  ;;  %v8033_v60 = vrot.slane %v7922_v59, %v1860_v14  ;;  %v1630_v48 = vpop.permute.xlu1 %1629 }
 0x257   :  { %10637 = vst [vmem:[#allocation41_spill] sm:$0xff] %v8023_v1  ;;  %10638 = vst [vmem:[#allocation23_spill] sm:$0xff] %v8030_v25  ;;  %v1846_v32 = vsel %vm1841_vm8, %v7966_v54, %v1826_v49  ;;  %1567 = vmatpush1.bf16.msra.mxu1 %v1511_v45  ;;  %v1879_v19 = vmul.f32 %v7997_v41, %v1847_v24  ;;  %v1688_v16 = vmul.f32 %v7888_v35, %v1658_v42 }
 0x258   :  { %10639 = vst [vmem:[#allocation4_spill] sm:$0xff] %v8033_v60  ;;  %v1650_v37 = vsel %vm1647_vm7, %v7839_v8, %v7874_v55  ;;  %1758 = vmatprep.subr.bf16.mxu1 %v1702_v3  ;;  %2865 = vrot.lane.b32.xlu0 %v7221_v30, %s6464_s23  ;;  %v1689_v59 = vmul.f32 %v7551_v43, %v1654_v0 }
 0x259   :  { %v1662_v14 = vsel %vm1647_vm7, %v7874_v55, %v7765_v29  ;;  %v1655_v22 = vsel %vm1647_vm7, %v1630_v48, %v10640_v33  ;;  %v1659_v8 = vsel %vm1647_vm7, %v10641_v27, %v1630_v48  ;;  %6045 = vmatmul.mubr.msk.bf16.vlgmr.msra.gmra.mrb[8].mxu0 %vm461_vm2, %v6427_v20  ;;  %v1875_v53 = vmul.f32 %v7997_v41, %v1846_v32  ;;  %v8070_v12 = vpop.permute.xlu0 %1813 }
 0x25a   :  { %v1692_v30 = vmul.f32 %v7888_v35, %v1659_v8  ;;  %v1693_v58 = vmul.f32 %v7551_v43, %v1655_v22  ;;  %1716 = vmatpush1.bf16.msra.mxu0 %v1699_v17  ;;  %6046 = vmatmul.mubr.msk.bf16.vlgmr.msra.gmra.mrb[8].mxu1 %vm461_vm2, %v6427_v20  ;;  %v1690_v29 = vmul.f32 %v7917_v21, %v1650_v37  ;;  %v1646_v45 = vpop.permute.xlu1 %1645 }
 0x25b   :  { %v1855_v55 = vsel %vm1841_vm8, %v7882_v57, %v7546_v51  ;;  %v1854_v61 = vsel %vm1841_vm8, %v1834_v38, %v7928_v47  ;;  %1759 = vmatpush1.bf16.msra.mxu1 %v1701_v9  ;;  %1747 = vmatprep.mubr.bf16.mxu0 %v10565_v40  ;;  %v1850_v23 = vsel %vm1841_vm8, %v7928_v47, %v7966_v54 }
 0x25c   :  { %v1703_v13 = vpack.c.bf16 %v1692_v30, %v1688_v16  ;;  %v1704_v34 = vpack.c.bf16 %v1693_v58, %v1689_v59  ;;  %1790 = vmatprep.mubr.bf16.mxu1 %v10565_v40  ;;  %2863 = vrot.lane.b32.xlu1 %v7226_v63, %s6464_s23  ;;  %v1691_v5 = vmul.f32 %v7926_v50, %v1662_v14 }
 0x25d   :  { %v1842_v10 = vsel %vm1841_vm8, %v1826_v49, %v1834_v38  ;;  %v1651_v24 = vsel %vm1647_vm7, %v10640_v33, %v1646_v45  ;;  %v1663_v47 = vsel %vm1647_vm7, %v1646_v45, %v10641_v27  ;;  %2873 = vrot.lane.b32.xlu0 %v7249_v15, %s6464_s23  ;;  %v1877_v54 = vmul.f32 %v8033_v60, %v1854_v61  ;;  %v1822_v3 = vpop.permute.xlu0 %1821  ;;  %v8127_v33 = vld [vmem:[%s10289_s1] sm:$0xff] }
 0x25e   :  { %v1694_v63 = vmul.f32 %v7917_v21, %v1651_v24  ;;  %v1695_v42 = vmul.f32 %v7926_v50, %v1663_v47  ;;  %1717 = vmatprep.subr.bf16.mxu0 %v1704_v34  ;;  %v1894_v20 = vpack.c.bf16 %v1879_v19, %v1875_v53  ;;  %v1851_v49 = vsel %vm1841_vm8, %v7546_v51, %v7659_v11  ;;  %v1832_v32 = vpop.permute.xlu1 %1831  ;;  %v6428_v51 = vld [vmem:[%s10286_s4 + $0x38] sm:$0xff]   ;;  %v8141_v53 = vld [vmem:[%s10289_s1 + $0x28] sm:$0xff] }
 0x25f   :  { %v1843_v18 = vsel %vm1841_vm8, %v7771_v6, %v7882_v57  ;;  %v1881_v15 = vmul.f32 %v8033_v60, %v1855_v55  ;;  %v1874_v0 = vmul.f32 %v8023_v1, %v1850_v23  ;;  %1718 = vmatpush1.bf16.msra.mxu0 %v1703_v13  ;;  %v1876_v17 = vmul.f32 %v8030_v25, %v1842_v10  ;;  %v8113_v6 = vld [vmem:[%s10289_s1 + $0x20] sm:$0xff] }
 0x260   :  { %v1705_v9 = vpack.c.bf16 %v1694_v63, %v1690_v29  ;;  %1909 = vmatprep.subr.bf16.mxu0 %v1894_v20  ;;  %v1706_v38 = vpack.c.bf16 %v1695_v42, %v1691_v5  ;;  %2871 = vrot.lane.b32.xlu1 %v7255_v62, %s6464_s23  ;;  %v1878_v11 = vmul.f32 %v8023_v1, %v1851_v49  ;;  %v8175_v42 = vld [vmem:[%s10289_s1 + $0x30] sm:$0xff]  ;;  %v6429_v49 = vld [vmem:[%s10286_s4 + $0x40] sm:$0xff]  }
 0x261   :  { %3026 = vrot.lane.b32.xlu0 %v8113_v6, %s6465_s24  ;;  %v1880_v57 = vmul.f32 %v8030_v25, %v1843_v18  ;;  %v1896_v19 = vpack.c.bf16 %v1881_v15, %v1877_v54  ;;  %v1852_v62 = vsel %vm1841_vm8, %v8070_v12, %v1822_v3  ;;  %v1830_v16 = vpop.permute.xlu0 %1829  ;;  %v8166_v54 = vld [vmem:[%s10289_s1 + $0x8] sm:$0xff]  ;;  %v8185_v18 = vld [vmem:[%s10289_s1 + $0x10] sm:$0xff]  ;;  %v8192_v15 = vld [vmem:[%s10289_s1 + $0x38] sm:$0xff] }
 0x262   :  { %1760 = vmatprep.subr.bf16.mxu1 %v1706_v38  ;;  %v1893_v37 = vpack.c.bf16 %v1878_v11, %v1874_v0  ;;  %v1848_v59 = vsel %vm1841_vm8, %v1822_v3, %v1830_v16  ;;  %v1824_v14 = vpop.permute.xlu1 %1823  ;;  %v1882_v30 = vmul.f32 %v8023_v1, %v1852_v62  ;;  %v8200_v0 = vld [vmem:[%s10289_s1 + $0x18] sm:$0xff] }
 0x263   :  { %1761 = vmatpush1.bf16.msra.mxu1 %v1705_v9  ;;  %v1895_v48 = vpack.c.bf16 %v1880_v57, %v1876_v17  ;;  %v1883_v22 = vmul.f32 %v7997_v41, %v1848_v59  ;;  %v1849_v27 = vsel %vm1841_vm8, %v1824_v14, %v1832_v32  ;;  %v1853_v8 = vsel %vm1841_vm8, %v8001_v7, %v1824_v14 }
 0x264   :  { %1952 = vmatprep.subr.bf16.mxu1 %v1896_v19  ;;  %3024 = vrot.lane.b32.xlu1 %v8127_v33, %s6465_s24  ;;  %v1886_v58 = vmul.f32 %v8023_v1, %v1853_v8  ;;  %v1887_v29 = vmul.f32 %v7997_v41, %v1849_v27 }
 0x265   :  { %6050 = vmatmul.mubr.msk.bf16.vlgmr.msra.gmra.mrb[8].mxu0 %vm461_vm2, %v6428_v51  ;;  %3034 = vrot.lane.b32.xlu0 %v8141_v53, %s6465_s24  ;;  %v1838_v55 = vpop.permute.xlu0 %1837 }
 0x266   :  { %1910 = vmatpush1.bf16.msra.mxu0 %v1893_v37  ;;  %6051 = vmatmul.mubr.msk.bf16.vlgmr.msra.gmra.mrb[8].mxu1 %vm461_vm2, %v6428_v51  ;;  %v1897_v61 = vpack.c.bf16 %v1886_v58, %v1882_v30  ;;  %v1844_v23 = vsel %vm1841_vm8, %v1830_v16, %v1838_v55  ;;  %v1856_v13 = vsel %vm1841_vm8, %v1838_v55, %v8070_v12  ;;  %v1840_v45 = vpop.permute.xlu1 %1839 }
 0x267   :  { %1953 = vmatpush1.bf16.msra.mxu1 %v1895_v48  ;;  %1941 = vmatprep.mubr.bf16.mxu0 %v10565_v40  ;;  %v1898_v34 = vpack.c.bf16 %v1887_v29, %v1883_v22  ;;  %v1884_v5 = vmul.f32 %v8030_v25, %v1844_v23  ;;  %v1885_v10 = vmul.f32 %v8033_v60, %v1856_v13 }
 0x268   :  { %1984 = vmatprep.mubr.bf16.mxu1 %v10565_v40  ;;  %v1845_v24 = vsel %vm1841_vm8, %v1832_v32, %v1840_v45  ;;  %v1857_v47 = vsel %vm1841_vm8, %v1840_v45, %v8001_v7  ;;  %3032 = vrot.lane.b32.xlu1 %v8166_v54, %s6465_s24 }
 0x269   :  { %v1888_v12 = vmul.f32 %v8030_v25, %v1845_v24  ;;  %v1889_v63 = vmul.f32 %v8033_v60, %v1857_v47  ;;  %1911 = vmatprep.subr.bf16.mxu0 %v1898_v34  ;;  %3042 = vrot.lane.b32.xlu0 %v8175_v42, %s6465_s24 }
 0x26a   :  { %1912 = vmatpush1.bf16.msra.mxu0 %v1897_v61 }
 0x26b   :  { %v1899_v7 = vpack.c.bf16 %v1888_v12, %v1884_v5  ;;  %v1900_v20 = vpack.c.bf16 %v1889_v63, %v1885_v10 }
 0x26c   :  { %3040 = vrot.lane.b32.xlu1 %v8185_v18, %s6465_s24 }
 0x26d   :  { %1954 = vmatprep.subr.bf16.mxu1 %v1900_v20  ;;  %3050 = vrot.lane.b32.xlu0 %v8192_v15, %s6465_s24 }
 0x26e   :  { %1955 = vmatpush1.bf16.msra.mxu1 %v1899_v7 }
 0x270   :  { %3048 = vrot.lane.b32.xlu1 %v8200_v0, %s6465_s24 }
 0x271   :  { %6055 = vmatmul.mubr.msk.bf16.vlgmr.msra.gmra.mrb[8].mxu0 %vm461_vm2, %v6429_v49 }
 0x272   :  { %6056 = vmatmul.mubr.msk.bf16.vlgmr.msra.gmra.mrb[8].mxu1 %vm461_vm2, %v6429_v49  ;;  %2164 = vmatprep.mubr.bf16.mxu0 %v10565_v40 }
 0x273   :  { %2207 = vmatprep.mubr.bf16.mxu1 %v10565_v40 }
 0x276   :  { %v8207_v3 = vpop.permute.xlu0 %2007 }
 0x277   :  { %v8209_v17 = vpop.permute.xlu1 %2012 }
 0x27a   :  { %v8211_v9 = vpop.permute.xlu0 %2056 }
 0x27b   :  { %v8213_v32 = vpop.permute.xlu1 %2054 }
 0x27e   :  { %v8215_v38 = vpop.permute.xlu0 %2064 }
 0x27f   :  { %v8217_v51 = vpop.permute.xlu1 %2062 }
 0x282   :  { %v8219_v11 = vpop.permute.xlu0 %2072 }
 0x283   :  { %v8221_v57 = vpop.permute.xlu1 %2070 }
 0x286   :  { %v8223_v19 = vpop.permute.xlu0 %2080 }
 0x287   :  { %v8225_v62 = vpop.permute.xlu1 %2078 }
 0x28a   :  { %v8227_v16 = vpop.permute.xlu0 %2318 }
 0x28b   :  { %v8229_v48 = vpop.permute.xlu1 %2316 }
 0x28e   :  { %v8251_v24 = vpop.permute.xlu0 %2326 }
 0x28f   :  { %v8245_v5 = vpop.permute.xlu1 %2324 }
 0x292   :  { %v8261_v12 = vpop.permute.xlu0 %2334 }
 0x293   :  { %v8257_v47 = vpop.permute.xlu1 %2332 }
 0x296   :  { %v8271_v7 = vpop.permute.xlu0 %2342 }
 0x297   :  { %v8267_v63 = vpop.permute.xlu1 %2340 }
 0x29a   :  { %v8281_v49 = vpop.permute.xlu0 %2495 }
 0x29b   :  { %v8277_v20 = vpop.permute.xlu1 %2493 }
 0x344   :  { %v1943_v37 = vpop.f32.mrb[8].mxu0 }
 0x345   :  { %v2015_v59 = vadd.f32 %v8207_v3, %v1943_v37  ;;  %v1945_v14 = vpop.f32.mrb[9].mxu0  ;;  %v1986_v22 = vpop.f32.mrb[8].mxu1 }
 0x346   :  { %v1988_v27 = vpop.f32.mrb[9].mxu1  ;;  %v1947_v8 = vpop.f32.mrb[10].mxu0  ;;  %v2017_v58 = vadd.f32 %v8207_v3, %v1986_v22 }
 0x347   :  { %v8232_v30 = vmax.f32 %v2015_v59, 0.0  ;;  %v2019_v29 = vadd.f32 %v8209_v17, %v1947_v8  ;;  %v1949_v55 = vpop.f32.mrb[11].mxu0  ;;  %v1990_v61 = vpop.f32.mrb[10].mxu1  ;;  %v2018_v41 = vadd.f32 %v8207_v3, %v1988_v27 }
 0x348   :  { %v1992_v23 = vpop.f32.mrb[11].mxu1  ;;  %v2021_v45 = vadd.f32 %v8209_v17, %v1990_v61  ;;  %v8241_v34 = vmax.f32 %v2017_v58, 0.0  ;;  %v8287_v37 = vpop.permute.xlu1 %2501  ;;  %v2020_v60 = vadd.f32 %v8209_v17, %v1949_v55 }
 0x349   :  { %v8236_v13 = vmax.f32 %v2019_v29, 0.0  ;;  %2050 = vrot.lane.b32.xlu1 %v8232_v30, %s6460_s20  ;;  %v8291_v59 = vpop.permute.xlu0 %2503  ;;  %v2022_v50 = vadd.f32 %v8209_v17, %v1992_v23  ;;  %v8341_v21 = vmax.f32 %v2018_v41, 0.0 }
 0x34a   :  { %v8247_v10 = vmax.f32 %v2021_v45, 0.0  ;;  %v2016_v45 = vadd.f32 %v8207_v3, %v1945_v14  ;;  %v8334_v14 = vmax.f32 %v2020_v60, 0.0 }
 0x34b   :  { %2052 = vrot.lane.b32.xlu0 %v8236_v13, %s6460_s20  ;;  %v8345_v3 = vmax.f32 %v2022_v50, 0.0 }
 0x34c   :  { %v8297_v22 = vpop.permute.xlu1 %2509  ;;  %v8327_v25 = vmax.f32 %v2016_v45, 0.0 }
 0x34d   :  { %2066 = vrot.lane.b32.xlu1 %v8241_v34, %s6460_s20  ;;  %10642 = vst [vmem:[#allocation43_spill] sm:$0xff] %v8297_v22  ;;  %v8301_v8 = vpop.permute.xlu0 %2511 }
 0x34e   :  { %10643 = vst [vmem:[#allocation6_spill] sm:$0xff] %v8301_v8  ;;  %v10690_v8 = vld [vmem:[#allocation21_spill] sm:$0xff] }
 0x34f   :  { %2068 = vrot.lane.b32.xlu0 %v8247_v10, %s6460_s20 }
 0x350   :  { %v8307_v58 = vpop.permute.xlu1 %2517 }
 0x351   :  { %2312 = vrot.lane.b32.xlu1 %v8232_v30, %s6461_s0  ;;  %10644 = vst [vmem:[#allocation25_spill] sm:$0xff] %v8307_v58  ;;  %v8311_v29 = vpop.permute.xlu0 %2519  ;;  %v2097_v58 = vsel %vm397_vm0, %v8223_v19, %v8211_v9 }
 0x352   :  { %10645 = vst [vmem:[#allocation7_spill] sm:$0xff] %v8311_v29 }
 0x353   :  { %2314 = vrot.lane.b32.xlu0 %v8236_v13, %s6461_s0 }
 0x354   :  { %v8317_v61 = vpop.permute.xlu1 %2670 }
 0x355   :  { %2328 = vrot.lane.b32.xlu1 %v8241_v34, %s6461_s0  ;;  %10646 = vst [vmem:[#allocation26_spill] sm:$0xff] %v8317_v61  ;;  %v8322_v26 = vpop.permute.xlu0 %2672 }
 0x356   :  { %10647 = vst [vmem:[#allocation5_spill] sm:$0xff] %v8322_v26 }
 0x357   :  { %2330 = vrot.lane.b32.xlu0 %v8247_v10, %s6461_s0 }
 0x358   :  { %v8332_v1 = vpop.permute.xlu1 %2678 }
 0x359   :  { %2489 = vrot.lane.b32.xlu1 %v8232_v30, %s6462_s21  ;;  %10648 = vst [vmem:[#allocation28_spill] sm:$0xff] %v8332_v1  ;;  %v8339_v55 = vpop.permute.xlu0 %2680  ;;  %v2092_v1 = vsel %vm397_vm0, %v8213_v32, %v8217_v51 }
 0x35a   :  { %10649 = vst [vmem:[#allocation44_spill] sm:$0xff] %v8339_v55  ;;  %v2089_v55 = vsel %vm397_vm0, %v8215_v38, %v8219_v11 }
 0x35b   :  { %2491 = vrot.lane.b32.xlu0 %v8236_v13, %s6462_s21 }
 0x35c   :  { %v8349_v27 = vpop.permute.xlu1 %2686 }
 0x35d   :  { %2505 = vrot.lane.b32.xlu1 %v8241_v34, %s6462_s21  ;;  %10650 = vst [vmem:[#allocation46_spill] sm:$0xff] %v8349_v27  ;;  %v8353_v60 = vpop.permute.xlu0 %2688 }
 0x35e   :  { %10651 = vst [vmem:[#allocation45_spill] sm:$0xff] %v8353_v60 }
 0x35f   :  { %2507 = vrot.lane.b32.xlu0 %v8247_v10, %s6462_s21 }
 0x360   :  { %v8359_v41 = vpop.permute.xlu1 %2694 }
 0x361   :  { %2666 = vrot.lane.b32.xlu1 %v8232_v30, %s6463_s22  ;;  %10652 = vst [vmem:[#allocation10_spill] sm:$0xff] %v8359_v41  ;;  %v8363_v50 = vpop.permute.xlu0 %2696 }
 0x362   :  { %10653 = vst [vmem:[#allocation27_spill] sm:$0xff] %v8363_v50 }
 0x363   :  { %2668 = vrot.lane.b32.xlu0 %v8236_v13, %s6463_s22 }
 0x364   :  { %v8369_v17 = vpop.permute.xlu1 %2847 }
 0x365   :  { %2682 = vrot.lane.b32.xlu1 %v8241_v34, %s6463_s22  ;;  %10654 = vst [vmem:[#allocation8_spill] sm:$0xff] %v8369_v17  ;;  %v8373_v23 = vpop.permute.xlu0 %2849 }
 0x366   :  { %10655 = vst [vmem:[#allocation30_spill] sm:$0xff] %v8373_v23 }
 0x367   :  { %2684 = vrot.lane.b32.xlu0 %v8247_v10, %s6463_s22 }
 0x368   :  { %v8379_v45 = vpop.permute.xlu1 %2855 }
 0x369   :  { %2843 = vrot.lane.b32.xlu1 %v8232_v30, %s6464_s23  ;;  %10656 = vst [vmem:[#allocation9_spill] sm:$0xff] %v8379_v45  ;;  %v8381_v35 = vpop.permute.xlu0 %2857 }
 0x36a   :  { %10657 = vst [vmem:[#allocation47_spill] sm:$0xff] %v8381_v35 }
 0x36b   :  { %2845 = vrot.lane.b32.xlu0 %v8236_v13, %s6464_s23 }
 0x36c   :  { %v8387_v43 = vpop.permute.xlu1 %2863 }
 0x36d   :  { %2859 = vrot.lane.b32.xlu1 %v8241_v34, %s6464_s23  ;;  %10658 = vst [vmem:[#allocation29_spill] sm:$0xff] %v8387_v43  ;;  %v8391_v44 = vpop.permute.xlu0 %2865 }
 0x36e   :  { %10659 = vst [vmem:[#allocation11_spill] sm:$0xff] %v8391_v44 }
 0x36f   :  { %2861 = vrot.lane.b32.xlu0 %v8247_v10, %s6464_s23 }
 0x370   :  { %v8397_v36 = vpop.permute.xlu1 %2871 }
 0x371   :  { %3020 = vrot.lane.b32.xlu1 %v8232_v30, %s6465_s24  ;;  %10660 = vst [vmem:[#allocation32_spill] sm:$0xff] %v8397_v36  ;;  %v8401_v39 = vpop.permute.xlu0 %2873 }
 0x372   :  { %10661 = vst [vmem:[#allocation48_spill] sm:$0xff] %v8401_v39 }
 0x373   :  { %3022 = vrot.lane.b32.xlu0 %v8236_v13, %s6465_s24 }
 0x374   :  { %v8407_v31 = vpop.permute.xlu1 %3024 }
 0x375   :  { %3036 = vrot.lane.b32.xlu1 %v8241_v34, %s6465_s24  ;;  %10662 = vst [vmem:[#allocation50_spill] sm:$0xff] %v8407_v31  ;;  %v8411_v52 = vpop.permute.xlu0 %3026 }
 0x376   :  { %10663 = vst [vmem:[#allocation49_spill] sm:$0xff] %v8411_v52 }
 0x377   :  { %3038 = vrot.lane.b32.xlu0 %v8247_v10, %s6465_s24 }
 0x378   :  { %v8417_v56 = vpop.permute.xlu1 %3032 }
 0x379   :  { %3197 = vrot.lane.b32.xlu1 %v8232_v30, %s6466_s25  ;;  %10664 = vst [vmem:[#allocation15_spill] sm:$0xff] %v8417_v56  ;;  %v8421_v36 = vpop.permute.xlu0 %3034 }
 0x37a   :  { %10665 = vst [vmem:[#allocation34_spill] sm:$0xff] %v8421_v36 }
 0x37b   :  { %3199 = vrot.lane.b32.xlu0 %v8236_v13, %s6466_s25 }
 0x37c   :  { %v8427_v31 = vpop.permute.xlu1 %3040 }
 0x37d   :  { %2058 = vrot.lane.b32.xlu1 %v8327_v25, %s6460_s20  ;;  %10666 = vst [vmem:[#allocation14_spill] sm:$0xff] %v8427_v31  ;;  %v8431_v52 = vpop.permute.xlu0 %3042 }
 0x37e   :  { %10667 = vst [vmem:[#allocation31_spill] sm:$0xff] %v8431_v52 }
 0x37f   :  { %2060 = vrot.lane.b32.xlu0 %v8334_v14, %s6460_s20 }
 0x380   :  { %v8437_v56 = vpop.permute.xlu1 %3048 }
 0x381   :  { %2074 = vrot.lane.b32.xlu1 %v8341_v21, %s6460_s20  ;;  %10668 = vst [vmem:[#allocation12_spill] sm:$0xff] %v8437_v56  ;;  %v8441_v36 = vpop.permute.xlu0 %3050 }
 0x382   :  { %10669 = vst [vmem:[#allocation51_spill] sm:$0xff] %v8441_v36 }
 0x383   :  { %2076 = vrot.lane.b32.xlu0 %v8345_v3, %s6460_s20 }
 0x385   :  { %3213 = vrot.lane.b32.xlu1 %v8241_v34, %s6466_s25 }
 0x387   :  { %3215 = vrot.lane.b32.xlu0 %v8247_v10, %s6466_s25 }
 0x389   :  { %2320 = vrot.lane.b32.xlu1 %v8327_v25, %s6461_s0 }
 0x38b   :  { %3203 = vrot.lane.b32.xlu0 %v8113_v6, %s6466_s25 }
 0x38d   :  { %2336 = vrot.lane.b32.xlu1 %v8341_v21, %s6461_s0 }
 0x38f   :  { %3211 = vrot.lane.b32.xlu0 %v8141_v53, %s6466_s25 }
 0x391   :  { %2497 = vrot.lane.b32.xlu1 %v8327_v25, %s6462_s21 }
 0x393   :  { %3219 = vrot.lane.b32.xlu0 %v8175_v42, %s6466_s25 }
 0x395   :  { %2513 = vrot.lane.b32.xlu1 %v8341_v21, %s6462_s21 }
 0x397   :  { %2322 = vrot.lane.b32.xlu0 %v8334_v14, %s6461_s0 }
 0x399   :  { %2674 = vrot.lane.b32.xlu1 %v8327_v25, %s6463_s22 }
 0x39b   :  { %2338 = vrot.lane.b32.xlu0 %v8345_v3, %s6461_s0 }
 0x39d   :  { %2690 = vrot.lane.b32.xlu1 %v8341_v21, %s6463_s22 }
 0x39f   :  { %3227 = vrot.lane.b32.xlu0 %v8192_v15, %s6466_s25 }
 0x3a1   :  { %2851 = vrot.lane.b32.xlu1 %v8327_v25, %s6464_s23 }
 0x3a3   :  { %2499 = vrot.lane.b32.xlu0 %v8334_v14, %s6462_s21 }
 0x3a5   :  { %2867 = vrot.lane.b32.xlu1 %v8341_v21, %s6464_s23 }
 0x3a7   :  { %2515 = vrot.lane.b32.xlu0 %v8345_v3, %s6462_s21 }
 0x3a9   :  { %3028 = vrot.lane.b32.xlu1 %v8327_v25, %s6465_s24 }
 0x3ab   :  { %3376 = vrot.lane.b32.xlu0 %v8236_v13, %s6467_s30 }
 0x3ad   :  { %3044 = vrot.lane.b32.xlu1 %v8341_v21, %s6465_s24 }
 0x3af   :  { %2676 = vrot.lane.b32.xlu0 %v8334_v14, %s6463_s22 }
 0x3b1   :  { %3205 = vrot.lane.b32.xlu1 %v8327_v25, %s6466_s25 }
 0x3b3   :  { %2692 = vrot.lane.b32.xlu0 %v8345_v3, %s6463_s22 }
 0x3b5   :  { %3221 = vrot.lane.b32.xlu1 %v8341_v21, %s6466_s25 }
 0x3b7   :  { %3392 = vrot.lane.b32.xlu0 %v8247_v10, %s6467_s30 }
 0x3b9   :  { %3201 = vrot.lane.b32.xlu1 %v8127_v33, %s6466_s25 }
 0x3bb   :  { %v8445_v31 = vpop.permute.xlu1 %2050  ;;  %2853 = vrot.lane.b32.xlu0 %v8334_v14, %s6464_s23 }
 0x3bd   :  { %3209 = vrot.lane.b32.xlu1 %v8166_v54, %s6466_s25  ;;  %v8451_v52 = vpop.permute.xlu0 %2052 }
 0x3bf   :  { %v8453_v39 = vpop.permute.xlu1 %2066  ;;  %2869 = vrot.lane.b32.xlu0 %v8345_v3, %s6464_s23 }
 0x3c1   :  { %3217 = vrot.lane.b32.xlu1 %v8185_v18, %s6466_s25  ;;  %v8459_v56 = vpop.permute.xlu0 %2068 }
 0x3c3   :  { %v8461_v36 = vpop.permute.xlu1 %2312  ;;  %3380 = vrot.lane.b32.xlu0 %v8113_v6, %s6467_s30 }
 0x3c5   :  { %3225 = vrot.lane.b32.xlu1 %v8200_v0, %s6466_s25  ;;  %v8467_v2 = vpop.permute.xlu0 %2314 }
 0x3c7   :  { %v8469_v4 = vpop.permute.xlu1 %2328  ;;  %3030 = vrot.lane.b32.xlu0 %v8334_v14, %s6465_s24 }
 0x3c9   :  { %3374 = vrot.lane.b32.xlu1 %v8232_v30, %s6467_s30  ;;  %v8475_v17 = vpop.permute.xlu0 %2330 }
 0x3cb   :  { %v8477_v45 = vpop.permute.xlu1 %2489  ;;  %3046 = vrot.lane.b32.xlu0 %v8345_v3, %s6465_s24 }
 0x3cc   :  { %10670 = vst [vmem:[#allocation33_spill] sm:$0xff] %v8477_v45 }
 0x3cd   :  { %3382 = vrot.lane.b32.xlu1 %v8327_v25, %s6467_s30  ;;  %v8483_v43 = vpop.permute.xlu0 %2491 }
 0x3ce   :  { %10671 = vst [vmem:[#allocation53_spill] sm:$0xff] %v8483_v43 }
 0x3cf   :  { %v8485_v44 = vpop.permute.xlu1 %2505  ;;  %3388 = vrot.lane.b32.xlu0 %v8141_v53, %s6467_s30 }
 0x3d0   :  { %10672 = vst [vmem:[#allocation13_spill] sm:$0xff] %v8485_v44  ;;  %v2085_v44 = vsel %vm397_vm0, %v8219_v11, %v8223_v19  ;;  %v2088_v11 = vsel %vm397_vm0, %v8217_v51, %v8221_v57  ;;  %v2096_v51 = vsel %vm397_vm0, %v8225_v62, %v8213_v32 }
 0x3d1   :  { %3390 = vrot.lane.b32.xlu1 %v8241_v34, %s6467_s30  ;;  %v8491_v23 = vpop.permute.xlu0 %2507 }
 0x3d2   :  { %10673 = vst [vmem:[#allocation36_spill] sm:$0xff] %v8491_v23 }
 0x3d3   :  { %v8493_v35 = vpop.permute.xlu1 %2666  ;;  %3207 = vrot.lane.b32.xlu0 %v8334_v14, %s6466_s25 }
 0x3d4   :  { %10674 = vst [vmem:[#allocation54_spill] sm:$0xff] %v8493_v35 }
 0x3d5   :  { %3398 = vrot.lane.b32.xlu1 %v8341_v21, %s6467_s30  ;;  %v8499_v41 = vpop.permute.xlu0 %2668 }
 0x3d6   :  { %10675 = vst [vmem:[#allocation52_spill] sm:$0xff] %v8499_v41 }
 0x3d7   :  { %v8501_v50 = vpop.permute.xlu1 %2682  ;;  %3223 = vrot.lane.b32.xlu0 %v8345_v3, %s6466_s25 }
 0x3d8   :  { %10676 = vst [vmem:[#allocation35_spill] sm:$0xff] %v8501_v50 }
 0x3d9   :  { %3378 = vrot.lane.b32.xlu1 %v8127_v33, %s6467_s30  ;;  %v8507_v27 = vpop.permute.xlu0 %2684 }
 0x3da   :  { %10677 = vst [vmem:[#allocation39_spill] sm:$0xff] %v8507_v27 }
 0x3db   :  { %v8509_v60 = vpop.permute.xlu1 %2843  ;;  %3396 = vrot.lane.b32.xlu0 %v8175_v42, %s6467_s30 }
 0x3dc   :  { %10678 = vst [vmem:[#allocation55_spill] sm:$0xff] %v8509_v60 }
 0x3dd   :  { %3386 = vrot.lane.b32.xlu1 %v8166_v54, %s6467_s30  ;;  %v8515_v35 = vpop.permute.xlu0 %2845 }
 0x3de   :  { %10679 = vst [vmem:[#allocation57_spill] sm:$0xff] %v8515_v35  ;;  %v3551_v35 = vld [vmem:[%s10291_s7] sm:$0xff] }
 0x3df   :  { %v8517_v41 = vpop.permute.xlu1 %2859  ;;  %3384 = vrot.lane.b32.xlu0 %v8334_v14, %s6467_s30 }
 0x3e0   :  { %10680 = vst [vmem:[#allocation16_spill] sm:$0xff] %v8517_v41 }
 0x3e1   :  { %3394 = vrot.lane.b32.xlu1 %v8185_v18, %s6467_s30  ;;  %v8523_v50 = vpop.permute.xlu0 %2861 }
 0x3e2   :  { %10681 = vst [vmem:[#allocation18_spill] sm:$0xff] %v8523_v50 }
 0x3e3   :  { %v8525_v27 = vpop.permute.xlu1 %3020  ;;  %3400 = vrot.lane.b32.xlu0 %v8345_v3, %s6467_s30 }
 0x3e4   :  { %10682 = vst [vmem:[#allocation58_spill] sm:$0xff] %v8525_v27  ;;  %v3552_v27 = vld [vmem:[%s10291_s7 + $0x8] sm:$0xff] }
 0x3e5   :  { %3402 = vrot.lane.b32.xlu1 %v8200_v0, %s6467_s30  ;;  %v8531_v60 = vpop.permute.xlu0 %3022 }
 0x3e6   :  { %10683 = vst [vmem:[#allocation56_spill] sm:$0xff] %v8531_v60 }
 0x3e7   :  { %v8536_v41 = vpop.permute.xlu1 %3036  ;;  %3404 = vrot.lane.b32.xlu0 %v8192_v15, %s6467_s30 }
 0x3e8   :  { %10684 = vst [vmem:[#allocation61_spill] sm:$0xff] %v8536_v41  ;;  %v2093_v41 = vsel %vm397_vm0, %v8211_v9, %v8215_v38 }
 0x3e9   :  { %3555 = vperm.xlu1 %6372, %v3551_v35   ;;  %v8543_v50 = vpop.permute.xlu0 %3038 }
 0x3ea   :  { %10685 = vst [vmem:[#allocation75_spill] sm:$0xff] %v8543_v50  ;;  %v10688_v50 = vld [vmem:[#allocation37_spill] sm:$0xff] }
 0x3eb   :  { %v8545_v61 = vpop.permute.xlu1 %3197  ;;  %3560 = vperm.xlu0 %6371, %v3552_v27  }
 0x3ec   :  { %10686 = vst [vmem:[#allocation68_spill] sm:$0xff] %v8545_v61  ;;  %v2111_v61 = vmul.f32 %v2093_v41, %v10688_v50  ;;  %v2084_v41 = vsel %vm397_vm0, %v8221_v57, %v8225_v62 }
 0x3ed   :  { %v8547_v60 = vpop.permute.xlu0 %3199 }
 0x3ee   :  { %10687 = vst [vmem:[#allocation82_spill] sm:$0xff] %v8547_v60  ;;  %v2107_v60 = vmul.f32 %v2092_v1, %v10688_v50 }
 0x3ef   :  { %v2059_v26 = vpop.permute.xlu1 %2058 }
 0x3f0   :  { %v2090_v35 = vsel %vm397_vm0, %v8445_v31, %v2059_v26  ;;  %v2086_v57 = vsel %vm397_vm0, %v2059_v26, %v8453_v39 }
 0x3f1   :  { %v2061_v27 = vpop.permute.xlu0 %2060  ;;  %v2099_v1 = vmul.f32 %v2090_v35, %v10688_v50 }
 0x3f2   :  { %v2091_v23 = vsel %vm397_vm0, %v8451_v52, %v2061_v27  ;;  %v2087_v38 = vsel %vm397_vm0, %v2061_v27, %v8459_v56 }
 0x3f3   :  { %v2103_v43 = vmul.f32 %v2091_v23, %v10688_v50  ;;  %v2075_v22 = vpop.permute.xlu1 %2074  ;;  %v10689_v23 = vld [vmem:[#allocation20_spill] sm:$0xff]  ;;  %v2104_v46 = vmul.f32 %v2087_v38, %v10690_v8 }
 0x3f4   :  { %v2082_v35 = vsel %vm397_vm0, %v8453_v39, %v2075_v22  ;;  %v2094_v27 = vsel %vm397_vm0, %v2075_v22, %v8445_v31  ;;  %v2113_v50 = vmul.f32 %v2085_v44, %v10689_v23  ;;  %v2109_v29 = vmul.f32 %v2084_v41, %v10689_v23  ;;  %v10691_v22 = vld [vmem:[#allocation38_spill] sm:$0xff] }
 0x3f5   :  { %v2077_v9 = vpop.permute.xlu0 %2076  ;;  %v2117_v19 = vpack.c.bf16 %v2103_v43, %v2099_v1  ;;  %v2098_v32 = vmul.f32 %v2094_v27, %v10691_v22  ;;  %v2101_v62 = vmul.f32 %v2082_v35, %v10689_v23  ;;  %v2100_v41 = vmul.f32 %v2086_v57, %v10690_v8 }
 0x3f6   :  { %v2083_v31 = vsel %vm397_vm0, %v8459_v56, %v2077_v9  ;;  %v2095_v44 = vsel %vm397_vm0, %v2077_v9, %v8451_v52  ;;  %v2110_v1 = vmul.f32 %v2097_v58, %v10691_v22  ;;  %v2106_v56 = vmul.f32 %v2096_v51, %v10691_v22 }
 0x3f7   :  { %v2102_v26 = vmul.f32 %v2095_v44, %v10691_v22  ;;  %v2105_v39 = vmul.f32 %v2083_v31, %v10689_v23  ;;  %v8616_v43 = vpop.permute.xlu1 %3213  ;;  %2132 = vmatprep.subr.bf16.mxu0 %v2117_v19  ;;  %v2112_v27 = vmul.f32 %v2089_v55, %v10690_v8  ;;  %v2108_v35 = vmul.f32 %v2088_v11, %v10690_v8  ;;  %v6430_v55 = vld [vmem:[%s10290_s6] sm:$0xff]  }
 0x3f8   :  { %v2118_v9 = vpack.c.bf16 %v2104_v46, %v2100_v41  ;;  %v2121_v44 = vpack.c.bf16 %v2111_v61, %v2107_v60  ;;  %v2123_v19 = vpack.c.bf16 %v2113_v50, %v2109_v29  ;;  %v2120_v57 = vpack.c.bf16 %v2110_v1, %v2106_v56 }
 0x3f9   :  { %v2116_v38 = vpack.c.bf16 %v2102_v26, %v2098_v32  ;;  %v8621_v45 = vpop.permute.xlu0 %3215  ;;  %v2119_v52 = vpack.c.bf16 %v2105_v39, %v2101_v62  ;;  %v2122_v51 = vpack.c.bf16 %v2112_v27, %v2108_v35  ;;  %v2040_v32 = vpack.c.bf16 %v8334_v14, %v8327_v25  ;;  %v6431_v26 = vld [vmem:[%s10290_s6 + $0x20] sm:$0xff]   ;;  %v10693_v27 = vld [vmem:[#allocation60_spill] sm:$0xff] }
 0x3fa   :  { %v2042_v61 = vpack.c.bf16 %v8345_v3, %v8341_v21  ;;  %v2044_v29 = vpack.c.bf16 %v8141_v53, %v8166_v54  ;;  %v2039_v25 = vpack.c.bf16 %v8236_v13, %v8232_v30  ;;  %v2046_v14 = vpack.c.bf16 %v8192_v15, %v8200_v0 }
 0x3fb   :  { %v2321_v31 = vpop.permute.xlu1 %2320  ;;  %2133 = vmatpush1.bf16.msra.mxu0 %v2116_v38  ;;  %2175 = vmatprep.subr.bf16.mxu1 %v2119_v52  ;;  %v2041_v50 = vpack.c.bf16 %v8247_v10, %v8241_v34  ;;  %v2043_v53 = vpack.c.bf16 %v8113_v6, %v8127_v33  ;;  %v2045_v54 = vpack.c.bf16 %v8175_v42, %v8185_v18  ;;  %v10692_v18 = vld [vmem:[#allocation59_spill] sm:$0xff] }
 0x3fc   :  { %2134 = vmatprep.subr.bf16.mxu0 %v2121_v44  ;;  %2176 = vmatpush1.bf16.msra.mxu1 %v2118_v9  ;;  %v2355_v15 = vsel %vm677_vm1, %v8227_v16, %v8251_v24  ;;  %v2354_v6 = vsel %vm677_vm1, %v8229_v48, %v8245_v5  ;;  %v2352_v42 = vsel %vm677_vm1, %v8461_v36, %v2321_v31 }
 0x3fd   :  { %2177 = vmatprep.subr.bf16.mxu1 %v2123_v19  ;;  %v8625_v58 = vpop.permute.xlu0 %3203  ;;  %v2373_v0 = vmul.f32 %v2355_v15, %v10692_v18  ;;  %v2369_v13 = vmul.f32 %v2354_v6, %v10692_v18  ;;  %v2351_v10 = vsel %vm677_vm1, %v8251_v24, %v8261_v12  ;;  %v2347_v3 = vsel %vm677_vm1, %v8261_v12, %v8271_v7  ;;  %v10695_v19 = vld [vmem:[#allocation62_spill] sm:$0xff] }
 0x3fe   :  { %v2346_v11 = vsel %vm677_vm1, %v8257_v47, %v8267_v63  ;;  %v2361_v24 = vmul.f32 %v2352_v42, %v10692_v18  ;;  %v2350_v56 = vsel %vm677_vm1, %v8245_v5, %v8257_v47  ;;  %v2359_v38 = vsel %vm677_vm1, %v8271_v7, %v8227_v16  ;;  %v10694_v16 = vld [vmem:[#allocation63_spill] sm:$0xff] }
 0x3ff   :  { %v2337_v46 = vpop.permute.xlu1 %2336  ;;  %2135 = vmatpush1.bf16.msra.mxu0 %v2120_v57  ;;  %v2375_v35 = vmul.f32 %v2347_v3, %v10693_v27  ;;  %v2371_v9 = vmul.f32 %v2346_v11, %v10693_v27  ;;  %v2348_v5 = vsel %vm677_vm1, %v2321_v31, %v8469_v4  ;;  %v2384_v15 = vpack.c.bf16 %v2373_v0, %v2369_v13  ;;  %v10698_v13 = vld [vmem:[#allocation6_spill] sm:$0xff] }
 0x400   :  { %2178 = vmatpush1.bf16.msra.mxu1 %v2122_v51  ;;  %2226 = vmatprep.subr.bf16.mxu0 %v2040_v32  ;;  %v2356_v39 = vsel %vm677_vm1, %v2337_v46, %v8461_v36  ;;  %v2358_v36 = vsel %vm677_vm1, %v8267_v63, %v8229_v48  ;;  %v2344_v52 = vsel %vm677_vm1, %v8469_v4, %v2337_v46 }
 0x401   :  { %2269 = vmatprep.subr.bf16.mxu1 %v2042_v61  ;;  %v8636_v60 = vpop.permute.xlu0 %3211  ;;  %v2360_v7 = vmul.f32 %v2356_v39, %v10694_v16  ;;  %v2363_v51 = vmul.f32 %v2344_v52, %v10693_v27  ;;  %v2362_v46 = vmul.f32 %v2348_v5, %v10695_v19  ;;  %v2368_v61 = vmul.f32 %v2358_v36, %v10694_v16  ;;  %v10702_v52 = vld [vmem:[#allocation53_spill] sm:$0xff] }
 0x402   :  { %6060 = vmatmul.mubr.msk.bf16.vlgmr.msra.gmra.mrb[12].mxu0 %vm461_vm2, %v6430_v55  ;;  %v2386_v42 = vpack.c.bf16 %v2375_v35, %v2371_v9  ;;  %v2528_v39 = vsel %vm871_vm3, %v8291_v59, %v10698_v13  ;;  %v6432_v9 = vld [vmem:[%s10290_s6 + $0x8] sm:$0xff]  }
 0x403   :  { %v8645_v21 = vpop.permute.xlu1 %2497  ;;  %6061 = vmatmul.mubr.msk.bf16.vlgmr.msra.gmra.mrb[12].mxu1 %vm461_vm2, %v6430_v55  ;;  %2227 = vmatpush1.bf16.msra.mxu0 %v2039_v25  ;;  %v2374_v55 = vmul.f32 %v2351_v10, %v10695_v19 }
 0x404   :  { %2270 = vmatpush1.bf16.msra.mxu1 %v2041_v50  ;;  %2228 = vmatprep.subr.bf16.mxu0 %v2044_v29  ;;  %v2532_v50 = vsel %vm871_vm3, %v8281_v49, %v8291_v59 }
 0x405   :  { %v8652_v30 = vpop.permute.xlu0 %3219  ;;  %2271 = vmatprep.subr.bf16.mxu1 %v2046_v14  ;;  %2258 = vmatprep.mubr.bf16.mxu0 %v10565_v40 }
 0x406   :  { %2301 = vmatprep.mubr.bf16.mxu1 %v10565_v40 }
 0x407   :  { %v8664_v33 = vpop.permute.xlu1 %2513  ;;  %2229 = vmatpush1.bf16.msra.mxu0 %v2043_v53  ;;  %v2531_v53 = vsel %vm871_vm3, %v8277_v20, %v8287_v37 }
 0x408   :  { %2272 = vmatpush1.bf16.msra.mxu1 %v2045_v54 }
 0x409   :  { %v2323_v34 = vpop.permute.xlu0 %2322 }
 0x40a   :  { %v2353_v62 = vsel %vm677_vm1, %v8467_v2, %v2323_v34  ;;  %v2349_v12 = vsel %vm677_vm1, %v2323_v34, %v8475_v17  ;;  %v10696_v34 = vld [vmem:[#allocation33_spill] sm:$0xff] }
 0x40b   :  { %v2365_v41 = vmul.f32 %v2353_v62, %v10692_v18  ;;  %v8697_v1 = vpop.permute.xlu1 %2674  ;;  %v2366_v57 = vmul.f32 %v2349_v12, %v10695_v19  ;;  %v2529_v10 = vsel %vm871_vm3, %v10696_v34, %v8645_v21  ;;  %v10697_v62 = vld [vmem:[#allocation64_spill] sm:$0xff]  ;;  %v10699_v12 = vld [vmem:[#allocation7_spill] sm:$0xff]  ;;  %v2533_v5 = vsel %vm871_vm3, %v8664_v33, %v10696_v34 }
 0x40c   :  { %v2538_v59 = vmul.f32 %v2529_v10, %v10697_v62 }
 0x40d   :  { %v2339_v47 = vpop.permute.xlu0 %2338  ;;  %v2380_v44 = vpack.c.bf16 %v2365_v41, %v2361_v24  ;;  %v2381_v54 = vpack.c.bf16 %v2366_v57, %v2362_v46  ;;  %v2546_v24 = vmul.f32 %v2531_v53, %v10697_v62  ;;  %v2524_v41 = vsel %vm871_vm3, %v10698_v13, %v10699_v12 }
 0x40e   :  { %v2345_v48 = vsel %vm677_vm1, %v8475_v17, %v2339_v47  ;;  %v2357_v63 = vsel %vm677_vm1, %v2339_v47, %v8467_v2  ;;  %6063 = vmatmul.mubr.msk.bf16.vlgmr.msra.gmra.mrb[12].mxu0 %vm461_vm2, %v6431_v26  ;;  %v2370_v17 = vmul.f32 %v2350_v56, %v10695_v19  ;;  %v2372_v2 = vmul.f32 %v2359_v38, %v10694_v16  ;;  %v10700_v56 = vld [vmem:[#allocation25_spill] sm:$0xff]  ;;  %v10701_v38 = vld [vmem:[#allocation43_spill] sm:$0xff]  ;;  %v10703_v47 = vld [vmem:[#allocation36_spill] sm:$0xff] }
 0x40f   :  { %v2364_v4 = vmul.f32 %v2357_v63, %v10694_v16  ;;  %v2367_v31 = vmul.f32 %v2345_v48, %v10693_v27  ;;  %v8731_v32 = vpop.permute.xlu1 %2690  ;;  %6064 = vmatmul.mubr.msk.bf16.vlgmr.msra.gmra.mrb[12].mxu1 %vm461_vm2, %v6431_v26  ;;  %2395 = vmatprep.subr.bf16.mxu0 %v2380_v44  ;;  %v2550_v26 = vmul.f32 %v2532_v50, %v10697_v62 }
 0x410   :  { %2427 = vmatprep.mubr.bf16.mxu0 %v10565_v40  ;;  %2470 = vmatprep.mubr.bf16.mxu1 %v10565_v40  ;;  %v2385_v3 = vpack.c.bf16 %v2374_v55, %v2370_v17  ;;  %v2383_v11 = vpack.c.bf16 %v2372_v2, %v2368_v61  ;;  %v2523_v36 = vsel %vm871_vm3, %v10701_v38, %v10700_v56  ;;  %v10705_v55 = vld [vmem:[#allocation67_spill] sm:$0xff]  ;;  %v10706_v61 = vld [vmem:[#allocation66_spill] sm:$0xff] }
 0x411   :  { %v2379_v29 = vpack.c.bf16 %v2364_v4, %v2360_v7  ;;  %v8741_v25 = vpop.permute.xlu0 %3227  ;;  %v2382_v14 = vpack.c.bf16 %v2367_v31, %v2363_v51  ;;  %v2527_v48 = vsel %vm871_vm3, %v8287_v37, %v10701_v38  ;;  %v2536_v63 = vsel %vm871_vm3, %v10699_v12, %v8281_v49  ;;  %v10704_v4 = vld [vmem:[#allocation13_spill] sm:$0xff]  ;;  %v10710_v38 = vld [vmem:[#allocation28_spill] sm:$0xff] }
 0x412   :  { %v2535_v51 = vsel %vm871_vm3, %v10700_v56, %v8277_v20  ;;  %v2521_v31 = vsel %vm871_vm3, %v10704_v4, %v8664_v33  ;;  %v2552_v17 = vmul.f32 %v2524_v41, %v10705_v55  ;;  %v2548_v37 = vmul.f32 %v2523_v36, %v10705_v55  ;;  %v10707_v20 = vld [vmem:[#allocation65_spill] sm:$0xff]  ;;  %v10708_v41 = vld [vmem:[#allocation44_spill] sm:$0xff]  ;;  %v10711_v36 = vld [vmem:[#allocation26_spill] sm:$0xff] }
 0x413   :  { %v8751_v6 = vpop.permute.xlu1 %2851  ;;  %2396 = vmatpush1.bf16.msra.mxu0 %v2379_v29  ;;  %2438 = vmatprep.subr.bf16.mxu1 %v2382_v14  ;;  %v2525_v49 = vsel %vm871_vm3, %v8645_v21, %v10704_v4  ;;  %v2537_v29 = vmul.f32 %v2533_v5, %v10706_v61  ;;  %v2540_v53 = vmul.f32 %v2521_v31, %v10705_v55  ;;  %v10709_v56 = vld [vmem:[#allocation5_spill] sm:$0xff]  ;;  %v10715_v31 = vld [vmem:[#allocation46_spill] sm:$0xff] }
 0x414   :  { %2397 = vmatprep.subr.bf16.mxu0 %v2384_v15  ;;  %2439 = vmatpush1.bf16.msra.mxu1 %v2381_v54  ;;  %v2547_v34 = vmul.f32 %v2527_v48, %v10707_v20  ;;  %v2539_v10 = vmul.f32 %v2525_v49, %v10707_v20  ;;  %v10713_v48 = vld [vmem:[#allocation54_spill] sm:$0xff]  ;;  %v2704_v49 = vsel %vm1065_vm4, %v10710_v38, %v10715_v31 }
 0x415   :  { %2440 = vmatprep.subr.bf16.mxu1 %v2386_v42  ;;  %v2500_v0 = vpop.permute.xlu0 %2499  ;;  %v2551_v42 = vmul.f32 %v2528_v39, %v10707_v20  ;;  %v2709_v39 = vsel %vm1065_vm4, %v10709_v56, %v10708_v41 }
 0x416   :  { %v2530_v35 = vsel %vm871_vm3, %v10702_v52, %v2500_v0  ;;  %v2526_v44 = vsel %vm871_vm3, %v2500_v0, %v10703_v47 }
 0x417   :  { %v2542_v7 = vmul.f32 %v2530_v35, %v10697_v62  ;;  %v8786_v57 = vpop.permute.xlu1 %2867  ;;  %2398 = vmatpush1.bf16.msra.mxu0 %v2383_v11  ;;  %v2543_v14 = vmul.f32 %v2526_v44, %v10707_v20  ;;  %v2545_v11 = vmul.f32 %v2535_v51, %v10706_v61  ;;  %v2563_v44 = vpack.c.bf16 %v2552_v17, %v2548_v37  ;;  %v10716_v37 = vld [vmem:[#allocation70_spill] sm:$0xff] }
 0x418   :  { %2441 = vmatpush1.bf16.msra.mxu1 %v2385_v3  ;;  %v2549_v3 = vmul.f32 %v2536_v63, %v10706_v61  ;;  %v2706_v63 = vsel %vm1065_vm4, %v10713_v48, %v8697_v1 }
 0x419   :  { %v2516_v46 = vpop.permute.xlu0 %2515  ;;  %v2557_v2 = vpack.c.bf16 %v2542_v7, %v2538_v59  ;;  %v2558_v35 = vpack.c.bf16 %v2543_v14, %v2539_v10  ;;  %v10712_v59 = vld [vmem:[#allocation45_spill] sm:$0xff]  ;;  %v2562_v7 = vpack.c.bf16 %v2551_v42, %v2547_v34  ;;  %v10718_v14 = vld [vmem:[#allocation10_spill] sm:$0xff]  ;;  %v2710_v42 = vsel %vm1065_vm4, %v8731_v32, %v10713_v48  ;;  %v10720_v34 = vld [vmem:[#allocation39_spill] sm:$0xff] }
 0x41a   :  { %v2522_v33 = vsel %vm871_vm3, %v10703_v47, %v2516_v46  ;;  %v2534_v50 = vsel %vm871_vm3, %v2516_v46, %v10702_v52  ;;  %6068 = vmatmul.mubr.msk.bf16.vlgmr.msra.gmra.mrb[12].mxu0 %vm461_vm2, %v6432_v9  ;;  %v2708_v52 = vsel %vm1065_vm4, %v10711_v36, %v10710_v38  ;;  %v2705_v5 = vsel %vm1065_vm4, %v10708_v41, %v10712_v59 }
 0x41b   :  { %v2541_v21 = vmul.f32 %v2534_v50, %v10706_v61  ;;  %v2544_v54 = vmul.f32 %v2522_v33, %v10705_v55  ;;  %v8822_v15 = vpop.permute.xlu1 %3028  ;;  %6069 = vmatmul.mubr.msk.bf16.vlgmr.msra.gmra.mrb[12].mxu1 %vm461_vm2, %v6432_v9  ;;  %2572 = vmatprep.subr.bf16.mxu0 %v2557_v2  ;;  %v2561_v9 = vpack.c.bf16 %v2550_v26, %v2546_v24  ;;  %v10714_v26 = vld [vmem:[#allocation69_spill] sm:$0xff]  ;;  %v10717_v2 = vld [vmem:[#allocation27_spill] sm:$0xff]  ;;  %v10719_v50 = vld [vmem:[#allocation52_spill] sm:$0xff] }
 0x41c   :  { %2604 = vmatprep.mubr.bf16.mxu0 %v10565_v40  ;;  %2647 = vmatprep.mubr.bf16.mxu1 %v10565_v40  ;;  %v2560_v51 = vpack.c.bf16 %v2549_v3, %v2545_v11  ;;  %v2727_v24 = vmul.f32 %v2709_v39, %v10714_v26  ;;  %v2723_v4 = vmul.f32 %v2708_v52, %v10714_v26  ;;  %v10721_v39 = vld [vmem:[#allocation35_spill] sm:$0xff]  ;;  %v10722_v52 = vld [vmem:[#allocation72_spill] sm:$0xff] }
 0x41d   :  { %v2556_v0 = vpack.c.bf16 %v2541_v21, %v2537_v29  ;;  %v8832_v13 = vpop.permute.xlu0 %3376  ;;  %v2559_v12 = vpack.c.bf16 %v2544_v54, %v2540_v53  ;;  %v8859_v46 = vmul.f32 %v2705_v5, %v10716_v37  ;;  %v2701_v29 = vsel %vm1065_vm4, %v10712_v59, %v10717_v2  ;;  %v6433_v21 = vld [vmem:[%s10290_s6 + $0x10] sm:$0xff]  }
 0x41e   :  { %v2700_v33 = vsel %vm1065_vm4, %v10715_v31, %v10718_v14  ;;  %v2715_v54 = vmul.f32 %v2706_v63, %v10714_v26  ;;  %v2712_v41 = vsel %vm1065_vm4, %v10718_v14, %v10711_v36  ;;  %v2698_v38 = vsel %vm1065_vm4, %v10721_v39, %v8731_v32 }
 0x41f   :  { %v8846_v47 = vpop.permute.xlu1 %3044  ;;  %2573 = vmatpush1.bf16.msra.mxu0 %v2556_v0  ;;  %2615 = vmatprep.subr.bf16.mxu1 %v2559_v12  ;;  %v8887_v0 = vmul.f32 %v2704_v49, %v10716_v37  ;;  %v2713_v12 = vsel %vm1065_vm4, %v10717_v2, %v10709_v56  ;;  %v2702_v56 = vsel %vm1065_vm4, %v8697_v1, %v10721_v39 }
 0x420   :  { %2574 = vmatprep.subr.bf16.mxu0 %v2561_v9  ;;  %2616 = vmatpush1.bf16.msra.mxu1 %v2558_v35  ;;  %v2729_v35 = vmul.f32 %v2701_v29, %v10722_v52  ;;  %v2725_v9 = vmul.f32 %v2700_v33, %v10722_v52  ;;  %v2717_v63 = vmul.f32 %v2698_v38, %v10722_v52 }
 0x421   :  { %2617 = vmatprep.subr.bf16.mxu1 %v2563_v44  ;;  %v2677_v17 = vpop.permute.xlu0 %2676  ;;  %v10723_v44 = vld [vmem:[#allocation71_spill] sm:$0xff]  ;;  %v2716_v2 = vmul.f32 %v2702_v56, %v10716_v37  ;;  %v2739_v39 = vpack.c.bf16 %v8859_v46, %v8887_v0  ;;  %v10732_v0 = vld [vmem:[#allocation73_spill] sm:$0xff] }
 0x422   :  { %v2707_v53 = vsel %vm1065_vm4, %v10719_v50, %v2677_v17  ;;  %v2703_v10 = vsel %vm1065_vm4, %v2677_v17, %v10720_v34  ;;  %v2714_v48 = vmul.f32 %v2710_v42, %v10723_v44  ;;  %v2726_v49 = vmul.f32 %v2713_v12, %v10723_v44  ;;  %v10726_v42 = vld [vmem:[#allocation11_spill] sm:$0xff] }
 0x423   :  { %v2719_v3 = vmul.f32 %v2707_v53, %v10714_v26  ;;  %v8884_v11 = vpop.permute.xlu1 %3205  ;;  %2575 = vmatpush1.bf16.msra.mxu0 %v2560_v51  ;;  %v2720_v36 = vmul.f32 %v2703_v10, %v10716_v37  ;;  %v2722_v17 = vmul.f32 %v2712_v41, %v10723_v44  ;;  %v10724_v53 = vld [vmem:[#allocation47_spill] sm:$0xff]  ;;  %v10727_v10 = vld [vmem:[#allocation29_spill] sm:$0xff]  ;;  %v2740_v56 = vpack.c.bf16 %v2729_v35, %v2725_v9  ;;  %v10734_v35 = vld [vmem:[#allocation48_spill] sm:$0xff] }
 0x424   :  { %2618 = vmatpush1.bf16.msra.mxu1 %v2562_v7 }
 0x425   :  { %v2693_v59 = vpop.permute.xlu0 %2692  ;;  %v2734_v5 = vpack.c.bf16 %v2719_v3, %v2715_v54  ;;  %v10725_v54 = vld [vmem:[#allocation30_spill] sm:$0xff]  ;;  %v10728_v3 = vld [vmem:[#allocation9_spill] sm:$0xff]  ;;  %v2735_v41 = vpack.c.bf16 %v2720_v36, %v2716_v2  ;;  %v10731_v36 = vld [vmem:[#allocation16_spill] sm:$0xff] }
 0x426   :  { %v2699_v32 = vsel %vm1065_vm4, %v10720_v34, %v2693_v59  ;;  %v2711_v7 = vsel %vm1065_vm4, %v2693_v59, %v10719_v50  ;;  %6073 = vmatmul.mubr.msk.bf16.vlgmr.msra.gmra.mrb[12].mxu0 %vm461_vm2, %v6433_v21  ;;  %v2738_v50 = vpack.c.bf16 %v2727_v24, %v2723_v4  ;;  %v2882_v34 = vsel %vm1259_vm5, %v10724_v53, %v10726_v42  ;;  %v10729_v24 = vld [vmem:[#allocation55_spill] sm:$0xff]  ;;  %v10736_v2 = vld [vmem:[#allocation18_spill] sm:$0xff] }
 0x427   :  { %v2718_v1 = vmul.f32 %v2711_v7, %v10723_v44  ;;  %v2721_v51 = vmul.f32 %v2699_v32, %v10722_v52  ;;  %v8919_v31 = vpop.permute.xlu1 %3221  ;;  %6074 = vmatmul.mubr.msk.bf16.vlgmr.msra.gmra.mrb[12].mxu1 %vm461_vm2, %v6433_v21  ;;  %2749 = vmatprep.subr.bf16.mxu0 %v2734_v5  ;;  %v2886_v21 = vsel %vm1259_vm5, %v10725_v54, %v10724_v53  ;;  %v10730_v5 = vld [vmem:[#allocation8_spill] sm:$0xff]  ;;  %v10733_v7 = vld [vmem:[#allocation74_spill] sm:$0xff] }
 0x428   :  { %2781 = vmatprep.mubr.bf16.mxu0 %v10565_v40  ;;  %2824 = vmatprep.mubr.bf16.mxu1 %v10565_v40  ;;  %v2881_v12 = vsel %vm1259_vm5, %v10728_v3, %v10727_v10  ;;  %v2883_v4 = vsel %vm1259_vm5, %v10729_v24, %v8751_v6  ;;  %v2737_v59 = vpack.c.bf16 %v2726_v49, %v2722_v17  ;;  %v10735_v49 = vld [vmem:[#allocation32_spill] sm:$0xff]  ;;  %v6434_v53 = vld [vmem:[%s10290_s6 + $0x18] sm:$0xff]  }
 0x429   :  { %v2733_v29 = vpack.c.bf16 %v2718_v1, %v2714_v48  ;;  %v8927_v14 = vpop.permute.xlu0 %3392  ;;  %v2736_v33 = vpack.c.bf16 %v2721_v51, %v2717_v63  ;;  %v2885_v48 = vsel %vm1259_vm5, %v10730_v5, %v10728_v3  ;;  %v2879_v46 = vsel %vm1259_vm5, %v8751_v6, %v10731_v36 }
 0x42a   :  { %v2903_v32 = vmul.f32 %v2886_v21, %v10732_v0  ;;  %v2904_v63 = vmul.f32 %v2882_v34, %v10733_v7  ;;  %v2900_v1 = vmul.f32 %v2881_v12, %v10733_v7  ;;  %v2890_v9 = vsel %vm1259_vm5, %v10734_v35, %v10725_v54 }
 0x42b   :  { %v8947_v38 = vpop.permute.xlu1 %3201  ;;  %2750 = vmatpush1.bf16.msra.mxu0 %v2733_v29  ;;  %2792 = vmatprep.subr.bf16.mxu1 %v2736_v33  ;;  %v2889_v6 = vsel %vm1259_vm5, %v10735_v49, %v10730_v5  ;;  %v2891_v17 = vmul.f32 %v2883_v4, %v10732_v0  ;;  %v10737_v33 = vld [vmem:[#allocation57_spill] sm:$0xff]  ;;  %v2892_v54 = vmul.f32 %v2879_v46, %v10733_v7 }
 0x42c   :  { %2751 = vmatprep.subr.bf16.mxu0 %v2738_v50  ;;  %2793 = vmatpush1.bf16.msra.mxu1 %v2735_v41  ;;  %v2875_v21 = vsel %vm1259_vm5, %v10731_v36, %v8786_v57  ;;  %v2899_v41 = vmul.f32 %v2885_v48, %v10732_v0  ;;  %v2878_v4 = vsel %vm1259_vm5, %v10726_v42, %v10734_v35  ;;  %v10738_v36 = vld [vmem:[#allocation77_spill] sm:$0xff] }
 0x42d   :  { %2794 = vmatprep.subr.bf16.mxu1 %v2740_v56  ;;  %v2854_v51 = vpop.permute.xlu0 %2853  ;;  %v2877_v56 = vsel %vm1259_vm5, %v10727_v10, %v10735_v49  ;;  %v2887_v5 = vsel %vm1259_vm5, %v8786_v57, %v10729_v24  ;;  %v2902_v48 = vmul.f32 %v2889_v6, %v10738_v36  ;;  %v2915_v57 = vpack.c.bf16 %v2904_v63, %v2900_v1 }
 0x42e   :  { %v2880_v29 = vsel %vm1259_vm5, %v2854_v51, %v10736_v2  ;;  %v2884_v50 = vsel %vm1259_vm5, %v10737_v33, %v2854_v51 }
 0x42f   :  { %v2895_v34 = vmul.f32 %v2884_v50, %v10732_v0  ;;  %v2896_v3 = vmul.f32 %v2880_v29, %v10733_v7  ;;  %v8985_v12 = vpop.permute.xlu1 %3209  ;;  %2752 = vmatpush1.bf16.msra.mxu0 %v2737_v59  ;;  %v2906_v59 = vmul.f32 %v2890_v9, %v10738_v36  ;;  %v10739_v50 = vld [vmem:[#allocation76_spill] sm:$0xff] }
 0x430   :  { %2795 = vmatpush1.bf16.msra.mxu1 %v2739_v39  ;;  %v2893_v42 = vmul.f32 %v2875_v21, %v10739_v50  ;;  %v2894_v39 = vmul.f32 %v2887_v5, %v10738_v36  ;;  %v2905_v6 = vmul.f32 %v2878_v4, %v10739_v50  ;;  %v10741_v21 = vld [vmem:[#allocation49_spill] sm:$0xff]  ;;  %v10743_v4 = vld [vmem:[#allocation14_spill] sm:$0xff]  ;;  %v10755_v0 = vld [vmem:[#allocation80_spill] sm:$0xff] }
 0x431   :  { %v2910_v46 = vpack.c.bf16 %v2895_v34, %v2891_v17  ;;  %v2870_v51 = vpop.permute.xlu0 %2869  ;;  %v2911_v29 = vpack.c.bf16 %v2896_v3, %v2892_v54  ;;  %v2901_v17 = vmul.f32 %v2877_v56, %v10739_v50  ;;  %v10740_v54 = vld [vmem:[#allocation34_spill] sm:$0xff]  ;;  %v10742_v34 = vld [vmem:[#allocation31_spill] sm:$0xff] }
 0x432   :  { %v2876_v35 = vsel %vm1259_vm5, %v10736_v2, %v2870_v51  ;;  %v2888_v10 = vsel %vm1259_vm5, %v2870_v51, %v10737_v33  ;;  %6078 = vmatmul.mubr.msk.bf16.vlgmr.msra.gmra.mrb[12].mxu0 %vm461_vm2, %v6434_v53  ;;  %v2914_v33 = vpack.c.bf16 %v2903_v32, %v2899_v41  ;;  %v3059_v3 = vsel %vm1453_vm6, %v10740_v54, %v10742_v34  ;;  %v10744_v56 = vld [vmem:[#allocation15_spill] sm:$0xff] }
 0x433   :  { %v2897_v24 = vmul.f32 %v2876_v35, %v10739_v50  ;;  %v2898_v9 = vmul.f32 %v2888_v10, %v10738_v36  ;;  %v9013_v49 = vpop.permute.xlu1 %3217  ;;  %6079 = vmatmul.mubr.msk.bf16.vlgmr.msra.gmra.mrb[12].mxu1 %vm461_vm2, %v6434_v53  ;;  %2926 = vmatprep.subr.bf16.mxu0 %v2911_v29  ;;  %v3063_v53 = vsel %vm1453_vm6, %v10741_v21, %v10740_v54  ;;  %v10747_v10 = vld [vmem:[#allocation61_spill] sm:$0xff] }
 0x434   :  { %2927 = vmatpush1.bf16.msra.mxu0 %v2910_v46  ;;  %2958 = vmatprep.mubr.bf16.mxu0 %v10565_v40  ;;  %v3058_v5 = vsel %vm1453_vm6, %v10744_v56, %v10743_v4  ;;  %v10745_v46 = vld [vmem:[#allocation58_spill] sm:$0xff]  ;;  %v2917_v51 = vpack.c.bf16 %v2906_v59, %v2902_v48  ;;  %v2916_v29 = vpack.c.bf16 %v2905_v6, %v2901_v17  ;;  %v10750_v59 = vld [vmem:[#allocation51_spill] sm:$0xff]  ;;  %v10751_v17 = vld [vmem:[#allocation12_spill] sm:$0xff] }
 0x435   :  { %v2912_v2 = vpack.c.bf16 %v2897_v24, %v2893_v42  ;;  %v9019_v63 = vpop.permute.xlu0 %3380  ;;  %2928 = vmatprep.subr.bf16.mxu0 %v2915_v57  ;;  %v2913_v1 = vpack.c.bf16 %v2898_v9, %v2894_v39  ;;  %3001 = vmatprep.mubr.bf16.mxu1 %v10565_v40  ;;  %v3060_v32 = vsel %vm1453_vm6, %v10745_v46, %v8822_v15  ;;  %v10746_v42 = vld [vmem:[#allocation50_spill] sm:$0xff]  ;;  %v10749_v9 = vld [vmem:[#allocation79_spill] sm:$0xff] }
 0x436   :  { %v3062_v35 = vsel %vm1453_vm6, %v10746_v42, %v10744_v56  ;;  %v3056_v57 = vsel %vm1453_vm6, %v8822_v15, %v10747_v10  ;;  %v10748_v39 = vld [vmem:[#allocation78_spill] sm:$0xff]  ;;  %v3081_v54 = vmul.f32 %v3059_v3, %v10749_v9  ;;  %v3067_v48 = vsel %vm1453_vm6, %v10750_v59, %v10741_v21  ;;  %v10753_v3 = vld [vmem:[#allocation56_spill] sm:$0xff] }
 0x437   :  { %v9038_v41 = vpop.permute.xlu1 %3225  ;;  %2969 = vmatprep.subr.bf16.mxu1 %v2913_v1  ;;  %v3080_v24 = vmul.f32 %v3063_v53, %v10748_v39  ;;  %v3077_v1 = vmul.f32 %v3058_v5, %v10749_v9  ;;  %v3066_v15 = vsel %vm1453_vm6, %v10751_v17, %v10746_v42  ;;  %v6435_v21 = vld [vmem:[%s10290_s6 + $0x28] sm:$0xff]   ;;  %v3069_v5 = vmul.f32 %v3056_v57, %v10749_v9 }
 0x438   :  { %2929 = vmatpush1.bf16.msra.mxu0 %v2914_v33  ;;  %2970 = vmatpush1.bf16.msra.mxu1 %v2912_v2  ;;  %v3068_v2 = vmul.f32 %v3060_v32, %v10748_v39  ;;  %v10752_v33 = vld [vmem:[#allocation75_spill] sm:$0xff]  ;;  %v3076_v50 = vmul.f32 %v3062_v35, %v10748_v39  ;;  %v3054_v57 = vsel %vm1453_vm6, %v10743_v4, %v10751_v17 }
 0x439   :  { %2971 = vmatprep.subr.bf16.mxu1 %v2917_v51  ;;  %v3031_v6 = vpop.permute.xlu0 %3030  ;;  %v3052_v51 = vsel %vm1453_vm6, %v10747_v10, %v8846_v47  ;;  %v3064_v10 = vsel %vm1453_vm6, %v8846_v47, %v10745_v46  ;;  %v3092_v47 = vpack.c.bf16 %v3081_v54, %v3077_v1 }
 0x43a   :  { %v3057_v53 = vsel %vm1453_vm6, %v3031_v6, %v10752_v33  ;;  %v3061_v56 = vsel %vm1453_vm6, %v10753_v3, %v3031_v6  ;;  %v3055_v6 = vsel %vm1453_vm6, %v10742_v34, %v10750_v59  ;;  %v3070_v34 = vmul.f32 %v3052_v51, %v10755_v0  ;;  %v10756_v51 = vld [vmem:[#allocation68_spill] sm:$0xff] }
 0x43b   :  { %v3072_v32 = vmul.f32 %v3061_v56, %v10748_v39  ;;  %v3073_v42 = vmul.f32 %v3057_v53, %v10749_v9  ;;  %v9076_v36 = vpop.permute.xlu1 %3374  ;;  %v10754_v53 = vld [vmem:[#allocation81_spill] sm:$0xff] }
 0x43c   :  { %2972 = vmatpush1.bf16.msra.mxu1 %v2916_v29  ;;  %v3083_v56 = vmul.f32 %v3067_v48, %v10754_v53  ;;  %v3079_v35 = vmul.f32 %v3066_v15, %v10754_v53  ;;  %v3071_v46 = vmul.f32 %v3064_v10, %v10754_v53  ;;  %v3082_v15 = vmul.f32 %v3055_v6, %v10755_v0  ;;  %v10757_v10 = vld [vmem:[#allocation22_spill] sm:$0xff] }
 0x43d   :  { %v3087_v9 = vpack.c.bf16 %v3072_v32, %v3068_v2  ;;  %v3047_v39 = vpop.permute.xlu0 %3046  ;;  %v3088_v7 = vpack.c.bf16 %v3073_v42, %v3069_v5  ;;  %v3078_v2 = vmul.f32 %v3054_v57, %v10755_v0  ;;  %v3233_v5 = vsel %vm1647_vm7, %v8884_v11, %v8616_v43 }
 0x43e   :  { %v3053_v59 = vsel %vm1453_vm6, %v10752_v33, %v3047_v39  ;;  %v3065_v4 = vsel %vm1453_vm6, %v3047_v39, %v10753_v3  ;;  %6083 = vmatmul.mubr.msk.bf16.vlgmr.msra.gmra.mrb[12].mxu0 %vm461_vm2, %v6435_v21  ;;  %v3091_v33 = vpack.c.bf16 %v3080_v24, %v3076_v50  ;;  %v3237_v50 = vsel %vm1647_vm7, %v10756_v51, %v8884_v11 }
 0x43f   :  { %v3074_v29 = vmul.f32 %v3053_v59, %v10755_v0  ;;  %v3075_v48 = vmul.f32 %v3065_v4, %v10754_v53  ;;  %v9104_v17 = vpop.permute.xlu1 %3382  ;;  %6084 = vmatmul.mubr.msk.bf16.vlgmr.msra.gmra.mrb[12].mxu1 %vm461_vm2, %v6435_v21  ;;  %3103 = vmatprep.subr.bf16.mxu0 %v3088_v7  ;;  %v3235_v7 = vsel %vm1647_vm7, %v8985_v12, %v9013_v49 }
 0x440   :  { %3104 = vmatpush1.bf16.msra.mxu0 %v3087_v9  ;;  %3135 = vmatprep.mubr.bf16.mxu0 %v10565_v40  ;;  %v3094_v21 = vpack.c.bf16 %v3083_v56, %v3079_v35  ;;  %v3093_v9 = vpack.c.bf16 %v3082_v15, %v3078_v2  ;;  %v3240_v24 = vsel %vm1647_vm7, %v8625_v58, %v8636_v60  ;;  %v10758_v35 = vld [vmem:[#allocation82_spill] sm:$0xff]  ;;  %v10760_v15 = vld [vmem:[#allocation24_spill] sm:$0xff] }
 0x441   :  { %v3089_v39 = vpack.c.bf16 %v3074_v29, %v3070_v34  ;;  %v9110_v54 = vpop.permute.xlu0 %3388  ;;  %3105 = vmatprep.subr.bf16.mxu0 %v3092_v47  ;;  %v3090_v1 = vpack.c.bf16 %v3075_v48, %v3071_v46  ;;  %3178 = vmatprep.mubr.bf16.mxu1 %v10565_v40  ;;  %v3236_v32 = vsel %vm1647_vm7, %v8636_v60, %v8652_v30  ;;  %v10759_v34 = vld [vmem:[#allocation3_spill] sm:$0xff] }
 0x442   :  { %v3229_v42 = vsel %vm1647_vm7, %v8616_v43, %v8919_v31  ;;  %v3241_v11 = vsel %vm1647_vm7, %v8919_v31, %v10756_v51  ;;  %v3239_v57 = vsel %vm1647_vm7, %v8947_v38, %v8985_v12  ;;  %v3254_v56 = vmul.f32 %v3235_v7, %v10757_v10  ;;  %v6436_v31 = vld [vmem:[%s10290_s6 + $0x30] sm:$0xff]  }
 0x443   :  { %v9117_v3 = vpop.permute.xlu1 %3390  ;;  %3146 = vmatprep.subr.bf16.mxu1 %v3090_v1  ;;  %v3245_v59 = vmul.f32 %v3237_v50, %v10759_v34  ;;  %v3246_v4 = vmul.f32 %v3233_v5, %v10757_v10  ;;  %v3258_v29 = vmul.f32 %v3236_v32, %v10757_v10  ;;  %v3244_v48 = vsel %vm1647_vm7, %v8741_v25, %v8625_v58  ;;  %v10761_v1 = vld [vmem:[#allocation40_spill] sm:$0xff] }
 0x444   :  { %3106 = vmatpush1.bf16.msra.mxu0 %v3091_v33  ;;  %3147 = vmatpush1.bf16.msra.mxu1 %v3089_v39  ;;  %v3247_v2 = vmul.f32 %v3229_v42, %v10760_v15  ;;  %v3243_v39 = vsel %vm1647_vm7, %v9038_v41, %v8947_v38  ;;  %v3248_v33 = vmul.f32 %v3241_v11, %v10761_v1 }
 0x445   :  { %3148 = vmatprep.subr.bf16.mxu1 %v3094_v21  ;;  %v3208_v6 = vpop.permute.xlu0 %3207  ;;  %v3253_v7 = vmul.f32 %v3239_v57, %v10759_v34  ;;  %v3231_v58 = vsel %vm1647_vm7, %v9013_v49, %v9038_v41  ;;  %v3256_v32 = vmul.f32 %v3243_v39, %v10761_v1  ;;  %v3257_v49 = vmul.f32 %v3240_v24, %v10759_v34 }
 0x446   :  { %v3234_v60 = vsel %vm1647_vm7, %v3208_v6, %v8621_v45  ;;  %v3238_v43 = vsel %vm1647_vm7, %v10758_v35, %v3208_v6  ;;  %v3260_v41 = vmul.f32 %v3244_v48, %v10761_v1  ;;  %v3255_v57 = vmul.f32 %v3231_v58, %v10760_v15 }
 0x447   :  { %v3249_v12 = vmul.f32 %v3238_v43, %v10759_v34  ;;  %v3250_v47 = vmul.f32 %v3234_v60, %v10757_v10  ;;  %v3399_v46 = vpop.permute.xlu1 %3398  ;;  %v3268_v43 = vpack.c.bf16 %v3257_v49, %v3253_v7  ;;  %v3414_v24 = vsel %vm1841_vm8, %v9076_v36, %v9104_v17 }
 0x448   :  { %3149 = vmatpush1.bf16.msra.mxu1 %v3093_v9  ;;  %v3269_v9 = vpack.c.bf16 %v3258_v29, %v3254_v56  ;;  %v3406_v29 = vsel %vm1841_vm8, %v9117_v3, %v3399_v46 }
 0x449   :  { %v3264_v21 = vpack.c.bf16 %v3249_v12, %v3245_v59  ;;  %v3224_v5 = vpop.permute.xlu0 %3223  ;;  %v3265_v51 = vpack.c.bf16 %v3250_v47, %v3246_v4  ;;  %v3271_v59 = vpack.c.bf16 %v3260_v41, %v3256_v32  ;;  %v10762_v12 = vld [vmem:[#allocation41_spill] sm:$0xff]  ;;  %v10765_v41 = vld [vmem:[#allocation4_spill] sm:$0xff] }
 0x44a   :  { %v3230_v50 = vsel %vm1647_vm7, %v8621_v45, %v3224_v5  ;;  %v3242_v38 = vsel %vm1647_vm7, %v3224_v5, %v10758_v35  ;;  %6088 = vmatmul.mubr.msk.bf16.vlgmr.msra.gmra.mrb[12].mxu0 %vm461_vm2, %v6436_v31  ;;  %v3232_v45 = vsel %vm1647_vm7, %v8652_v30, %v8741_v25  ;;  %v3410_v25 = vsel %vm1841_vm8, %v9104_v17, %v9117_v3  ;;  %v6437_v3 = vld [vmem:[%s10290_s6 + $0x38] sm:$0xff]  }
 0x44b   :  { %v3251_v42 = vmul.f32 %v3230_v50, %v10760_v15  ;;  %v3252_v11 = vmul.f32 %v3242_v38, %v10761_v1  ;;  %v3379_v6 = vpop.permute.xlu1 %3378  ;;  %6089 = vmatmul.mubr.msk.bf16.vlgmr.msra.gmra.mrb[12].mxu1 %vm461_vm2, %v6436_v31  ;;  %3280 = vmatprep.subr.bf16.mxu0 %v3265_v51  ;;  %v3259_v30 = vmul.f32 %v3232_v45, %v10760_v15 }
 0x44c   :  { %3281 = vmatpush1.bf16.msra.mxu0 %v3264_v21  ;;  %3312 = vmatprep.mubr.bf16.mxu0 %v10565_v40  ;;  %v3422_v47 = vmul.f32 %v3414_v24, %v10762_v12  ;;  %v3418_v21 = vsel %vm1841_vm8, %v3399_v46, %v9076_v36  ;;  %v3417_v38 = vsel %vm1841_vm8, %v9019_v63, %v9110_v54 }
 0x44d   :  { %v3266_v56 = vpack.c.bf16 %v3251_v42, %v3247_v2  ;;  %v3397_v60 = vpop.permute.xlu0 %3396  ;;  %3282 = vmatprep.subr.bf16.mxu0 %v3269_v9  ;;  %v3267_v35 = vpack.c.bf16 %v3252_v11, %v3248_v33  ;;  %3355 = vmatprep.mubr.bf16.mxu1 %v10565_v40  ;;  %v3270_v4 = vpack.c.bf16 %v3259_v30, %v3255_v57  ;;  %v10763_v2 = vld [vmem:[#allocation42_spill] sm:$0xff]  ;;  %v10764_v9 = vld [vmem:[#allocation23_spill] sm:$0xff] }
 0x44e   :  { %v3423_v39 = vmul.f32 %v3410_v25, %v10763_v2  ;;  %v3413_v17 = vsel %vm1841_vm8, %v9110_v54, %v3397_v60  ;;  %v3424_v32 = vmul.f32 %v3406_v29, %v10764_v9  ;;  %v3425_v57 = vmul.f32 %v3418_v21, %v10765_v41 }
 0x44f   :  { %v3387_v31 = vpop.permute.xlu1 %3386  ;;  %3323 = vmatprep.subr.bf16.mxu1 %v3267_v35  ;;  %v3435_v36 = vmul.f32 %v3413_v17, %v10763_v2 }
 0x450   :  { %3283 = vmatpush1.bf16.msra.mxu0 %v3268_v43  ;;  %3324 = vmatpush1.bf16.msra.mxu1 %v3266_v56  ;;  %v3416_v5 = vsel %vm1841_vm8, %v3379_v6, %v3387_v31 }
 0x451   :  { %3325 = vmatprep.subr.bf16.mxu1 %v3271_v59  ;;  %v3385_v48 = vpop.permute.xlu0 %3384  ;;  %v3430_v56 = vmul.f32 %v3416_v5, %v10762_v12 }
 0x452   :  { %v3411_v33 = vsel %vm1841_vm8, %v3385_v48, %v8927_v14  ;;  %v3415_v7 = vsel %vm1841_vm8, %v8832_v13, %v3385_v48 }
 0x453   :  { %v3426_v51 = vmul.f32 %v3415_v7, %v10762_v12  ;;  %v3427_v58 = vmul.f32 %v3411_v33, %v10763_v2  ;;  %v3395_v50 = vpop.permute.xlu1 %3394 }
 0x454   :  { %v3412_v42 = vsel %vm1841_vm8, %v3387_v31, %v3395_v50  ;;  %3326 = vmatpush1.bf16.msra.mxu1 %v3270_v4  ;;  %v3434_v31 = vmul.f32 %v3417_v38, %v10762_v12 }
 0x455   :  { %v3441_v46 = vpack.c.bf16 %v3426_v51, %v3422_v47  ;;  %v3431_v11 = vmul.f32 %v3412_v42, %v10763_v2  ;;  %v3401_v49 = vpop.permute.xlu0 %3400  ;;  %v3442_v45 = vpack.c.bf16 %v3427_v58, %v3423_v39 }
 0x456   :  { %v3407_v54 = vsel %vm1841_vm8, %v8927_v14, %v3401_v49  ;;  %v3419_v35 = vsel %vm1841_vm8, %v3401_v49, %v8832_v13  ;;  %6093 = vmatmul.mubr.msk.bf16.vlgmr.msra.gmra.mrb[12].mxu0 %vm461_vm2, %v6437_v3  ;;  %v3445_v48 = vpack.c.bf16 %v3434_v31, %v3430_v56 }
 0x457   :  { %v3428_v43 = vmul.f32 %v3407_v54, %v10764_v9  ;;  %v3429_v24 = vmul.f32 %v3419_v35, %v10765_v41  ;;  %v3403_v30 = vpop.permute.xlu1 %3402  ;;  %6094 = vmatmul.mubr.msk.bf16.vlgmr.msra.gmra.mrb[12].mxu1 %vm461_vm2, %v6437_v3  ;;  %3457 = vmatprep.subr.bf16.mxu0 %v3442_v45  ;;  %v3446_v25 = vpack.c.bf16 %v3435_v36, %v3431_v11 }
 0x458   :  { %v3408_v14 = vsel %vm1841_vm8, %v3395_v50, %v3403_v30  ;;  %v3420_v59 = vsel %vm1841_vm8, %v3403_v30, %v3379_v6  ;;  %3458 = vmatpush1.bf16.msra.mxu0 %v3441_v46  ;;  %3489 = vmatprep.mubr.bf16.mxu0 %v10565_v40 }
 0x459   :  { %v3443_v13 = vpack.c.bf16 %v3428_v43, %v3424_v32  ;;  %v3432_v4 = vmul.f32 %v3408_v14, %v10764_v9  ;;  %v3405_v47 = vpop.permute.xlu0 %3404  ;;  %3459 = vmatprep.subr.bf16.mxu0 %v3446_v25  ;;  %v3444_v29 = vpack.c.bf16 %v3429_v24, %v3425_v57  ;;  %3532 = vmatprep.mubr.bf16.mxu1 %v10565_v40 }
 0x45a   :  { %v3409_v39 = vsel %vm1841_vm8, %v3397_v60, %v3405_v47  ;;  %v3421_v17 = vsel %vm1841_vm8, %v3405_v47, %v9019_v63  ;;  %v3433_v6 = vmul.f32 %v3420_v59, %v10765_v41  ;;  %v6438_v60 = vld [vmem:[%s10290_s6 + $0x40] sm:$0xff]  }
 0x45b   :  { %v3436_v33 = vmul.f32 %v3409_v39, %v10764_v9  ;;  %v3437_v7 = vmul.f32 %v3421_v17, %v10765_v41  ;;  %3500 = vmatprep.subr.bf16.mxu1 %v3444_v29 }
 0x45c   :  { %3460 = vmatpush1.bf16.msra.mxu0 %v3445_v48  ;;  %3501 = vmatpush1.bf16.msra.mxu1 %v3443_v13 }
 0x45d   :  { %v3447_v3 = vpack.c.bf16 %v3436_v33, %v3432_v4  ;;  %v3448_v21 = vpack.c.bf16 %v3437_v7, %v3433_v6  ;;  %v4800_v33 = vld [vmem:[%s10293_s9] sm:$0xff] }
 0x45f   :  { %3502 = vmatprep.subr.bf16.mxu1 %v3448_v21 }
 0x460   :  { %3503 = vmatpush1.bf16.msra.mxu1 %v3447_v3  ;;  %v4801_v3 = vld [vmem:[%s10293_s9 + $0x8] sm:$0xff] }
 0x462   :  { %6098 = vmatmul.mubr.msk.bf16.vlgmr.msra.gmra.mrb[12].mxu0 %vm461_vm2, %v6438_v60 }
 0x463   :  { %6099 = vmatmul.mubr.msk.bf16.vlgmr.msra.gmra.mrb[12].mxu1 %vm461_vm2, %v6438_v60  ;;  %3665 = vmatprep.mubr.bf16.mxu0 %v10565_v40 }
 0x464   :  { %3708 = vmatprep.mubr.bf16.mxu1 %v10565_v40 }
 0x468   :  { %v3556_v63 = vpop.permute.xlu1 %3555 }
 0x46a   :  { %v3561_v5 = vpop.permute.xlu0 %3560 }
 0x535   :  { %v3491_v51 = vpop.f32.mrb[12].mxu0 }
 0x536   :  { %v3563_v58 = vadd.f32 %v3556_v63, %v3491_v51  ;;  %v3493_v50 = vpop.f32.mrb[13].mxu0  ;;  %v3534_v38 = vpop.f32.mrb[12].mxu1 }
 0x537   :  { %v3495_v32 = vpop.f32.mrb[14].mxu0  ;;  %v3536_v42 = vpop.f32.mrb[13].mxu1  ;;  %v3565_v46 = vadd.f32 %v3556_v63, %v3534_v38  ;;  %v3564_v24 = vadd.f32 %v3556_v63, %v3493_v50 }
 0x538   :  { %v9274_v36 = vmax.f32 %v3563_v58, 0.0  ;;  %v3567_v11 = vadd.f32 %v3561_v5, %v3495_v32  ;;  %v3497_v49 = vpop.f32.mrb[15].mxu0  ;;  %v3538_v45 = vpop.f32.mrb[14].mxu1  ;;  %v3566_v30 = vadd.f32 %v3556_v63, %v3536_v42  ;;  %v10766_v42 = vld [vmem:[#allocation37_spill] sm:$0xff] }
 0x539   :  { %v3540_v57 = vpop.f32.mrb[15].mxu1  ;;  %v3569_v54 = vadd.f32 %v3561_v5, %v3538_v45  ;;  %v9280_v35 = vmax.f32 %v3565_v46, 0.0  ;;  %v3568_v25 = vadd.f32 %v3561_v5, %v3497_v49  ;;  %v9304_v14 = vmax.f32 %v3564_v24, 0.0 }
 0x53a   :  { %v9276_v56 = vmax.f32 %v3567_v11, 0.0  ;;  %3586 = vrot.lane.b32.xlu1 %v9274_v36, %s6460_s20  ;;  %v3570_v31 = vadd.f32 %v3561_v5, %v3540_v57  ;;  %v9308_v59 = vmax.f32 %v3566_v30, 0.0 }
 0x53b   :  { %v9284_v43 = vmax.f32 %v3569_v54, 0.0  ;;  %v9310_v13 = vmax.f32 %v3568_v25, 0.0 }
 0x53c   :  { %3588 = vrot.lane.b32.xlu0 %v9276_v56, %s6460_s20  ;;  %v9312_v4 = vmax.f32 %v3570_v31, 0.0 }
 0x53e   :  { %3594 = vrot.lane.b32.xlu1 %v9280_v35, %s6460_s20 }
 0x540   :  { %3596 = vrot.lane.b32.xlu0 %v9284_v43, %s6460_s20 }
 0x542   :  { %3813 = vrot.lane.b32.xlu1 %v9274_v36, %s6461_s0 }
 0x544   :  { %3815 = vrot.lane.b32.xlu0 %v9276_v56, %s6461_s0 }
 0x546   :  { %3821 = vrot.lane.b32.xlu1 %v9280_v35, %s6461_s0 }
 0x548   :  { %3823 = vrot.lane.b32.xlu0 %v9284_v43, %s6461_s0 }
 0x54a   :  { %3954 = vrot.lane.b32.xlu1 %v9274_v36, %s6462_s21 }
 0x54c   :  { %3956 = vrot.lane.b32.xlu0 %v9276_v56, %s6462_s21 }
 0x54e   :  { %3962 = vrot.lane.b32.xlu1 %v9280_v35, %s6462_s21 }
 0x550   :  { %3964 = vrot.lane.b32.xlu0 %v9284_v43, %s6462_s21 }
 0x552   :  { %3590 = vrot.lane.b32.xlu1 %v9304_v14, %s6460_s20 }
 0x554   :  { %3592 = vrot.lane.b32.xlu0 %v9310_v13, %s6460_s20 }
 0x556   :  { %3598 = vrot.lane.b32.xlu1 %v9308_v59, %s6460_s20 }
 0x558   :  { %3600 = vrot.lane.b32.xlu0 %v9312_v4, %s6460_s20 }
 0x55a   :  { %4095 = vrot.lane.b32.xlu1 %v9274_v36, %s6463_s22 }
 0x55c   :  { %4097 = vrot.lane.b32.xlu0 %v9276_v56, %s6463_s22 }
 0x55e   :  { %3817 = vrot.lane.b32.xlu1 %v9304_v14, %s6461_s0 }
 0x560   :  { %4105 = vrot.lane.b32.xlu0 %v9284_v43, %s6463_s22 }
 0x562   :  { %3825 = vrot.lane.b32.xlu1 %v9308_v59, %s6461_s0 }
 0x564   :  { %4238 = vrot.lane.b32.xlu0 %v9276_v56, %s6464_s23 }
 0x566   :  { %3958 = vrot.lane.b32.xlu1 %v9304_v14, %s6462_s21 }
 0x568   :  { %4246 = vrot.lane.b32.xlu0 %v9284_v43, %s6464_s23 }
 0x56a   :  { %3966 = vrot.lane.b32.xlu1 %v9308_v59, %s6462_s21 }
 0x56c   :  { %3819 = vrot.lane.b32.xlu0 %v9310_v13, %s6461_s0 }
 0x56e   :  { %4099 = vrot.lane.b32.xlu1 %v9304_v14, %s6463_s22 }
 0x570   :  { %3827 = vrot.lane.b32.xlu0 %v9312_v4, %s6461_s0 }
 0x572   :  { %4103 = vrot.lane.b32.xlu1 %v9280_v35, %s6463_s22 }
 0x574   :  { %4379 = vrot.lane.b32.xlu0 %v9276_v56, %s6465_s24 }
 0x576   :  { %4107 = vrot.lane.b32.xlu1 %v9308_v59, %s6463_s22 }
 0x578   :  { %3960 = vrot.lane.b32.xlu0 %v9310_v13, %s6462_s21 }
 0x57a   :  { %4236 = vrot.lane.b32.xlu1 %v9274_v36, %s6464_s23 }
 0x57c   :  { %3968 = vrot.lane.b32.xlu0 %v9312_v4, %s6462_s21 }
 0x57e   :  { %4240 = vrot.lane.b32.xlu1 %v9304_v14, %s6464_s23 }
 0x580   :  { %4387 = vrot.lane.b32.xlu0 %v9284_v43, %s6465_s24 }
 0x582   :  { %4244 = vrot.lane.b32.xlu1 %v9280_v35, %s6464_s23 }
 0x584   :  { %4101 = vrot.lane.b32.xlu0 %v9310_v13, %s6463_s22 }
 0x586   :  { %4248 = vrot.lane.b32.xlu1 %v9308_v59, %s6464_s23 }
 0x588   :  { %4109 = vrot.lane.b32.xlu0 %v9312_v4, %s6463_s22 }
 0x58a   :  { %4377 = vrot.lane.b32.xlu1 %v9274_v36, %s6465_s24 }
 0x58c   :  { %4520 = vrot.lane.b32.xlu0 %v9276_v56, %s6466_s25 }
 0x58e   :  { %4381 = vrot.lane.b32.xlu1 %v9304_v14, %s6465_s24 }
 0x590   :  { %4242 = vrot.lane.b32.xlu0 %v9310_v13, %s6464_s23 }
 0x592   :  { %4385 = vrot.lane.b32.xlu1 %v9280_v35, %s6465_s24 }
 0x594   :  { %4250 = vrot.lane.b32.xlu0 %v9312_v4, %s6464_s23 }
 0x596   :  { %4389 = vrot.lane.b32.xlu1 %v9308_v59, %s6465_s24 }
 0x598   :  { %4528 = vrot.lane.b32.xlu0 %v9284_v43, %s6466_s25 }
 0x59a   :  { %4518 = vrot.lane.b32.xlu1 %v9274_v36, %s6466_s25 }
 0x59c   :  { %4383 = vrot.lane.b32.xlu0 %v9310_v13, %s6465_s24 }
 0x59e   :  { %4522 = vrot.lane.b32.xlu1 %v9304_v14, %s6466_s25 }
 0x5a0   :  { %4391 = vrot.lane.b32.xlu0 %v9312_v4, %s6465_s24 }
 0x5a2   :  { %4526 = vrot.lane.b32.xlu1 %v9280_v35, %s6466_s25 }
 0x5a4   :  { %4661 = vrot.lane.b32.xlu0 %v9276_v56, %s6467_s30 }
 0x5a6   :  { %4530 = vrot.lane.b32.xlu1 %v9308_v59, %s6466_s25 }
 0x5a8   :  { %4524 = vrot.lane.b32.xlu0 %v9310_v13, %s6466_s25 }
 0x5aa   :  { %4659 = vrot.lane.b32.xlu1 %v9274_v36, %s6467_s30 }
 0x5ac   :  { %v3587_v47 = vpop.permute.xlu1 %3586  ;;  %4532 = vrot.lane.b32.xlu0 %v9312_v4, %s6466_s25 }
 0x5ae   :  { %4663 = vrot.lane.b32.xlu1 %v9304_v14, %s6467_s30  ;;  %v3589_v29 = vpop.permute.xlu0 %3588 }
 0x5b0   :  { %v3595_v48 = vpop.permute.xlu1 %3594  ;;  %4669 = vrot.lane.b32.xlu0 %v9284_v43, %s6467_s30 }
 0x5b2   :  { %4667 = vrot.lane.b32.xlu1 %v9280_v35, %s6467_s30  ;;  %v3597_v39 = vpop.permute.xlu0 %3596 }
 0x5b4   :  { %v9412_v17 = vpop.permute.xlu1 %3813  ;;  %4665 = vrot.lane.b32.xlu0 %v9310_v13, %s6467_s30 }
 0x5b6   :  { %4671 = vrot.lane.b32.xlu1 %v9308_v59, %s6467_s30  ;;  %v9418_v6 = vpop.permute.xlu0 %3815 }
 0x5b8   :  { %v9423_v7 = vpop.permute.xlu1 %3821  ;;  %4673 = vrot.lane.b32.xlu0 %v9312_v4, %s6467_s30 }
 0x5ba   :  { %4804 = vperm.xlu1 %6372, %v4800_v33   ;;  %v9430_v21 = vpop.permute.xlu0 %3823 }
 0x5bc   :  { %v9432_v60 = vpop.permute.xlu1 %3954  ;;  %4809 = vperm.xlu0 %6371, %v4801_v3  }
 0x5be   :  { %v9434_v63 = vpop.permute.xlu0 %3956 }
 0x5c0   :  { %v9436_v5 = vpop.permute.xlu1 %3962 }
 0x5c2   :  { %v9438_v51 = vpop.permute.xlu0 %3964 }
 0x5c4   :  { %v3591_v58 = vpop.permute.xlu1 %3590 }
 0x5c5   :  { %v3606_v50 = vsel %vm397_vm0, %v3587_v47, %v3591_v58  ;;  %v3604_v24 = vsel %vm397_vm0, %v3591_v58, %v3595_v48 }
 0x5c6   :  { %v3593_v38 = vpop.permute.xlu0 %3592  ;;  %v3611_v46 = vmul.f32 %v3606_v50, %v10766_v42 }
 0x5c7   :  { %v3607_v32 = vsel %vm397_vm0, %v3589_v29, %v3593_v38  ;;  %v3605_v11 = vsel %vm397_vm0, %v3593_v38, %v3597_v39 }
 0x5c8   :  { %v3615_v49 = vmul.f32 %v3607_v32, %v10766_v42  ;;  %v3599_v45 = vpop.permute.xlu1 %3598  ;;  %v3616_v31 = vmul.f32 %v3605_v11, %v10690_v8 }
 0x5c9   :  { %v3602_v57 = vsel %vm397_vm0, %v3595_v48, %v3599_v45  ;;  %v3608_v54 = vsel %vm397_vm0, %v3599_v45, %v3587_v47  ;;  %v3612_v48 = vmul.f32 %v3604_v24, %v10690_v8 }
 0x5ca   :  { %v3601_v30 = vpop.permute.xlu0 %3600  ;;  %v3621_v25 = vpack.c.bf16 %v3615_v49, %v3611_v46  ;;  %v3610_v50 = vmul.f32 %v3608_v54, %v10691_v22  ;;  %v3613_v38 = vmul.f32 %v3602_v57, %v10689_v23  ;;  %v6439_v49 = vld [vmem:[%s10292_s8] sm:$0xff]   ;;  %v3582_v54 = vpack.c.bf16 %v9312_v4, %v9308_v59 }
 0x5cb   :  { %v3603_v33 = vsel %vm397_vm0, %v3597_v39, %v3601_v30  ;;  %v3609_v3 = vsel %vm397_vm0, %v3601_v30, %v3589_v29  ;;  %v3622_v11 = vpack.c.bf16 %v3616_v31, %v3612_v48  ;;  %v3580_v29 = vpack.c.bf16 %v9310_v13, %v9304_v14 }
 0x5cc   :  { %v3614_v32 = vmul.f32 %v3609_v3, %v10691_v22  ;;  %v3617_v47 = vmul.f32 %v3603_v33, %v10689_v23  ;;  %v9463_v45 = vpop.permute.xlu1 %4095  ;;  %3633 = vmatprep.subr.bf16.mxu0 %v3621_v25  ;;  %v3579_v30 = vpack.c.bf16 %v9276_v56, %v9274_v36  ;;  %v3581_v14 = vpack.c.bf16 %v9284_v43, %v9280_v35  ;;  %v6440_v36 = vld [vmem:[%s10292_s8 + $0x20] sm:$0xff]  }
 0x5ce   :  { %v3620_v58 = vpack.c.bf16 %v3614_v32, %v3610_v50  ;;  %v9466_v46 = vpop.permute.xlu0 %4097  ;;  %v3623_v39 = vpack.c.bf16 %v3617_v47, %v3613_v38 }
 0x5d0   :  { %v3818_v57 = vpop.permute.xlu1 %3817  ;;  %3634 = vmatpush1.bf16.msra.mxu0 %v3620_v58  ;;  %3676 = vmatprep.subr.bf16.mxu1 %v3623_v39 }
 0x5d1   :  { %3677 = vmatpush1.bf16.msra.mxu1 %v3622_v11  ;;  %3727 = vmatprep.subr.bf16.mxu0 %v3580_v29  ;;  %v3833_v35 = vsel %vm677_vm1, %v9412_v17, %v3818_v57  ;;  %v3831_v48 = vsel %vm677_vm1, %v3818_v57, %v9423_v7 }
 0x5d2   :  { %3770 = vmatprep.subr.bf16.mxu1 %v3582_v54  ;;  %v9475_v24 = vpop.permute.xlu0 %4105  ;;  %v3838_v33 = vmul.f32 %v3833_v35, %v10692_v18 }
 0x5d3   :  { %6103 = vmatmul.mubr.msk.bf16.vlgmr.msra.gmra.mrb[16].mxu0 %vm3629_vm9, %v6439_v49 }
 0x5d4   :  { %v3826_v13 = vpop.permute.xlu1 %3825  ;;  %6104 = vmatmul.mubr.msk.bf16.vlgmr.msra.gmra.mrb[16].mxu1 %vm3629_vm9, %v6439_v49  ;;  %3728 = vmatpush1.bf16.msra.mxu0 %v3579_v30 }
 0x5d5   :  { %3771 = vmatpush1.bf16.msra.mxu1 %v3581_v14  ;;  %3759 = vmatprep.mubr.bf16.mxu0 %v10565_v40  ;;  %v3829_v32 = vsel %vm677_vm1, %v9423_v7, %v3826_v13  ;;  %v3835_v47 = vsel %vm677_vm1, %v3826_v13, %v9412_v17  ;;  %v3839_v14 = vmul.f32 %v3831_v48, %v10695_v19 }
 0x5d6   :  { %v9484_v59 = vpop.permute.xlu0 %4238  ;;  %3802 = vmatprep.mubr.bf16.mxu1 %v10565_v40  ;;  %v3837_v17 = vmul.f32 %v3835_v47, %v10694_v16  ;;  %v3840_v54 = vmul.f32 %v3829_v32, %v10693_v27 }
 0x5d8   :  { %v3959_v4 = vpop.permute.xlu1 %3958 }
 0x5da   :  { %v9487_v25 = vpop.permute.xlu0 %4246 }
 0x5dc   :  { %v3967_v56 = vpop.permute.xlu1 %3966 }
 0x5de   :  { %v3820_v43 = vpop.permute.xlu0 %3819 }
 0x5df   :  { %v3834_v31 = vsel %vm677_vm1, %v9418_v6, %v3820_v43  ;;  %6106 = vmatmul.mubr.msk.bf16.vlgmr.msra.gmra.mrb[16].mxu0 %vm3629_vm9, %v6440_v36  ;;  %v3832_v3 = vsel %vm677_vm1, %v3820_v43, %v9430_v21 }
 0x5e0   :  { %v3842_v50 = vmul.f32 %v3834_v31, %v10692_v18  ;;  %v9504_v38 = vpop.permute.xlu1 %4099  ;;  %6107 = vmatmul.mubr.msk.bf16.vlgmr.msra.gmra.mrb[16].mxu1 %vm3629_vm9, %v6440_v36  ;;  %3892 = vmatprep.mubr.bf16.mxu0 %v10565_v40  ;;  %v3843_v11 = vmul.f32 %v3832_v3, %v10695_v19  ;;  %v3974_v31 = vsel %vm871_vm3, %v9432_v60, %v3959_v4 }
 0x5e1   :  { %3935 = vmatprep.mubr.bf16.mxu1 %v10565_v40 }
 0x5e2   :  { %v3828_v58 = vpop.permute.xlu0 %3827  ;;  %v3849_v39 = vpack.c.bf16 %v3842_v50, %v3838_v33  ;;  %v3850_v35 = vpack.c.bf16 %v3843_v11, %v3839_v14  ;;  %v3979_v50 = vmul.f32 %v3974_v31, %v10697_v62  ;;  %v3972_v11 = vsel %vm871_vm3, %v3959_v4, %v9436_v5 }
 0x5e3   :  { %v3830_v29 = vsel %vm677_vm1, %v9430_v21, %v3828_v58  ;;  %v3836_v49 = vsel %vm677_vm1, %v3828_v58, %v9418_v6  ;;  %v6441_v6 = vld [vmem:[%s10292_s8 + $0x8] sm:$0xff]   ;;  %v3970_v58 = vsel %vm871_vm3, %v9436_v5, %v3967_v56  ;;  %v3980_v14 = vmul.f32 %v3972_v11, %v10707_v20 }
 0x5e4   :  { %v3841_v30 = vmul.f32 %v3836_v49, %v10694_v16  ;;  %v3844_v7 = vmul.f32 %v3830_v29, %v10693_v27  ;;  %v4104_v57 = vpop.permute.xlu1 %4103  ;;  %3860 = vmatprep.subr.bf16.mxu0 %v3849_v39  ;;  %v3976_v39 = vsel %vm871_vm3, %v3967_v56, %v9432_v60  ;;  %v3981_v56 = vmul.f32 %v3970_v58, %v10705_v55 }
 0x5e5   :  { %v3978_v60 = vmul.f32 %v3976_v39, %v10706_v61  ;;  %v4115_v31 = vsel %vm1065_vm4, %v9463_v45, %v9504_v38 }
 0x5e6   :  { %v3848_v13 = vpack.c.bf16 %v3841_v30, %v3837_v17  ;;  %v9530_v36 = vpop.permute.xlu0 %4379  ;;  %v3851_v21 = vpack.c.bf16 %v3844_v7, %v3840_v54 }
 0x5e8   :  { %v4108_v43 = vpop.permute.xlu1 %4107  ;;  %3861 = vmatpush1.bf16.msra.mxu0 %v3848_v13  ;;  %3903 = vmatprep.subr.bf16.mxu1 %v3851_v21 }
 0x5e9   :  { %3904 = vmatpush1.bf16.msra.mxu1 %v3850_v35  ;;  %v4111_v39 = vsel %vm1065_vm4, %v4104_v57, %v4108_v43  ;;  %v4117_v11 = vsel %vm1065_vm4, %v4108_v43, %v9463_v45 }
 0x5ea   :  { %v3961_v33 = vpop.permute.xlu0 %3960  ;;  %v4119_v45 = vmul.f32 %v4117_v11, %v10723_v44  ;;  %v4122_v43 = vmul.f32 %v4111_v39, %v10722_v52 }
 0x5eb   :  { %v3975_v3 = vsel %vm871_vm3, %v9434_v63, %v3961_v33  ;;  %6111 = vmatmul.mubr.msk.bf16.vlgmr.msra.gmra.mrb[16].mxu0 %vm3629_vm9, %v6441_v6  ;;  %v3973_v32 = vsel %vm871_vm3, %v3961_v33, %v9438_v51 }
 0x5ec   :  { %v3983_v47 = vmul.f32 %v3975_v3, %v10697_v62  ;;  %v9547_v48 = vpop.permute.xlu1 %4236  ;;  %6112 = vmatmul.mubr.msk.bf16.vlgmr.msra.gmra.mrb[16].mxu1 %vm3629_vm9, %v6441_v6  ;;  %4033 = vmatprep.mubr.bf16.mxu0 %v10565_v40  ;;  %v3984_v17 = vmul.f32 %v3973_v32, %v10707_v20 }
 0x5ed   :  { %4076 = vmatprep.mubr.bf16.mxu1 %v10565_v40 }
 0x5ee   :  { %v3969_v29 = vpop.permute.xlu0 %3968  ;;  %v3990_v49 = vpack.c.bf16 %v3983_v47, %v3979_v50  ;;  %v3991_v35 = vpack.c.bf16 %v3984_v17, %v3980_v14  ;;  %v4120_v50 = vmul.f32 %v4115_v31, %v10714_v26 }
 0x5ef   :  { %v3971_v54 = vsel %vm871_vm3, %v9438_v51, %v3969_v29  ;;  %v3977_v30 = vsel %vm871_vm3, %v3969_v29, %v9434_v63  ;;  %v6442_v63 = vld [vmem:[%s10292_s8 + $0x10] sm:$0xff]   ;;  %v4113_v29 = vsel %vm1065_vm4, %v9504_v38, %v4104_v57 }
 0x5f0   :  { %v3982_v7 = vmul.f32 %v3977_v30, %v10706_v61  ;;  %v3985_v5 = vmul.f32 %v3971_v54, %v10705_v55  ;;  %v4241_v4 = vpop.permute.xlu1 %4240  ;;  %4001 = vmatprep.subr.bf16.mxu0 %v3990_v49 }
 0x5f2   :  { %v3989_v13 = vpack.c.bf16 %v3982_v7, %v3978_v60  ;;  %v9573_v21 = vpop.permute.xlu0 %4387  ;;  %v3992_v51 = vpack.c.bf16 %v3985_v5, %v3981_v56  ;;  %v4121_v7 = vmul.f32 %v4113_v29, %v10716_v37 }
 0x5f4   :  { %v4245_v6 = vpop.permute.xlu1 %4244  ;;  %4002 = vmatpush1.bf16.msra.mxu0 %v3989_v13  ;;  %4044 = vmatprep.subr.bf16.mxu1 %v3992_v51  ;;  %v4256_v51 = vsel %vm1259_vm5, %v9547_v48, %v4241_v4 }
 0x5f5   :  { %4045 = vmatpush1.bf16.msra.mxu1 %v3991_v35 }
 0x5f6   :  { %v4102_v33 = vpop.permute.xlu0 %4101 }
 0x5f7   :  { %v4116_v3 = vsel %vm1065_vm4, %v9466_v46, %v4102_v33  ;;  %6116 = vmatmul.mubr.msk.bf16.vlgmr.msra.gmra.mrb[16].mxu0 %vm3629_vm9, %v6442_v63  ;;  %v4114_v32 = vsel %vm1065_vm4, %v4102_v33, %v9475_v24  ;;  %v10767_v33 = vld [vmem:[#allocation73_spill] sm:$0xff] }
 0x5f8   :  { %v4124_v47 = vmul.f32 %v4116_v3, %v10714_v26  ;;  %v4249_v58 = vpop.permute.xlu1 %4248  ;;  %6117 = vmatmul.mubr.msk.bf16.vlgmr.msra.gmra.mrb[16].mxu1 %vm3629_vm9, %v6442_v63  ;;  %4174 = vmatprep.mubr.bf16.mxu0 %v10565_v40  ;;  %v4125_v54 = vmul.f32 %v4114_v32, %v10716_v37  ;;  %v4254_v63 = vsel %vm1259_vm5, %v4241_v4, %v4245_v6 }
 0x5f9   :  { %4217 = vmatprep.mubr.bf16.mxu1 %v10565_v40  ;;  %v4260_v3 = vmul.f32 %v4256_v51, %v10767_v33 }
 0x5fa   :  { %v4110_v49 = vpop.permute.xlu0 %4109  ;;  %v4131_v17 = vpack.c.bf16 %v4124_v47, %v4120_v50  ;;  %v4132_v13 = vpack.c.bf16 %v4125_v54, %v4121_v7  ;;  %v10768_v47 = vld [vmem:[#allocation74_spill] sm:$0xff] }
 0x5fb   :  { %v4112_v30 = vsel %vm1065_vm4, %v9475_v24, %v4110_v49  ;;  %v4118_v60 = vsel %vm1065_vm4, %v4110_v49, %v9466_v46  ;;  %v6443_v46 = vld [vmem:[%s10292_s8 + $0x18] sm:$0xff]   ;;  %v4261_v39 = vmul.f32 %v4254_v63, %v10768_v47  ;;  %v4252_v49 = vsel %vm1259_vm5, %v4245_v6, %v4249_v58 }
 0x5fc   :  { %v4123_v56 = vmul.f32 %v4118_v60, %v10723_v44  ;;  %v4126_v38 = vmul.f32 %v4112_v30, %v10722_v52  ;;  %v4378_v57 = vpop.permute.xlu1 %4377  ;;  %4142 = vmatprep.subr.bf16.mxu0 %v4131_v17  ;;  %v4258_v17 = vsel %vm1259_vm5, %v4249_v58, %v9547_v48  ;;  %v10770_v6 = vld [vmem:[#allocation77_spill] sm:$0xff] }
 0x5fd   :  { %v4263_v7 = vmul.f32 %v4258_v17, %v10770_v6 }
 0x5fe   :  { %v4130_v5 = vpack.c.bf16 %v4123_v56, %v4119_v45  ;;  %v9614_v14 = vpop.permute.xlu0 %4520  ;;  %v4133_v24 = vpack.c.bf16 %v4126_v38, %v4122_v43  ;;  %v10769_v56 = vld [vmem:[#allocation76_spill] sm:$0xff] }
 0x5ff   :  { %v4262_v38 = vmul.f32 %v4252_v49, %v10769_v56 }
 0x600   :  { %v4382_v35 = vpop.permute.xlu1 %4381  ;;  %4143 = vmatpush1.bf16.msra.mxu0 %v4130_v5  ;;  %4185 = vmatprep.subr.bf16.mxu1 %v4133_v24 }
 0x601   :  { %4186 = vmatpush1.bf16.msra.mxu1 %v4132_v13 }
 0x602   :  { %v4243_v31 = vpop.permute.xlu0 %4242 }
 0x603   :  { %v4255_v50 = vsel %vm1259_vm5, %v4243_v31, %v9487_v25  ;;  %v4257_v32 = vsel %vm1259_vm5, %v9484_v59, %v4243_v31  ;;  %6121 = vmatmul.mubr.msk.bf16.vlgmr.msra.gmra.mrb[16].mxu0 %vm3629_vm9, %v6443_v46 }
 0x604   :  { %v4264_v11 = vmul.f32 %v4257_v32, %v10767_v33  ;;  %v4265_v4 = vmul.f32 %v4255_v50, %v10768_v47  ;;  %v4386_v29 = vpop.permute.xlu1 %4385  ;;  %6122 = vmatmul.mubr.msk.bf16.vlgmr.msra.gmra.mrb[16].mxu1 %vm3629_vm9, %v6443_v46  ;;  %4315 = vmatprep.mubr.bf16.mxu0 %v10565_v40 }
 0x605   :  { %4358 = vmatprep.mubr.bf16.mxu1 %v10565_v40  ;;  %v4395_v63 = vsel %vm1453_vm6, %v4382_v35, %v4386_v29 }
 0x606   :  { %v4271_v54 = vpack.c.bf16 %v4264_v11, %v4260_v3  ;;  %v4251_v30 = vpop.permute.xlu0 %4250  ;;  %v4272_v60 = vpack.c.bf16 %v4265_v4, %v4261_v39  ;;  %v10771_v3 = vld [vmem:[#allocation78_spill] sm:$0xff]  ;;  %v10772_v11 = vld [vmem:[#allocation79_spill] sm:$0xff] }
 0x607   :  { %v4253_v45 = vsel %vm1259_vm5, %v9487_v25, %v4251_v30  ;;  %v4259_v43 = vsel %vm1259_vm5, %v4251_v30, %v9484_v59  ;;  %v6444_v25 = vld [vmem:[%s10292_s8 + $0x28] sm:$0xff]   ;;  %v4397_v59 = vsel %vm1453_vm6, %v4378_v57, %v4382_v35  ;;  %v4402_v4 = vmul.f32 %v4395_v63, %v10772_v11 }
 0x608   :  { %v4266_v5 = vmul.f32 %v4253_v45, %v10769_v56  ;;  %v4267_v48 = vmul.f32 %v4259_v43, %v10770_v6  ;;  %v4390_v58 = vpop.permute.xlu1 %4389  ;;  %4283 = vmatprep.subr.bf16.mxu0 %v4272_v60  ;;  %v4401_v50 = vmul.f32 %v4397_v59, %v10771_v3 }
 0x609   :  { %4284 = vmatpush1.bf16.msra.mxu0 %v4271_v54  ;;  %v4393_v54 = vsel %vm1453_vm6, %v4386_v29, %v4390_v58  ;;  %v4399_v30 = vsel %vm1453_vm6, %v4390_v58, %v4378_v57 }
 0x60a   :  { %v4273_v24 = vpack.c.bf16 %v4266_v5, %v4262_v38  ;;  %v4529_v13 = vpop.permute.xlu0 %4528  ;;  %v4274_v46 = vpack.c.bf16 %v4267_v48, %v4263_v7  ;;  %v4403_v5 = vmul.f32 %v4393_v54, %v10755_v0  ;;  %v4404_v29 = vmul.f32 %v4399_v30, %v10754_v53 }
 0x60c   :  { %v4519_v51 = vpop.permute.xlu1 %4518  ;;  %4326 = vmatprep.subr.bf16.mxu1 %v4274_v46 }
 0x60d   :  { %4327 = vmatpush1.bf16.msra.mxu1 %v4273_v24 }
 0x60e   :  { %v4384_v31 = vpop.permute.xlu0 %4383 }
 0x60f   :  { %v4396_v32 = vsel %vm1453_vm6, %v4384_v31, %v9573_v21  ;;  %v4398_v39 = vsel %vm1453_vm6, %v9530_v36, %v4384_v31  ;;  %6126 = vmatmul.mubr.msk.bf16.vlgmr.msra.gmra.mrb[16].mxu0 %vm3629_vm9, %v6444_v25 }
 0x610   :  { %v4405_v49 = vmul.f32 %v4398_v39, %v10771_v3  ;;  %v4406_v35 = vmul.f32 %v4396_v32, %v10772_v11  ;;  %v4523_v17 = vpop.permute.xlu1 %4522  ;;  %6127 = vmatmul.mubr.msk.bf16.vlgmr.msra.gmra.mrb[16].mxu1 %vm3629_vm9, %v6444_v25  ;;  %4456 = vmatprep.mubr.bf16.mxu0 %v10565_v40 }
 0x611   :  { %4499 = vmatprep.mubr.bf16.mxu1 %v10565_v40 }
 0x612   :  { %v4412_v60 = vpack.c.bf16 %v4405_v49, %v4401_v50  ;;  %v4392_v45 = vpop.permute.xlu0 %4391  ;;  %v4413_v43 = vpack.c.bf16 %v4406_v35, %v4402_v4 }
 0x613   :  { %v4394_v38 = vsel %vm1453_vm6, %v9573_v21, %v4392_v45  ;;  %v4400_v7 = vsel %vm1453_vm6, %v4392_v45, %v9530_v36  ;;  %v6445_v21 = vld [vmem:[%s10292_s8 + $0x30] sm:$0xff]   ;;  %v4538_v36 = vsel %vm1647_vm7, %v4519_v51, %v4523_v17 }
 0x614   :  { %v4407_v48 = vmul.f32 %v4394_v38, %v10755_v0  ;;  %v4408_v57 = vmul.f32 %v4400_v7, %v10754_v53  ;;  %v4527_v58 = vpop.permute.xlu1 %4526  ;;  %4424 = vmatprep.subr.bf16.mxu0 %v4413_v43  ;;  %v4542_v50 = vmul.f32 %v4538_v36, %v10759_v34 }
 0x615   :  { %4425 = vmatpush1.bf16.msra.mxu0 %v4412_v60  ;;  %v4536_v63 = vsel %vm1647_vm7, %v4523_v17, %v4527_v58 }
 0x616   :  { %v4414_v24 = vpack.c.bf16 %v4407_v48, %v4403_v5  ;;  %v4662_v46 = vpop.permute.xlu0 %4661  ;;  %v4415_v25 = vpack.c.bf16 %v4408_v57, %v4404_v29  ;;  %v4543_v4 = vmul.f32 %v4536_v63, %v10757_v10 }
 0x618   :  { %v4531_v59 = vpop.permute.xlu1 %4530  ;;  %4467 = vmatprep.subr.bf16.mxu1 %v4415_v25 }
 0x619   :  { %4468 = vmatpush1.bf16.msra.mxu1 %v4414_v24  ;;  %v4534_v54 = vsel %vm1647_vm7, %v4527_v58, %v4531_v59  ;;  %v4540_v30 = vsel %vm1647_vm7, %v4531_v59, %v4519_v51 }
 0x61a   :  { %v4525_v31 = vpop.permute.xlu0 %4524  ;;  %v4544_v5 = vmul.f32 %v4534_v54, %v10760_v15  ;;  %v4545_v29 = vmul.f32 %v4540_v30, %v10761_v1 }
 0x61b   :  { %v4537_v32 = vsel %vm1647_vm7, %v4525_v31, %v4529_v13  ;;  %v4539_v39 = vsel %vm1647_vm7, %v9614_v14, %v4525_v31  ;;  %6131 = vmatmul.mubr.msk.bf16.vlgmr.msra.gmra.mrb[16].mxu0 %vm3629_vm9, %v6445_v21 }
 0x61c   :  { %v4546_v49 = vmul.f32 %v4539_v39, %v10759_v34  ;;  %v4547_v35 = vmul.f32 %v4537_v32, %v10757_v10  ;;  %v4660_v17 = vpop.permute.xlu1 %4659  ;;  %6132 = vmatmul.mubr.msk.bf16.vlgmr.msra.gmra.mrb[16].mxu1 %vm3629_vm9, %v6445_v21  ;;  %4597 = vmatprep.mubr.bf16.mxu0 %v10565_v40 }
 0x61d   :  { %4640 = vmatprep.mubr.bf16.mxu1 %v10565_v40 }
 0x61e   :  { %v4553_v60 = vpack.c.bf16 %v4546_v49, %v4542_v50  ;;  %v4533_v45 = vpop.permute.xlu0 %4532  ;;  %v4554_v43 = vpack.c.bf16 %v4547_v35, %v4543_v4 }
 0x61f   :  { %v4535_v38 = vsel %vm1647_vm7, %v4529_v13, %v4533_v45  ;;  %v4541_v7 = vsel %vm1647_vm7, %v4533_v45, %v9614_v14  ;;  %v6446_v13 = vld [vmem:[%s10292_s8 + $0x38] sm:$0xff]  }
 0x620   :  { %v4548_v48 = vmul.f32 %v4535_v38, %v10760_v15  ;;  %v4549_v51 = vmul.f32 %v4541_v7, %v10761_v1  ;;  %v4664_v57 = vpop.permute.xlu1 %4663  ;;  %4565 = vmatprep.subr.bf16.mxu0 %v4554_v43 }
 0x621   :  { %4566 = vmatpush1.bf16.msra.mxu0 %v4553_v60  ;;  %v4679_v14 = vsel %vm1841_vm8, %v4660_v17, %v4664_v57 }
 0x622   :  { %v4555_v58 = vpack.c.bf16 %v4548_v48, %v4544_v5  ;;  %v4670_v24 = vpop.permute.xlu0 %4669  ;;  %v4556_v25 = vpack.c.bf16 %v4549_v51, %v4545_v29  ;;  %v4683_v63 = vmul.f32 %v4679_v14, %v10762_v12 }
 0x624   :  { %v4668_v21 = vpop.permute.xlu1 %4667  ;;  %4608 = vmatprep.subr.bf16.mxu1 %v4556_v25 }
 0x625   :  { %v4677_v36 = vsel %vm1841_vm8, %v4664_v57, %v4668_v21  ;;  %4609 = vmatpush1.bf16.msra.mxu1 %v4555_v58  ;;  %v6447_v57 = vld [vmem:[%s10292_s8 + $0x40] sm:$0xff]  }
 0x626   :  { %v4666_v59 = vpop.permute.xlu0 %4665  ;;  %v4684_v32 = vmul.f32 %v4677_v36, %v10763_v2 }
 0x627   :  { %v4678_v31 = vsel %vm1841_vm8, %v4666_v59, %v4670_v24  ;;  %v4680_v50 = vsel %vm1841_vm8, %v4662_v46, %v4666_v59  ;;  %6136 = vmatmul.mubr.msk.bf16.vlgmr.msra.gmra.mrb[16].mxu0 %vm3629_vm9, %v6446_v13 }
 0x628   :  { %v4687_v39 = vmul.f32 %v4680_v50, %v10762_v12  ;;  %v4688_v4 = vmul.f32 %v4678_v31, %v10763_v2  ;;  %v4672_v49 = vpop.permute.xlu1 %4671  ;;  %6137 = vmatmul.mubr.msk.bf16.vlgmr.msra.gmra.mrb[16].mxu1 %vm3629_vm9, %v6446_v13  ;;  %4738 = vmatprep.mubr.bf16.mxu0 %v10565_v40 }
 0x629   :  { %v4675_v35 = vsel %vm1841_vm8, %v4668_v21, %v4672_v49  ;;  %v4681_v54 = vsel %vm1841_vm8, %v4672_v49, %v4660_v17  ;;  %4781 = vmatprep.mubr.bf16.mxu1 %v10565_v40 }
 0x62a   :  { %v4694_v30 = vpack.c.bf16 %v4687_v39, %v4683_v63  ;;  %v4674_v60 = vpop.permute.xlu0 %4673  ;;  %v4695_v45 = vpack.c.bf16 %v4688_v4, %v4684_v32  ;;  %v4685_v7 = vmul.f32 %v4675_v35, %v10764_v9  ;;  %v4686_v5 = vmul.f32 %v4681_v54, %v10765_v41 }
 0x62b   :  { %v4676_v43 = vsel %vm1841_vm8, %v4670_v24, %v4674_v60  ;;  %v4682_v38 = vsel %vm1841_vm8, %v4674_v60, %v4662_v46  ;;  %v17_v46 = vstv %s10294_s11 }
 0x62c   :  { %v4689_v29 = vmul.f32 %v4676_v43, %v10764_v9  ;;  %v4690_v48 = vmul.f32 %v4682_v38, %v10765_v41  ;;  %4706 = vmatprep.subr.bf16.mxu0 %v4695_v45  ;;  %18 = vst [vmem:[#allocation2] sm:$0x1] %v17_v46 }
 0x62d   :  { %4707 = vmatpush1.bf16.msra.mxu0 %v4694_v30 }
 0x62e   :  { %v4696_v17 = vpack.c.bf16 %v4689_v29, %v4685_v7  ;;  %v4697_v51 = vpack.c.bf16 %v4690_v48, %v4686_v5 }
 0x630   :  { %4749 = vmatprep.subr.bf16.mxu1 %v4697_v51 }
 0x631   :  { %4750 = vmatpush1.bf16.msra.mxu1 %v4696_v17 }
 0x633   :  { %6141 = vmatmul.mubr.msk.bf16.vlgmr.msra.gmra.mrb[16].mxu0 %vm3629_vm9, %v6447_v57 }
 0x634   :  { %6142 = vmatmul.mubr.msk.bf16.vlgmr.msra.gmra.mrb[16].mxu1 %vm3629_vm9, %v6447_v57  ;;  %4906 = vmatprep.mubr.bf16.mxu0 %v10565_v40 }
 0x635   :  { %4947 = vmatprep.mubr.bf16.mxu1 %v10565_v40 }
 0x639   :  { %v4805_v58 = vpop.permute.xlu1 %4804 }
 0x63b   :  { %v4810_v24 = vpop.permute.xlu0 %4809 }
 0x706   :  { %v4740_v25 = vpop.f32.mrb[16].mxu0 }
 0x707   :  { %v4812_v13 = vadd.f32 %v4805_v58, %v4740_v25  ;;  %v4742_v14 = vpop.f32.mrb[17].mxu0  ;;  %v4783_v21 = vpop.f32.mrb[16].mxu1 }
 0x708   :  { %v4744_v36 = vpop.f32.mrb[18].mxu0  ;;  %v4785_v59 = vpop.f32.mrb[17].mxu1  ;;  %v4814_v31 = vadd.f32 %v4805_v58, %v4783_v21  ;;  %v4813_v45 = vadd.f32 %v4805_v58, %v4742_v14 }
 0x709   :  { %v9762_v63 = vmax.f32 %v4812_v13, 0.0  ;;  %v4816_v50 = vadd.f32 %v4810_v24, %v4744_v36  ;;  %v4746_v32 = vpop.f32.mrb[19].mxu0  ;;  %v4787_v39 = vpop.f32.mrb[18].mxu1  ;;  %v4815_v7 = vadd.f32 %v4805_v58, %v4785_v59  ;;  %v5930_v13 = vld [vmem:[#allocation2] sm:$0x1] }
 0x70a   :  { %v4789_v4 = vpop.f32.mrb[19].mxu1  ;;  %v4818_v35 = vadd.f32 %v4810_v24, %v4787_v39  ;;  %v9768_v54 = vmax.f32 %v4814_v31, 0.0  ;;  %v4817_v43 = vadd.f32 %v4810_v24, %v4746_v32  ;;  %v9826_v38 = vmax.f32 %v4813_v45, 0.0 }
 0x70b   :  { %v9764_v49 = vmax.f32 %v4816_v50, 0.0  ;;  %4834 = vrot.lane.b32.xlu1 %v9762_v63, %s6460_s20  ;;  %v4819_v29 = vadd.f32 %v4810_v24, %v4789_v4  ;;  %v9834_v48 = vmax.f32 %v4815_v7, 0.0 }
 0x70c   :  { %v9774_v60 = vmax.f32 %v4818_v35, 0.0  ;;  %v9830_v5 = vmax.f32 %v4817_v43, 0.0 }
 0x70d   :  { %4836 = vrot.lane.b32.xlu0 %v9764_v49, %s6460_s20  ;;  %v9838_v17 = vmax.f32 %v4819_v29, 0.0 }
 0x70f   :  { %4842 = vrot.lane.b32.xlu1 %v9768_v54, %s6460_s20 }
 0x711   :  { %4844 = vrot.lane.b32.xlu0 %v9774_v60, %s6460_s20 }
 0x713   :  { %5041 = vrot.lane.b32.xlu1 %v9762_v63, %s6461_s0 }
 0x715   :  { %5043 = vrot.lane.b32.xlu0 %v9764_v49, %s6461_s0 }
 0x717   :  { %5049 = vrot.lane.b32.xlu1 %v9768_v54, %s6461_s0 }
 0x719   :  { %5051 = vrot.lane.b32.xlu0 %v9774_v60, %s6461_s0 }
 0x71b   :  { %5168 = vrot.lane.b32.xlu1 %v9762_v63, %s6462_s21 }
 0x71d   :  { %5170 = vrot.lane.b32.xlu0 %v9764_v49, %s6462_s21 }
 0x71f   :  { %5176 = vrot.lane.b32.xlu1 %v9768_v54, %s6462_s21 }
 0x721   :  { %5178 = vrot.lane.b32.xlu0 %v9774_v60, %s6462_s21 }
 0x723   :  { %5295 = vrot.lane.b32.xlu1 %v9762_v63, %s6463_s22 }
 0x725   :  { %5297 = vrot.lane.b32.xlu0 %v9764_v49, %s6463_s22 }
 0x727   :  { %5303 = vrot.lane.b32.xlu1 %v9768_v54, %s6463_s22 }
 0x729   :  { %5305 = vrot.lane.b32.xlu0 %v9774_v60, %s6463_s22 }
 0x72b   :  { %5422 = vrot.lane.b32.xlu1 %v9762_v63, %s6464_s23 }
 0x72d   :  { %5424 = vrot.lane.b32.xlu0 %v9764_v49, %s6464_s23 }
 0x72f   :  { %5430 = vrot.lane.b32.xlu1 %v9768_v54, %s6464_s23 }
 0x731   :  { %5432 = vrot.lane.b32.xlu0 %v9774_v60, %s6464_s23 }
 0x733   :  { %5549 = vrot.lane.b32.xlu1 %v9762_v63, %s6465_s24 }
 0x735   :  { %5551 = vrot.lane.b32.xlu0 %v9764_v49, %s6465_s24 }
 0x737   :  { %5557 = vrot.lane.b32.xlu1 %v9768_v54, %s6465_s24 }
 0x739   :  { %5559 = vrot.lane.b32.xlu0 %v9774_v60, %s6465_s24 }
 0x73b   :  { %5676 = vrot.lane.b32.xlu1 %v9762_v63, %s6466_s25 }
 0x73d   :  { %5678 = vrot.lane.b32.xlu0 %v9764_v49, %s6466_s25 }
 0x73f   :  { %5684 = vrot.lane.b32.xlu1 %v9768_v54, %s6466_s25 }
 0x741   :  { %5686 = vrot.lane.b32.xlu0 %v9774_v60, %s6466_s25 }
 0x743   :  { %4838 = vrot.lane.b32.xlu1 %v9826_v38, %s6460_s20 }
 0x745   :  { %4840 = vrot.lane.b32.xlu0 %v9830_v5, %s6460_s20 }
 0x747   :  { %4846 = vrot.lane.b32.xlu1 %v9834_v48, %s6460_s20 }
 0x749   :  { %4848 = vrot.lane.b32.xlu0 %v9838_v17, %s6460_s20 }
 0x74b   :  { %5803 = vrot.lane.b32.xlu1 %v9762_v63, %s6467_s30 }
 0x74d   :  { %5805 = vrot.lane.b32.xlu0 %v9764_v49, %s6467_s30 }
 0x74f   :  { %5045 = vrot.lane.b32.xlu1 %v9826_v38, %s6461_s0 }
 0x751   :  { %5813 = vrot.lane.b32.xlu0 %v9774_v60, %s6467_s30 }
 0x753   :  { %5053 = vrot.lane.b32.xlu1 %v9834_v48, %s6461_s0 }
 0x755   :  { %5047 = vrot.lane.b32.xlu0 %v9830_v5, %s6461_s0 }
 0x757   :  { %5172 = vrot.lane.b32.xlu1 %v9826_v38, %s6462_s21 }
 0x759   :  { %5055 = vrot.lane.b32.xlu0 %v9838_v17, %s6461_s0 }
 0x75b   :  { %5180 = vrot.lane.b32.xlu1 %v9834_v48, %s6462_s21 }
 0x75d   :  { %5174 = vrot.lane.b32.xlu0 %v9830_v5, %s6462_s21 }
 0x75f   :  { %5299 = vrot.lane.b32.xlu1 %v9826_v38, %s6463_s22 }
 0x761   :  { %5182 = vrot.lane.b32.xlu0 %v9838_v17, %s6462_s21 }
 0x763   :  { %5307 = vrot.lane.b32.xlu1 %v9834_v48, %s6463_s22 }
 0x765   :  { %5301 = vrot.lane.b32.xlu0 %v9830_v5, %s6463_s22 }
 0x767   :  { %5426 = vrot.lane.b32.xlu1 %v9826_v38, %s6464_s23 }
 0x769   :  { %5309 = vrot.lane.b32.xlu0 %v9838_v17, %s6463_s22 }
 0x76b   :  { %5434 = vrot.lane.b32.xlu1 %v9834_v48, %s6464_s23 }
 0x76d   :  { %5428 = vrot.lane.b32.xlu0 %v9830_v5, %s6464_s23 }
 0x76f   :  { %5553 = vrot.lane.b32.xlu1 %v9826_v38, %s6465_s24 }
 0x771   :  { %5436 = vrot.lane.b32.xlu0 %v9838_v17, %s6464_s23 }
 0x773   :  { %5561 = vrot.lane.b32.xlu1 %v9834_v48, %s6465_s24 }
 0x775   :  { %5555 = vrot.lane.b32.xlu0 %v9830_v5, %s6465_s24 }
 0x777   :  { %5680 = vrot.lane.b32.xlu1 %v9826_v38, %s6466_s25 }
 0x779   :  { %5563 = vrot.lane.b32.xlu0 %v9838_v17, %s6465_s24 }
 0x77b   :  { %5688 = vrot.lane.b32.xlu1 %v9834_v48, %s6466_s25 }
 0x77d   :  { %v4835_v51 = vpop.permute.xlu1 %4834  ;;  %5682 = vrot.lane.b32.xlu0 %v9830_v5, %s6466_s25 }
 0x77f   :  { %5807 = vrot.lane.b32.xlu1 %v9826_v38, %s6467_s30  ;;  %v4837_v57 = vpop.permute.xlu0 %4836 }
 0x781   :  { %v4843_v46 = vpop.permute.xlu1 %4842  ;;  %5690 = vrot.lane.b32.xlu0 %v9838_v17, %s6466_s25 }
 0x783   :  { %5811 = vrot.lane.b32.xlu1 %v9768_v54, %s6467_s30  ;;  %v4845_v58 = vpop.permute.xlu0 %4844 }
 0x785   :  { %v9902_v24 = vpop.permute.xlu1 %5041  ;;  %5809 = vrot.lane.b32.xlu0 %v9830_v5, %s6467_s30 }
 0x787   :  { %5815 = vrot.lane.b32.xlu1 %v9834_v48, %s6467_s30  ;;  %v9908_v25 = vpop.permute.xlu0 %5043 }
 0x789   :  { %v9910_v14 = vpop.permute.xlu1 %5049  ;;  %5817 = vrot.lane.b32.xlu0 %v9838_v17, %s6467_s30 }
 0x78b   :  { %5933 = vperm.xlu1 %6372, %v5930_v13   ;;  %v9914_v21 = vpop.permute.xlu0 %5051 }
 0x78d   :  { %v9916_v36 = vpop.permute.xlu1 %5168 }
 0x78f   :  { %v9918_v59 = vpop.permute.xlu0 %5170 }
 0x791   :  { %v9920_v31 = vpop.permute.xlu1 %5176 }
 0x793   :  { %v9922_v50 = vpop.permute.xlu0 %5178 }
 0x795   :  { %v9924_v32 = vpop.permute.xlu1 %5295 }
 0x797   :  { %v9926_v39 = vpop.permute.xlu0 %5297 }
 0x799   :  { %v9928_v4 = vpop.permute.xlu1 %5303 }
 0x79b   :  { %v9930_v35 = vpop.permute.xlu0 %5305 }
 0x79d   :  { %v9932_v45 = vpop.permute.xlu1 %5422 }
 0x79f   :  { %v9934_v43 = vpop.permute.xlu0 %5424 }
 0x7a1   :  { %v9936_v7 = vpop.permute.xlu1 %5430 }
 0x7a3   :  { %v9938_v29 = vpop.permute.xlu0 %5432 }
 0x7a5   :  { %v9940_v13 = vpop.permute.xlu1 %5549 }
 0x7a6   :  { %10773 = vst [vmem:[#allocation20_spill] sm:$0xff] %v9940_v13 }
 0x7a7   :  { %v9942_v30 = vpop.permute.xlu0 %5551 }
 0x7a8   :  { %10774 = vst [vmem:[#allocation21_spill] sm:$0xff] %v9942_v30 }
 0x7a9   :  { %v9944_v41 = vpop.permute.xlu1 %5557 }
 0x7aa   :  { %10775 = vst [vmem:[#allocation38_spill] sm:$0xff] %v9944_v41 }
 0x7ab   :  { %v9946_v9 = vpop.permute.xlu0 %5559 }
 0x7ac   :  { %10776 = vst [vmem:[#allocation59_spill] sm:$0xff] %v9946_v9 }
 0x7ad   :  { %v9948_v2 = vpop.permute.xlu1 %5676 }
 0x7ae   :  { %10777 = vst [vmem:[#allocation60_spill] sm:$0xff] %v9948_v2 }
 0x7af   :  { %v9950_v12 = vpop.permute.xlu0 %5678 }
 0x7b0   :  { %10778 = vst [vmem:[#allocation63_spill] sm:$0xff] %v9950_v12 }
 0x7b1   :  { %v9952_v1 = vpop.permute.xlu1 %5684 }
 0x7b2   :  { %10779 = vst [vmem:[#allocation62_spill] sm:$0xff] %v9952_v1 }
 0x7b3   :  { %v9954_v15 = vpop.permute.xlu0 %5686 }
 0x7b4   :  { %10780 = vst [vmem:[#allocation33_spill] sm:$0xff] %v9954_v15 }
 0x7b5   :  { %v4839_v10 = vpop.permute.xlu1 %4838 }
 0x7b6   :  { %v4854_v34 = vsel %vm397_vm0, %v4835_v51, %v4839_v10  ;;  %v4852_v11 = vsel %vm397_vm0, %v4839_v10, %v4843_v46 }
 0x7b7   :  { %v4841_v53 = vpop.permute.xlu0 %4840  ;;  %v4859_v30 = vmul.f32 %v4854_v34, %v10766_v42  ;;  %v4860_v10 = vmul.f32 %v4852_v11, %v10690_v8  ;;  %v10781_v11 = vpack.c.bf16 %v9764_v49, %v9762_v63 }
 0x7b8   :  { %v4855_v0 = vsel %vm397_vm0, %v4837_v57, %v4841_v53  ;;  %v4853_v9 = vsel %vm397_vm0, %v4841_v53, %v4845_v58 }
 0x7b9   :  { %v4863_v2 = vmul.f32 %v4855_v0, %v10766_v42  ;;  %v4847_v12 = vpop.permute.xlu1 %4846  ;;  %v4864_v41 = vmul.f32 %v4853_v9, %v10690_v8 }
 0x7ba   :  { %v4850_v1 = vsel %vm397_vm0, %v4843_v46, %v4847_v12  ;;  %v4856_v15 = vsel %vm397_vm0, %v4847_v12, %v4835_v51 }
 0x7bb   :  { %v4849_v3 = vpop.permute.xlu0 %4848  ;;  %v4868_v13 = vpack.c.bf16 %v4863_v2, %v4859_v30  ;;  %v4858_v53 = vmul.f32 %v4856_v15, %v10691_v22  ;;  %v4861_v42 = vmul.f32 %v4850_v1, %v10689_v23  ;;  %v4869_v46 = vpack.c.bf16 %v4864_v41, %v4860_v10 }
 0x7bc   :  { %v4851_v34 = vsel %vm397_vm0, %v4845_v58, %v4849_v3  ;;  %v4857_v0 = vsel %vm397_vm0, %v4849_v3, %v4837_v57  ;;  %v4829_v3 = vpack.c.bf16 %v9830_v5, %v9826_v38  ;;  %v4830_v1 = vpack.c.bf16 %v9774_v60, %v9768_v54 }
 0x7bd   :  { %v4862_v6 = vmul.f32 %v4857_v0, %v10691_v22  ;;  %v4865_v12 = vmul.f32 %v4851_v34, %v10689_v23  ;;  %v9979_v51 = vpop.permute.xlu1 %5803  ;;  %4874 = vmatprep.subr.bf16.mxu0 %v4868_v13  ;;  %v4831_v22 = vpack.c.bf16 %v9838_v17, %v9834_v48  ;;  %v4866_v23 = vld [vmem:[%s10295_s10] sm:$0x1] }
 0x7bf   :  { %v4867_v2 = vpack.c.bf16 %v4862_v6, %v4858_v53  ;;  %v9982_v9 = vpop.permute.xlu0 %5805  ;;  %v4870_v30 = vpack.c.bf16 %v4865_v12, %v4861_v42 }
 0x7c1   :  { %v5046_v15 = vpop.permute.xlu1 %5045  ;;  %4875 = vmatpush1.bf16.msra.mxu0 %v4867_v2  ;;  %4915 = vmatprep.subr.bf16.mxu1 %v4870_v30 }
 0x7c2   :  { %4916 = vmatpush1.bf16.msra.mxu1 %v4869_v46  ;;  %4959 = vmatprep.subr.bf16.mxu0 %v4829_v3  ;;  %v5061_v41 = vsel %vm677_vm1, %v9902_v24, %v5046_v15  ;;  %v5059_v38 = vsel %vm677_vm1, %v5046_v15, %v9910_v14 }
 0x7c3   :  { %5000 = vmatprep.subr.bf16.mxu1 %v4831_v22  ;;  %v9991_v8 = vpop.permute.xlu0 %5813  ;;  %v5066_v54 = vmul.f32 %v5061_v41, %v10692_v18  ;;  %v5067_v48 = vmul.f32 %v5059_v38, %v10695_v19 }
 0x7c4   :  { %6144 = vmatmul.mubr.msk.bf16.vlgmr.msra.gmra.mrb[20].mxu0 %vm3629_vm9, %v4866_v23 }
 0x7c5   :  { %v5054_v6 = vpop.permute.xlu1 %5053  ;;  %6145 = vmatmul.mubr.msk.bf16.vlgmr.msra.gmra.mrb[20].mxu1 %vm3629_vm9, %v4866_v23  ;;  %4960 = vmatpush1.bf16.msra.mxu0 %v10781_v11 }
 0x7c6   :  { %5001 = vmatpush1.bf16.msra.mxu1 %v4830_v1  ;;  %4991 = vmatprep.mubr.bf16.mxu0 %v10565_v40  ;;  %v5063_v60 = vsel %vm677_vm1, %v5054_v6, %v9902_v24  ;;  %v5057_v17 = vsel %vm677_vm1, %v9910_v14, %v5054_v6  ;;  %v6143_v24 = vld [vmem:[%s10295_s10 + $0x4] sm:$0x1] }
 0x7c7   :  { %v5048_v5 = vpop.permute.xlu0 %5047  ;;  %5032 = vmatprep.mubr.bf16.mxu1 %v10565_v40  ;;  %v5065_v34 = vmul.f32 %v5063_v60, %v10694_v16  ;;  %v5068_v12 = vmul.f32 %v5057_v17, %v10693_v27 }
 0x7c8   :  { %v5060_v63 = vsel %vm677_vm1, %v5048_v5, %v9914_v21  ;;  %v5062_v49 = vsel %vm677_vm1, %v9908_v25, %v5048_v5 }
 0x7c9   :  { %v5070_v57 = vmul.f32 %v5062_v49, %v10692_v18  ;;  %v5071_v58 = vmul.f32 %v5060_v63, %v10695_v19  ;;  %v5173_v13 = vpop.permute.xlu1 %5172 }
 0x7ca   :  { %v5188_v14 = vsel %vm871_vm3, %v9916_v36, %v5173_v13  ;;  %v5186_v10 = vsel %vm871_vm3, %v5173_v13, %v9920_v31 }
 0x7cb   :  { %v5077_v0 = vpack.c.bf16 %v5071_v58, %v5067_v48  ;;  %v5056_v53 = vpop.permute.xlu0 %5055  ;;  %v5076_v42 = vpack.c.bf16 %v5070_v57, %v5066_v54  ;;  %v5194_v22 = vmul.f32 %v5186_v10, %v10707_v20 }
 0x7cc   :  { %v5058_v18 = vsel %vm677_vm1, %v9914_v21, %v5056_v53  ;;  %v5064_v19 = vsel %vm677_vm1, %v5056_v53, %v9908_v25  ;;  %6146 = vmatmul.mubr.msk.bf16.vlgmr.msra.gmra.mrb[24].mxu0 %vm3629_vm9, %v6143_v24  ;;  %v5193_v25 = vmul.f32 %v5188_v14, %v10697_v62 }
 0x7cd   :  { %v5069_v2 = vmul.f32 %v5064_v19, %v10694_v16  ;;  %v5072_v30 = vmul.f32 %v5058_v18, %v10693_v27  ;;  %v5181_v46 = vpop.permute.xlu1 %5180  ;;  %6147 = vmatmul.mubr.msk.bf16.vlgmr.msra.gmra.mrb[24].mxu1 %vm3629_vm9, %v6143_v24  ;;  %5082 = vmatprep.subr.bf16.mxu0 %v5076_v42 }
 0x7ce   :  { %5114 = vmatprep.mubr.bf16.mxu0 %v10565_v40  ;;  %5155 = vmatprep.mubr.bf16.mxu1 %v10565_v40  ;;  %v5190_v16 = vsel %vm871_vm3, %v5181_v46, %v9916_v36  ;;  %v5184_v1 = vsel %vm871_vm3, %v9920_v31, %v5181_v46  ;;  %v6148_v36 = vld [vmem:[%s10295_s10 + $0x1] sm:$0x1] }
 0x7cf   :  { %v5075_v21 = vpack.c.bf16 %v5069_v2, %v5065_v34  ;;  %v5175_v3 = vpop.permute.xlu0 %5174  ;;  %v5078_v15 = vpack.c.bf16 %v5072_v30, %v5068_v12  ;;  %v5192_v38 = vmul.f32 %v5190_v16, %v10706_v61  ;;  %v5195_v63 = vmul.f32 %v5184_v1, %v10705_v55 }
 0x7d0   :  { %v5187_v27 = vsel %vm871_vm3, %v5175_v3, %v9922_v50  ;;  %v5189_v23 = vsel %vm871_vm3, %v9918_v59, %v5175_v3 }
 0x7d1   :  { %v5197_v41 = vmul.f32 %v5189_v23, %v10697_v62  ;;  %v5198_v6 = vmul.f32 %v5187_v27, %v10707_v20  ;;  %v5300_v11 = vpop.permute.xlu1 %5299  ;;  %5083 = vmatpush1.bf16.msra.mxu0 %v5075_v21  ;;  %5123 = vmatprep.subr.bf16.mxu1 %v5078_v15 }
 0x7d2   :  { %5124 = vmatpush1.bf16.msra.mxu1 %v5077_v0  ;;  %v5315_v62 = vsel %vm1065_vm4, %v9924_v32, %v5300_v11  ;;  %v5313_v49 = vsel %vm1065_vm4, %v5300_v11, %v9928_v4 }
 0x7d3   :  { %v5204_v5 = vpack.c.bf16 %v5198_v6, %v5194_v22  ;;  %v5183_v54 = vpop.permute.xlu0 %5182  ;;  %v5203_v60 = vpack.c.bf16 %v5197_v41, %v5193_v25  ;;  %v5321_v24 = vmul.f32 %v5313_v49, %v10716_v37 }
 0x7d4   :  { %v5185_v20 = vsel %vm871_vm3, %v9922_v50, %v5183_v54  ;;  %v5191_v31 = vsel %vm871_vm3, %v5183_v54, %v9918_v59  ;;  %6149 = vmatmul.mubr.msk.bf16.vlgmr.msra.gmra.mrb[28].mxu0 %vm3629_vm9, %v6148_v36  ;;  %v5320_v59 = vmul.f32 %v5315_v62, %v10714_v26 }
 0x7d5   :  { %v5196_v48 = vmul.f32 %v5191_v31, %v10706_v61  ;;  %v5199_v17 = vmul.f32 %v5185_v20, %v10705_v55  ;;  %v5308_v57 = vpop.permute.xlu1 %5307  ;;  %6150 = vmatmul.mubr.msk.bf16.vlgmr.msra.gmra.mrb[28].mxu1 %vm3629_vm9, %v6148_v36  ;;  %5209 = vmatprep.subr.bf16.mxu0 %v5203_v60 }
 0x7d6   :  { %5241 = vmatprep.mubr.bf16.mxu0 %v10565_v40  ;;  %5282 = vmatprep.mubr.bf16.mxu1 %v10565_v40  ;;  %v5317_v61 = vsel %vm1065_vm4, %v5308_v57, %v9924_v32  ;;  %v5311_v0 = vsel %vm1065_vm4, %v9928_v4, %v5308_v57  ;;  %v6151_v32 = vld [vmem:[%s10295_s10 + $0x2] sm:$0x1] }
 0x7d7   :  { %v5202_v50 = vpack.c.bf16 %v5196_v48, %v5192_v38  ;;  %v5302_v58 = vpop.permute.xlu0 %5301  ;;  %v5205_v13 = vpack.c.bf16 %v5199_v17, %v5195_v63  ;;  %v5319_v14 = vmul.f32 %v5317_v61, %v10723_v44  ;;  %v5322_v2 = vmul.f32 %v5311_v0, %v10722_v52  ;;  %v10784_v63 = vld [vmem:[#allocation20_spill] sm:$0xff]  ;;  %v10785_v17 = vld [vmem:[#allocation78_spill] sm:$0xff] }
 0x7d8   :  { %v5314_v55 = vsel %vm1065_vm4, %v5302_v58, %v9930_v35  ;;  %v5316_v34 = vsel %vm1065_vm4, %v9926_v39, %v5302_v58  ;;  %v10787_v58 = vld [vmem:[#allocation59_spill] sm:$0xff] }
 0x7d9   :  { %v5324_v53 = vmul.f32 %v5316_v34, %v10714_v26  ;;  %v5325_v42 = vmul.f32 %v5314_v55, %v10716_v37  ;;  %v5427_v12 = vpop.permute.xlu1 %5426  ;;  %5210 = vmatpush1.bf16.msra.mxu0 %v5202_v50  ;;  %5250 = vmatprep.subr.bf16.mxu1 %v5205_v13  ;;  %v10788_v13 = vld [vmem:[#allocation21_spill] sm:$0xff] }
 0x7da   :  { %5251 = vmatpush1.bf16.msra.mxu1 %v5204_v5  ;;  %v5442_v26 = vsel %vm1259_vm5, %v9932_v45, %v5427_v12  ;;  %v5440_v30 = vsel %vm1259_vm5, %v5427_v12, %v9936_v7  ;;  %v10782_v5 = vld [vmem:[#allocation77_spill] sm:$0xff] }
 0x7db   :  { %v5331_v18 = vpack.c.bf16 %v5325_v42, %v5321_v24  ;;  %v5310_v19 = vpop.permute.xlu0 %5309  ;;  %v5330_v10 = vpack.c.bf16 %v5324_v53, %v5320_v59  ;;  %v5447_v22 = vmul.f32 %v5440_v30, %v10768_v47  ;;  %v10786_v59 = vld [vmem:[#allocation79_spill] sm:$0xff] }
 0x7dc   :  { %v5312_v37 = vsel %vm1065_vm4, %v9930_v35, %v5310_v19  ;;  %v5318_v4 = vsel %vm1065_vm4, %v5310_v19, %v9926_v39  ;;  %6152 = vmatmul.mubr.msk.bf16.vlgmr.msra.gmra.mrb[32].mxu0 %vm3629_vm9, %v6151_v32  ;;  %v5446_v39 = vmul.f32 %v5442_v26, %v10767_v33  ;;  %v6157_v42 = vld [vmem:[%s10295_s10 + $0x5] sm:$0x1] }
 0x7dd   :  { %v5323_v46 = vmul.f32 %v5318_v4, %v10723_v44  ;;  %v5326_v25 = vmul.f32 %v5312_v37, %v10722_v52  ;;  %v5435_v21 = vpop.permute.xlu1 %5434  ;;  %6153 = vmatmul.mubr.msk.bf16.vlgmr.msra.gmra.mrb[32].mxu1 %vm3629_vm9, %v6151_v32  ;;  %5336 = vmatprep.subr.bf16.mxu0 %v5330_v10  ;;  %v10790_v10 = vld [vmem:[#allocation81_spill] sm:$0xff]  ;;  %v10791_v4 = vld [vmem:[#allocation60_spill] sm:$0xff] }
 0x7de   :  { %5368 = vmatprep.mubr.bf16.mxu0 %v10565_v40  ;;  %5409 = vmatprep.mubr.bf16.mxu1 %v10565_v40  ;;  %v5438_v44 = vsel %vm1259_vm5, %v9936_v7, %v5435_v21  ;;  %v5444_v27 = vsel %vm1259_vm5, %v5435_v21, %v9932_v45  ;;  %v6154_v7 = vld [vmem:[%s10295_s10 + $0x3] sm:$0x1]  ;;  %v10783_v45 = vld [vmem:[#allocation38_spill] sm:$0xff] }
 0x7df   :  { %v5329_v35 = vpack.c.bf16 %v5323_v46, %v5319_v14  ;;  %v5429_v3 = vpop.permute.xlu0 %5428  ;;  %v5332_v15 = vpack.c.bf16 %v5326_v25, %v5322_v2  ;;  %v5448_v6 = vmul.f32 %v5438_v44, %v10769_v56  ;;  %v5449_v54 = vmul.f32 %v5444_v27, %v10782_v5  ;;  %v10793_v44 = vld [vmem:[#allocation3_spill] sm:$0xff] }
 0x7e0   :  { %v5441_v52 = vsel %vm1259_vm5, %v5429_v3, %v9938_v29  ;;  %v5443_v16 = vsel %vm1259_vm5, %v9934_v43, %v5429_v3 }
 0x7e1   :  { %v5450_v23 = vmul.f32 %v5443_v16, %v10767_v33  ;;  %v5451_v1 = vmul.f32 %v5441_v52, %v10768_v47  ;;  %v5554_v41 = vpop.permute.xlu1 %5553  ;;  %5337 = vmatpush1.bf16.msra.mxu0 %v5329_v35  ;;  %5377 = vmatprep.subr.bf16.mxu1 %v5332_v15  ;;  %v10794_v16 = vld [vmem:[#allocation33_spill] sm:$0xff] }
 0x7e2   :  { %5378 = vmatpush1.bf16.msra.mxu1 %v5331_v18  ;;  %v5567_v33 = vsel %vm1453_vm6, %v5554_v41, %v10783_v45  ;;  %v5569_v62 = vsel %vm1453_vm6, %v10784_v63, %v5554_v41  ;;  %v10789_v18 = vld [vmem:[#allocation80_spill] sm:$0xff]  ;;  %v10796_v41 = vld [vmem:[#allocation22_spill] sm:$0xff] }
 0x7e3   :  { %v5456_v11 = vpack.c.bf16 %v5450_v23, %v5446_v39  ;;  %v5437_v36 = vpop.permute.xlu0 %5436  ;;  %v5457_v38 = vpack.c.bf16 %v5451_v1, %v5447_v22  ;;  %v5573_v57 = vmul.f32 %v5569_v62, %v10785_v17  ;;  %v5574_v50 = vmul.f32 %v5567_v33, %v10786_v59  ;;  %v10792_v39 = vld [vmem:[#allocation62_spill] sm:$0xff]  ;;  %v10795_v23 = vld [vmem:[#allocation63_spill] sm:$0xff] }
 0x7e4   :  { %v5439_v47 = vsel %vm1259_vm5, %v9938_v29, %v5437_v36  ;;  %v5445_v60 = vsel %vm1259_vm5, %v5437_v36, %v9934_v43  ;;  %6155 = vmatmul.mubr.msk.bf16.vlgmr.msra.gmra.mrb[36].mxu0 %vm3629_vm9, %v6154_v7 }
 0x7e5   :  { %v5452_v20 = vmul.f32 %v5439_v47, %v10769_v56  ;;  %v5453_v31 = vmul.f32 %v5445_v60, %v10782_v5  ;;  %v5562_v49 = vpop.permute.xlu1 %5561  ;;  %6156 = vmatmul.mubr.msk.bf16.vlgmr.msra.gmra.mrb[36].mxu1 %vm3629_vm9, %v6154_v7  ;;  %5463 = vmatprep.subr.bf16.mxu0 %v5457_v38  ;;  %v6160_v5 = vld [vmem:[%s10295_s10 + $0x6] sm:$0x1]  ;;  %v10797_v60 = vld [vmem:[#allocation24_spill] sm:$0xff] }
 0x7e6   :  { %5464 = vmatpush1.bf16.msra.mxu0 %v5456_v11  ;;  %5495 = vmatprep.mubr.bf16.mxu0 %v10565_v40  ;;  %v5565_v61 = vsel %vm1453_vm6, %v10783_v45, %v5562_v49  ;;  %v5571_v55 = vsel %vm1453_vm6, %v5562_v49, %v10784_v63 }
 0x7e7   :  { %v5458_v29 = vpack.c.bf16 %v5452_v20, %v5448_v6  ;;  %v5556_v48 = vpop.permute.xlu0 %5555  ;;  %v5459_v43 = vpack.c.bf16 %v5453_v31, %v5449_v54  ;;  %5536 = vmatprep.mubr.bf16.mxu1 %v10565_v40  ;;  %v5575_v19 = vmul.f32 %v5565_v61, %v10789_v18  ;;  %v5576_v2 = vmul.f32 %v5571_v55, %v10790_v10  ;;  %v10798_v31 = vld [vmem:[#allocation40_spill] sm:$0xff]  ;;  %v10800_v55 = vld [vmem:[#allocation42_spill] sm:$0xff] }
 0x7e8   :  { %v5568_v56 = vsel %vm1453_vm6, %v5556_v48, %v10787_v58  ;;  %v5570_v24 = vsel %vm1453_vm6, %v10788_v13, %v5556_v48 }
 0x7e9   :  { %v5577_v34 = vmul.f32 %v5570_v24, %v10785_v17  ;;  %v5578_v0 = vmul.f32 %v5568_v56, %v10786_v59  ;;  %v5681_v53 = vpop.permute.xlu1 %5680  ;;  %5504 = vmatprep.subr.bf16.mxu1 %v5459_v43  ;;  %v10799_v24 = vld [vmem:[#allocation41_spill] sm:$0xff] }
 0x7ea   :  { %5505 = vmatpush1.bf16.msra.mxu1 %v5458_v29  ;;  %v5696_v30 = vsel %vm1647_vm7, %v10791_v4, %v5681_v53  ;;  %v5694_v35 = vsel %vm1647_vm7, %v5681_v53, %v10792_v39 }
 0x7eb   :  { %v5583_v12 = vpack.c.bf16 %v5577_v34, %v5573_v57  ;;  %v5564_v32 = vpop.permute.xlu0 %5563  ;;  %v5584_v14 = vpack.c.bf16 %v5578_v0, %v5574_v50  ;;  %v5700_v52 = vmul.f32 %v5696_v30, %v10793_v44  ;;  %v5701_v7 = vmul.f32 %v5694_v35, %v10796_v41  ;;  %v10802_v30 = vld [vmem:[#allocation4_spill] sm:$0xff] }
 0x7ec   :  { %v5566_v26 = vsel %vm1453_vm6, %v10787_v58, %v5564_v32  ;;  %v5572_v37 = vsel %vm1453_vm6, %v5564_v32, %v10788_v13  ;;  %6158 = vmatmul.mubr.msk.bf16.vlgmr.msra.gmra.mrb[40].mxu0 %vm3629_vm9, %v6157_v42 }
 0x7ed   :  { %v5579_v46 = vmul.f32 %v5566_v26, %v10789_v18  ;;  %v5580_v25 = vmul.f32 %v5572_v37, %v10790_v10  ;;  %v5689_v21 = vpop.permute.xlu1 %5688  ;;  %6159 = vmatmul.mubr.msk.bf16.vlgmr.msra.gmra.mrb[40].mxu1 %vm3629_vm9, %v6157_v42  ;;  %5590 = vmatprep.subr.bf16.mxu0 %v5584_v14 }
 0x7ee   :  { %5591 = vmatpush1.bf16.msra.mxu0 %v5583_v12  ;;  %5622 = vmatprep.mubr.bf16.mxu0 %v10565_v40  ;;  %v5692_v6 = vsel %vm1647_vm7, %v10792_v39, %v5689_v21  ;;  %v5698_v54 = vsel %vm1647_vm7, %v5689_v21, %v10791_v4  ;;  %v6163_v12 = vld [vmem:[%s10295_s10 + $0x7] sm:$0x1] }
 0x7ef   :  { %v5585_v3 = vpack.c.bf16 %v5579_v46, %v5575_v19  ;;  %v5683_v15 = vpop.permute.xlu0 %5682  ;;  %v5586_v22 = vpack.c.bf16 %v5580_v25, %v5576_v2  ;;  %5663 = vmatprep.mubr.bf16.mxu1 %v10565_v40  ;;  %v5702_v63 = vmul.f32 %v5692_v6, %v10797_v60  ;;  %v5703_v49 = vmul.f32 %v5698_v54, %v10798_v31  ;;  %v10801_v2 = vld [vmem:[#allocation23_spill] sm:$0xff] }
 0x7f0   :  { %v5695_v27 = vsel %vm1647_vm7, %v5683_v15, %v10794_v16  ;;  %v5697_v1 = vsel %vm1647_vm7, %v10795_v23, %v5683_v15 }
 0x7f1   :  { %v5704_v11 = vmul.f32 %v5697_v1, %v10793_v44  ;;  %v5705_v36 = vmul.f32 %v5695_v27, %v10796_v41  ;;  %v5808_v38 = vpop.permute.xlu1 %5807  ;;  %5631 = vmatprep.subr.bf16.mxu1 %v5586_v22 }
 0x7f2   :  { %5632 = vmatpush1.bf16.msra.mxu1 %v5585_v3  ;;  %v5823_v17 = vsel %vm1841_vm8, %v9979_v51, %v5808_v38 }
 0x7f3   :  { %v5710_v45 = vpack.c.bf16 %v5704_v11, %v5700_v52  ;;  %v5691_v33 = vpop.permute.xlu0 %5690  ;;  %v5711_v47 = vpack.c.bf16 %v5705_v36, %v5701_v7  ;;  %v5827_v61 = vmul.f32 %v5823_v17, %v10799_v24 }
 0x7f4   :  { %v5693_v62 = vsel %vm1647_vm7, %v10794_v16, %v5691_v33  ;;  %v5699_v20 = vsel %vm1647_vm7, %v5691_v33, %v10795_v23  ;;  %6161 = vmatmul.mubr.msk.bf16.vlgmr.msra.gmra.mrb[44].mxu0 %vm3629_vm9, %v6160_v5 }
 0x7f5   :  { %v5706_v29 = vmul.f32 %v5693_v62, %v10797_v60  ;;  %v5707_v48 = vmul.f32 %v5699_v20, %v10798_v31  ;;  %v5812_v43 = vpop.permute.xlu1 %5811  ;;  %6162 = vmatmul.mubr.msk.bf16.vlgmr.msra.gmra.mrb[44].mxu1 %vm3629_vm9, %v6160_v5  ;;  %5717 = vmatprep.subr.bf16.mxu0 %v5711_v47 }
 0x7f6   :  { %v5821_v57 = vsel %vm1841_vm8, %v5808_v38, %v5812_v43  ;;  %5718 = vmatpush1.bf16.msra.mxu0 %v5710_v45  ;;  %5749 = vmatprep.mubr.bf16.mxu0 %v10565_v40 }
 0x7f7   :  { %v5712_v59 = vpack.c.bf16 %v5706_v29, %v5702_v63  ;;  %v5810_v50 = vpop.permute.xlu0 %5809  ;;  %v5713_v58 = vpack.c.bf16 %v5707_v48, %v5703_v49  ;;  %5790 = vmatprep.mubr.bf16.mxu1 %v10565_v40  ;;  %v5828_v34 = vmul.f32 %v5821_v57, %v10800_v55 }
 0x7f8   :  { %v5822_v56 = vsel %vm1841_vm8, %v5810_v50, %v9991_v8  ;;  %v5824_v13 = vsel %vm1841_vm8, %v9982_v9, %v5810_v50 }
 0x7f9   :  { %v5831_v0 = vmul.f32 %v5824_v13, %v10799_v24  ;;  %v5832_v53 = vmul.f32 %v5822_v56, %v10800_v55  ;;  %v5816_v42 = vpop.permute.xlu1 %5815  ;;  %5758 = vmatprep.subr.bf16.mxu1 %v5713_v58 }
 0x7fa   :  { %v5819_v32 = vsel %vm1841_vm8, %v5812_v43, %v5816_v42  ;;  %v5825_v14 = vsel %vm1841_vm8, %v5816_v42, %v9979_v51  ;;  %5759 = vmatpush1.bf16.msra.mxu1 %v5712_v59 }
 0x7fb   :  { %v5837_v18 = vpack.c.bf16 %v5831_v0, %v5827_v61  ;;  %v5818_v19 = vpop.permute.xlu0 %5817  ;;  %v5838_v10 = vpack.c.bf16 %v5832_v53, %v5828_v34  ;;  %v5829_v26 = vmul.f32 %v5819_v32, %v10801_v2  ;;  %v5830_v46 = vmul.f32 %v5825_v14, %v10802_v30 }
 0x7fc   :  { %v5820_v37 = vsel %vm1841_vm8, %v9991_v8, %v5818_v19  ;;  %v5826_v4 = vsel %vm1841_vm8, %v5818_v19, %v9982_v9  ;;  %6164 = vmatmul.mubr.msk.bf16.vlgmr.msra.gmra.mrb[48].mxu0 %vm3629_vm9, %v6163_v12 }
 0x7fd   :  { %v5833_v51 = vmul.f32 %v5820_v37, %v10801_v2  ;;  %v5834_v25 = vmul.f32 %v5826_v4, %v10802_v30  ;;  %6165 = vmatmul.mubr.msk.bf16.vlgmr.msra.gmra.mrb[48].mxu1 %vm3629_vm9, %v6163_v12  ;;  %5844 = vmatprep.subr.bf16.mxu0 %v5838_v10 }
 0x7fe   :  { %5845 = vmatpush1.bf16.msra.mxu0 %v5837_v18  ;;  %5876 = vmatprep.mubr.bf16.mxu0 %v10565_v40 }
 0x7ff   :  { %v5839_v21 = vpack.c.bf16 %v5833_v51, %v5829_v26  ;;  %v5840_v8 = vpack.c.bf16 %v5834_v25, %v5830_v46  ;;  %5917 = vmatprep.mubr.bf16.mxu1 %v10565_v40 }
 0x801   :  { %5885 = vmatprep.subr.bf16.mxu1 %v5840_v8 }
 0x802   :  { %5886 = vmatpush1.bf16.msra.mxu1 %v5839_v21 }
 0x804   :  { %6167 = vmatmul.mubr.msk.bf16.vlgmr.msra.gmra.mrb[52].mxu0 %vm3629_vm9, %v6166_v28 }
 0x805   :  { %6168 = vmatmul.mubr.msk.bf16.vlgmr.msra.gmra.mrb[52].mxu1 %vm3629_vm9, %v6166_v28 }
 0x897   :  { %v4908_v9 = vpop.f32.mrb[20].mxu0 }
 0x898   :  { %v4949_v39 = vpop.f32.mrb[20].mxu1  ;;  %v4910_v35 = vpop.f32.mrb[21].mxu0 }
 0x899   :  { %v4951_v3 = vpop.f32.mrb[21].mxu1  ;;  %v4912_v15 = vpop.f32.mrb[22].mxu0 }
 0x89a   :  { %v4953_v22 = vpop.f32.mrb[22].mxu1  ;;  %v4913_v44 = vpop.f32.mrb[23].mxu0 }
 0x89b   :  { %v4954_v52 = vpop.f32.mrb[23].mxu1 }
 0x89f   :  { %v4993_v16 = vpop.f32.mrb[24].mxu0 }
 0x8a0   :  { %v4994_v40 = vadd.f32 %v4993_v16, %v4908_v9  ;;  %v5034_v27 = vpop.f32.mrb[24].mxu1  ;;  %v4995_v23 = vpop.f32.mrb[25].mxu0 }
 0x8a1   :  { %v5035_v1 = vadd.f32 %v5034_v27, %v4949_v39  ;;  %v4996_v41 = vadd.f32 %v4995_v23, %v4910_v35  ;;  %v5036_v7 = vpop.f32.mrb[25].mxu1  ;;  %v4997_v6 = vpop.f32.mrb[26].mxu0 }
 0x8a2   :  { %v5037_v11 = vadd.f32 %v5036_v7, %v4951_v3  ;;  %v4998_v36 = vpop.f32.mrb[27].mxu0  ;;  %v5038_v38 = vpop.f32.mrb[26].mxu1 }
 0x8a3   :  { %v5039_v5 = vpop.f32.mrb[27].mxu1 }
 0x8a7   :  { %v5116_v54 = vpop.f32.mrb[28].mxu0 }
 0x8a8   :  { %v5164_v45 = vadd.f32 %v5116_v54, %v4994_v40  ;;  %v5118_v33 = vpop.f32.mrb[29].mxu0  ;;  %v5157_v47 = vpop.f32.mrb[28].mxu1 }
 0x8a9   :  { %v5165_v60 = vadd.f32 %v5118_v33, %v4996_v41  ;;  %v5166_v63 = vadd.f32 %v5157_v47, %v5035_v1  ;;  %v5159_v62 = vpop.f32.mrb[29].mxu1  ;;  %v5120_v20 = vpop.f32.mrb[30].mxu0 }
 0x8aa   :  { %v5167_v31 = vadd.f32 %v5159_v62, %v5037_v11  ;;  %v5121_v49 = vpop.f32.mrb[31].mxu0  ;;  %v5161_v29 = vpop.f32.mrb[30].mxu1 }
 0x8ab   :  { %v5162_v48 = vpop.f32.mrb[31].mxu1  ;;  %v5934_v29 = vpop.permute.xlu1 %5933 }
 0x8af   :  { %v5243_v43 = vpop.f32.mrb[32].mxu0 }
 0x8b0   :  { %v5291_v17 = vadd.f32 %v5243_v43, %v5164_v45  ;;  %v5245_v57 = vpop.f32.mrb[33].mxu0  ;;  %v5284_v59 = vpop.f32.mrb[32].mxu1 }
 0x8b1   :  { %v5292_v50 = vadd.f32 %v5245_v57, %v5165_v60  ;;  %v5293_v58 = vadd.f32 %v5284_v59, %v5166_v63  ;;  %v5286_v56 = vpop.f32.mrb[33].mxu1  ;;  %v5247_v13 = vpop.f32.mrb[34].mxu0 }
 0x8b2   :  { %v5294_v24 = vadd.f32 %v5286_v56, %v5167_v31  ;;  %v5248_v61 = vpop.f32.mrb[35].mxu0  ;;  %v5288_v55 = vpop.f32.mrb[34].mxu1  ;;  %v6468_v31 = vmov 1966171168  }
 0x8b3   :  { %v5289_v34 = vpop.f32.mrb[35].mxu1  ;;  %v5951_v49 = vunpack.c.l.s4 %v6468_v31 }
 0x8b5   :  { %v5952_v43 = vunpack.c.0.s8 %v5951_v49 }
 0x8b7   :  { %v5370_v0 = vpop.f32.mrb[36].mxu0 }
 0x8b8   :  { %v5418_v53 = vadd.f32 %v5370_v0, %v5291_v17  ;;  %v5372_v42 = vpop.f32.mrb[37].mxu0  ;;  %v5411_v12 = vpop.f32.mrb[36].mxu1  ;;  %v10803_v17 = vld [vmem:[#allocation19_spill] sm:$0xff] }
 0x8b9   :  { %v5419_v32 = vadd.f32 %v5372_v42, %v5292_v50  ;;  %v5420_v14 = vadd.f32 %v5411_v12, %v5293_v58  ;;  %v5413_v18 = vpop.f32.mrb[37].mxu1  ;;  %v5374_v19 = vpop.f32.mrb[38].mxu0  ;;  %v5939_v57 = vrot.slane %v5934_v29, %v10803_v17  ;;  %v10804_v12 = vld [vmem:[#allocation17_spill] sm:$0xff] }
 0x8ba   :  { %v5421_v10 = vadd.f32 %v5413_v18, %v5294_v24  ;;  %v5375_v2 = vpop.f32.mrb[39].mxu0  ;;  %v5415_v26 = vpop.f32.mrb[38].mxu1 }
 0x8bb   :  { %v5416_v37 = vpop.f32.mrb[39].mxu1 }
 0x8bf   :  { %v5497_v4 = vpop.f32.mrb[40].mxu0 }
 0x8c0   :  { %v5545_v30 = vadd.f32 %v5497_v4, %v5418_v53  ;;  %v5499_v46 = vpop.f32.mrb[41].mxu0  ;;  %v5538_v51 = vpop.f32.mrb[40].mxu1 }
 0x8c1   :  { %v5546_v25 = vadd.f32 %v5499_v46, %v5419_v32  ;;  %v5547_v21 = vadd.f32 %v5538_v51, %v5420_v14  ;;  %v5540_v8 = vpop.f32.mrb[41].mxu1  ;;  %v5501_v28 = vpop.f32.mrb[42].mxu0  ;;  %v5955_v32 = vsub.s32 %v5952_v43, %v10804_v12 }
 0x8c2   :  { %v5548_v9 = vadd.f32 %v5540_v8, %v5421_v10  ;;  %v5502_v39 = vpop.f32.mrb[43].mxu0  ;;  %v5542_v35 = vpop.f32.mrb[42].mxu1 }
 0x8c3   :  { %v5543_v3 = vpop.f32.mrb[43].mxu1 }
 0x8c7   :  { %v5624_v15 = vpop.f32.mrb[44].mxu0 }
 0x8c8   :  { %v5672_v22 = vadd.f32 %v5624_v15, %v5545_v30  ;;  %v5626_v44 = vpop.f32.mrb[45].mxu0  ;;  %v5665_v52 = vpop.f32.mrb[44].mxu1  ;;  %v10805_v30 = vlaneseq }
 0x8c9   :  { %v5673_v16 = vadd.f32 %v5626_v44, %v5546_v25  ;;  %v5674_v40 = vadd.f32 %v5665_v52, %v5547_v21  ;;  %v5667_v27 = vpop.f32.mrb[45].mxu1  ;;  %v5628_v23 = vpop.f32.mrb[46].mxu0 }
 0x8ca   :  { %v5675_v1 = vadd.f32 %v5667_v27, %v5548_v9  ;;  %v5629_v41 = vpop.f32.mrb[47].mxu0  ;;  %v5669_v7 = vpop.f32.mrb[46].mxu1  ;;  %vm5975_vm10 = vcmp.lt.s32.totalorder %v10805_v30, 512 }
 0x8cb   :  { %v5670_v6 = vpop.f32.mrb[47].mxu1 }
 0x8cf   :  { %v5751_v11 = vpop.f32.mrb[48].mxu0 }
 0x8d0   :  { %v5799_v36 = vadd.f32 %v5751_v11, %v5672_v22  ;;  %v5753_v38 = vpop.f32.mrb[49].mxu0  ;;  %v5792_v5 = vpop.f32.mrb[48].mxu1 }
 0x8d1   :  { %v5800_v54 = vadd.f32 %v5753_v38, %v5673_v16  ;;  %v5801_v45 = vadd.f32 %v5792_v5, %v5674_v40  ;;  %v5794_v33 = vpop.f32.mrb[49].mxu1  ;;  %v5755_v47 = vpop.f32.mrb[50].mxu0 }
 0x8d2   :  { %v5802_v60 = vadd.f32 %v5794_v33, %v5675_v1  ;;  %v5756_v63 = vpop.f32.mrb[51].mxu0  ;;  %v5796_v62 = vpop.f32.mrb[50].mxu1 }
 0x8d3   :  { %v5797_v20 = vpop.f32.mrb[51].mxu1 }
 0x8d7   :  { %v5878_v48 = vpop.f32.mrb[52].mxu0 }
 0x8d8   :  { %v5926_v59 = vadd.f32 %v5878_v48, %v5799_v36  ;;  %v5880_v50 = vpop.f32.mrb[53].mxu0  ;;  %v5919_v58 = vpop.f32.mrb[52].mxu1 }
 0x8d9   :  { %v5927_v56 = vadd.f32 %v5880_v50, %v5800_v54  ;;  %v5928_v13 = vadd.f32 %v5919_v58, %v5801_v45  ;;  %v5921_v24 = vpop.f32.mrb[53].mxu1  ;;  %v5882_v61 = vpop.f32.mrb[54].mxu0 }
 0x8da   :  { %v5940_v55 = vadd.f32 %v5939_v57, %v5926_v59  ;;  %v5929_v34 = vadd.f32 %v5921_v24, %v5802_v60  ;;  %v5923_v0 = vpop.f32.mrb[54].mxu1  ;;  %v5883_v53 = vpop.f32.mrb[55].mxu0 }
 0x8db   :  { %v5941_v42 = vadd.f32 %v5939_v57, %v5927_v56  ;;  %v5942_v14 = vadd.f32 %v5939_v57, %v5928_v13  ;;  %v5924_v18 = vpop.f32.mrb[55].mxu1 }
 0x8dc   :  { %v5943_v19 = vadd.f32 %v5939_v57, %v5929_v34 }
 0x8dd   :  { %v5948_v10 = vcombine.low %v5940_v55, %v5941_v42 }
 0x8de   :  { %v5949_v2 = vcombine.low %v5942_v14, %v5943_v19 }
 0x8df   :  { %v5956_v26 = vrot.slane %v5948_v10, %v5955_v32 }
 0x8e0   :  { %v5963_v37 = vrot.slane %v5949_v2, %v5955_v32 }
 0x8e2   :  { %v5964_v4 = vcombine.low %v5956_v26, %v5963_v37 }
 0x8e4   :  { %v5971_v46 = vrot.slane %v5964_v4, %v5955_v32 }
 0x8e6   :  { %5977 = vst.msk [vmem:[%s10296_s12] sm:$0xf] %vm5975_vm10, %v5971_v46 }

</bundles_post_ra>
